<compile_context>
chip_gen: v6e
topology: v6e:2x2x1
jax: 0.10.0
libtpu: 0.0.40
codegen_flags: <defaults>
</compile_context>

<pallas_src>
import jax
import jax.numpy as jnp
import numpy as np
from jax import lax
from jax.experimental import pallas as pl
from jax.experimental.pallas import tpu as pltpu

# Problem sizes (from the PyTorch module definition).
N, C_IN, H, W = 1, 768, 12, 12
C_MID = 128          # conv2d34 output channels
C_OUT = 128          # conv2d35 output channels
KH = 7               # conv2d35 kernel height
PAD_H = 3            # conv2d35 padding along H
EPS = 1e-3           # BatchNorm eps
S = N * H * W        # flattened spatial rows (144)
SP = (H + 2 * PAD_H) * W   # padded spatial rows (216)
assert N == 1        # free NCHW <-> [C, H*W] reshape trick requires N == 1


def fused_kernel(x_ref, w1t_ref, w2_ref, params_ref, out_ref, ypad_ref):
    inv_s = 1.0 / S

    # Packed per-channel BN parameters: rows = g1, b1, g2, b2.
    g1 = params_ref[0:1, :]
    b1 = params_ref[1:2, :]
    g2 = params_ref[2:3, :]
    b2 = params_ref[3:4, :]

    # --- conv2d34: 1x1 conv == channel matmul on the MXU (f32 acc) -----------
    # bf16-at-rest weight is up-cast in VMEM; f32 x f32 dot keeps the kernel
    # runnable on the interpret backend and costs nothing here (DMA-bound).
    yT = jnp.dot(w1t_ref[...].astype(jnp.float32),      # [C_MID, C_IN]
                 x_ref[...],                             # [C_IN, S]
                 preferred_element_type=jnp.float32)     # -> [C_MID, S]
    y = jnp.transpose(yT)                                # [S, C_MID] (tiny XLU)

    # --- batchnorm2d34 (batch stats, two-pass var) folded to affine + ReLU ---
    mean1 = jnp.sum(y, axis=0, keepdims=True) * inv_s
    yc = y - mean1
    var1 = jnp.sum(yc * yc, axis=0, keepdims=True) * inv_s
    scale1 = g1 * lax.rsqrt(var1 + EPS)
    yact = jnp.maximum(yc * scale1 + b1, 0.0)            # [S, C_MID]

    # --- zero-padded activations for the (7,1) conv ---------------------------
    # Rows [0:36) and [180:216) are the H-padding; data lives in [36:180).
    ypad_ref[0:PAD_H * W, :] = jnp.zeros((PAD_H * W, C_MID), jnp.float32)
    ypad_ref[PAD_H * W + S:SP, :] = jnp.zeros((PAD_H * W, C_MID), jnp.float32)
    ypad_ref[PAD_H * W:PAD_H * W + S, :] = yact

    # --- conv2d35: (7,1) conv == 7 accumulating matmuls over shifted views ----
    z = jnp.zeros((S, C_OUT), jnp.float32)
    for kh in range(KH):                                  # static unroll
        z = z + jnp.dot(ypad_ref[kh * W:kh * W + S, :],   # [S, C_MID]
                        w2_ref[kh].astype(jnp.float32),   # [C_MID, C_OUT]
                        preferred_element_type=jnp.float32)

    # --- batchnorm2d35 (batch stats, two-pass var) folded to affine -----------
    mean2 = jnp.sum(z, axis=0, keepdims=True) * inv_s
    zc = z - mean2
    var2 = jnp.sum(zc * zc, axis=0, keepdims=True) * inv_s
    scale2 = g2 * lax.rsqrt(var2 + EPS)
    # Emit channels-first [C_OUT, S] so the wrapper's NCHW reshape is free.
    out_ref[...] = jnp.transpose(zc * scale2 + b2)        # [C_OUT, S]


_COST = pl.CostEstimate(
    flops=2 * (C_MID * C_IN * S + KH * S * C_MID * C_OUT),
    transcendentals=0,
    bytes_accessed=(4 * C_IN * S              # x (f32)
                    + 2 * C_MID * C_IN        # w1t (bf16)
                    + 2 * KH * C_MID * C_OUT  # w2 (bf16)
                    + 4 * 4 * C_MID           # packed BN params (f32)
                    + 4 * C_OUT * S),         # output (f32)
)


def forward(x_nchw, w1t_bf16, w2_bf16, params_f32):
    """x_nchw: [1,768,12,12] f32; w1t: [128,768] bf16; w2: [7,128,128] bf16;
    params: [4,128] f32 (rows g1, b1, g2, b2)."""
    x2d = x_nchw.reshape(C_IN, S)                 # NCHW (N=1) -> [C_IN, H*W], free
    out2d = pl.pallas_call(
        fused_kernel,
        out_shape=jax.ShapeDtypeStruct((C_OUT, S), jnp.float32),
        in_specs=[pl.BlockSpec(memory_space=pltpu.MemorySpace.VMEM)] * 4,
        out_specs=pl.BlockSpec(memory_space=pltpu.MemorySpace.VMEM),
        scratch_shapes=[pltpu.VMEM((SP, C_MID), jnp.float32)],   # ypad
        cost_estimate=_COST,
    )(x2d, w1t_bf16, w2_bf16, params_f32)
    return out2d.reshape(N, C_OUT, H, W)          # [C_OUT, H*W] -> NCHW, free


def reference(x, w1t, g1, b1, w2, g2, b2):
    """Pure-JAX f32 reference matching PyTorch training-mode forward."""
    def bn(t, g, b):
        m = jnp.mean(t, axis=(0, 2, 3), keepdims=True)
        v = jnp.mean(jnp.square(t - m), axis=(0, 2, 3), keepdims=True)
        return (t - m) * lax.rsqrt(v + EPS) * g.reshape(1, -1, 1, 1) \
            + b.reshape(1, -1, 1, 1)

    w1_oihw = w1t[:, :, None, None]                        # [O, I, 1, 1]
    y = lax.conv_general_dilated(x, w1_oihw, (1, 1), 'VALID',
                                 dimension_numbers=('NCHW', 'OIHW', 'NCHW'))
    y = jnp.maximum(bn(y, g1, b1), 0.0)
    w2_oihw = jnp.transpose(w2, (2, 1, 0))[:, :, :, None]  # [O, I, KH, 1]
    z = lax.conv_general_dilated(y, w2_oihw, (1, 1),
                                 ((PAD_H, PAD_H), (0, 0)),
                                 dimension_numbers=('NCHW', 'OIHW', 'NCHW'))
    return bn(z, g2, b2)


if __name__ == "__main__":
    key = jax.random.PRNGKey(0)
    k1, k2, k3, k4, k5, k6, k7 = jax.random.split(key, 7)

    # Deterministic synthetic parameters (shapes match the PyTorch module).
    # conv2d34.weight [128, 768, 1, 1] stored here as [C_MID, C_IN]
    w1t = jax.random.normal(k1, (C_MID, C_IN), jnp.float32) * 0.02
    g1 = jax.random.normal(k2, (C_MID,), jnp.float32) * 0.1 + 1.0
    b1 = jax.random.normal(k3, (C_MID,), jnp.float32) * 0.1
    # conv2d35.weight [128, 128, 7, 1] stored here as [KH, C_MID, C_OUT]
    w2 = jax.random.normal(k4, (KH, C_MID, C_OUT), jnp.float32) * 0.02
    g2 = jax.random.normal(k5, (C_OUT,), jnp.float32) * 0.1 + 1.0
    b2 = jax.random.normal(k6, (C_OUT,), jnp.float32) * 0.1

    x113 = jax.random.normal(k7, (N, C_IN, H, W), jnp.float32)

    # bf16-at-rest weights fed to the kernel; the reference uses the same
    # (bf16-rounded) values in f32 so the comparison isolates kernel math.
    w1t_bf16 = w1t.astype(jnp.bfloat16)
    w2_bf16 = w2.astype(jnp.bfloat16)
    w1t_f32 = w1t_bf16.astype(jnp.float32)
    w2_f32 = w2_bf16.astype(jnp.float32)
    params = jnp.stack([g1, b1, g2, b2], axis=0)           # [4, C]

    out = jax.jit(forward)(x113, w1t_bf16, w2_bf16, params)
    out = jax.block_until_ready(out)
    assert out.shape == (N, C_OUT, H, W) and out.dtype == jnp.float32

    ref = jax.block_until_ready(
        reference(x113, w1t_f32, g1, b1, w2_f32, g2, b2))
    np.testing.assert_allclose(np.asarray(out), np.asarray(ref),
                               rtol=2e-2, atol=2e-2)

    print("KERNEL_OK")
</pallas_src>

<mosaic_0001>
module attributes {stable_mosaic.version = 11 : i64} {
  func.func @fused_kernel(%arg0: memref<768x144xf32, #tpu.memory_space<vmem>>, %arg1: memref<128x768xbf16, #tpu.memory_space<vmem>>, %arg2: memref<7x128x128xbf16, #tpu.memory_space<vmem>>, %arg3: memref<4x128xf32, #tpu.memory_space<vmem>>, %arg4: memref<128x144xf32, #tpu.memory_space<vmem>>, %arg5: memref<216x128xf32, #tpu.memory_space<vmem>>) attributes {dimension_semantics = [], scalar_prefetch = 0 : i64, scratch_operands = 1 : i64, tpu.core_type = #tpu.core_type<tc>} {
    %c0 = arith.constant 0 : index
    %c0_0 = arith.constant 0 : index
    %0 = vector.load %arg3[%c0, %c0_0] : memref<4x128xf32, #tpu.memory_space<vmem>>, vector<1x128xf32>
    %c1 = arith.constant 1 : index
    %c0_1 = arith.constant 0 : index
    %1 = vector.load %arg3[%c1, %c0_1] : memref<4x128xf32, #tpu.memory_space<vmem>>, vector<1x128xf32>
    %c2 = arith.constant 2 : index
    %c0_2 = arith.constant 0 : index
    %2 = vector.load %arg3[%c2, %c0_2] : memref<4x128xf32, #tpu.memory_space<vmem>>, vector<1x128xf32>
    %c3 = arith.constant 3 : index
    %c0_3 = arith.constant 0 : index
    %3 = vector.load %arg3[%c3, %c0_3] : memref<4x128xf32, #tpu.memory_space<vmem>>, vector<1x128xf32>
    %c0_4 = arith.constant 0 : index
    %c0_5 = arith.constant 0 : index
    %4 = vector.load %arg1[%c0_4, %c0_5] : memref<128x768xbf16, #tpu.memory_space<vmem>>, vector<128x768xbf16>
    %5 = arith.extf %4 : vector<128x768xbf16> to vector<128x768xf32>
    %c0_6 = arith.constant 0 : index
    %c0_7 = arith.constant 0 : index
    %6 = vector.load %arg0[%c0_6, %c0_7] : memref<768x144xf32, #tpu.memory_space<vmem>>, vector<768x144xf32>
    %cst = arith.constant dense<0.000000e+00> : vector<128x144xf32>
    %7 = tpu.matmul %5, %6, %cst {dimension_numbers = #tpu.dot_dimension_numbers<[1], [0], [0], [1], [0, 0, 1, 1], [], []>} : vector<128x768xf32>, vector<768x144xf32>, vector<128x144xf32> -> vector<128x144xf32>
    %8 = tpu.transpose %7, [1, 0] : vector<128x144xf32> -> vector<144x128xf32>
    %cst_8 = arith.constant dense<0.000000e+00> : vector<128xf32>
    %9 = vector.multi_reduction <add>, %8, %cst_8 [0] : vector<144x128xf32> to vector<128xf32>
    %10 = vector.shape_cast %9 : vector<128xf32> to vector<1x128xf32>
    %cst_9 = arith.constant 0.0069444445 : f32
    %11 = vector.broadcast %cst_9 : f32 to vector<1x128xf32>
    %12 = arith.mulf %10, %11 : vector<1x128xf32>
    %13 = vector.broadcast %12 : vector<1x128xf32> to vector<144x128xf32>
    %14 = arith.subf %8, %13 : vector<144x128xf32>
    %15 = arith.mulf %14, %14 : vector<144x128xf32>
    %cst_10 = arith.constant dense<0.000000e+00> : vector<128xf32>
    %16 = vector.multi_reduction <add>, %15, %cst_10 [0] : vector<144x128xf32> to vector<128xf32>
    %17 = vector.shape_cast %16 : vector<128xf32> to vector<1x128xf32>
    %cst_11 = arith.constant 0.0069444445 : f32
    %18 = vector.broadcast %cst_11 : f32 to vector<1x128xf32>
    %19 = arith.mulf %17, %18 : vector<1x128xf32>
    %cst_12 = arith.constant 1.000000e-03 : f32
    %20 = vector.broadcast %cst_12 : f32 to vector<1x128xf32>
    %21 = arith.addf %19, %20 : vector<1x128xf32>
    %22 = math.rsqrt %21 : vector<1x128xf32>
    %23 = arith.mulf %0, %22 : vector<1x128xf32>
    %24 = vector.broadcast %23 : vector<1x128xf32> to vector<144x128xf32>
    %25 = arith.mulf %14, %24 : vector<144x128xf32>
    %26 = vector.broadcast %1 : vector<1x128xf32> to vector<144x128xf32>
    %27 = arith.addf %25, %26 : vector<144x128xf32>
    %cst_13 = arith.constant 0.000000e+00 : f32
    %28 = vector.broadcast %cst_13 : f32 to vector<144x128xf32>
    %29 = arith.maximumf %27, %28 : vector<144x128xf32>
    %cst_14 = arith.constant 0.000000e+00 : f32
    %30 = vector.broadcast %cst_14 : f32 to vector<36x128xf32>
    %c0_15 = arith.constant 0 : index
    %c0_16 = arith.constant 0 : index
    %31 = vector.load %arg5[%c0_15, %c0_16] : memref<216x128xf32, #tpu.memory_space<vmem>>, vector<36x128xf32>
    tpu.vector_store %arg5[%c0_15, %c0_16], %30 {strides = array<i32>} : memref<216x128xf32, #tpu.memory_space<vmem>>, vector<36x128xf32>,
    %cst_17 = arith.constant 0.000000e+00 : f32
    %32 = vector.broadcast %cst_17 : f32 to vector<36x128xf32>
    %c180 = arith.constant 180 : index
    %c0_18 = arith.constant 0 : index
    %33 = vector.load %arg5[%c180, %c0_18] : memref<216x128xf32, #tpu.memory_space<vmem>>, vector<36x128xf32>
    tpu.vector_store %arg5[%c180, %c0_18], %32 {strides = array<i32>} : memref<216x128xf32, #tpu.memory_space<vmem>>, vector<36x128xf32>,
    %c36 = arith.constant 36 : index
    %c0_19 = arith.constant 0 : index
    %34 = vector.load %arg5[%c36, %c0_19] : memref<216x128xf32, #tpu.memory_space<vmem>>, vector<144x128xf32>
    tpu.vector_store %arg5[%c36, %c0_19], %29 {strides = array<i32>} : memref<216x128xf32, #tpu.memory_space<vmem>>, vector<144x128xf32>,
    %cst_20 = arith.constant 0.000000e+00 : f32
    %35 = vector.broadcast %cst_20 : f32 to vector<144x128xf32>
    %c0_21 = arith.constant 0 : index
    %c0_22 = arith.constant 0 : index
    %36 = vector.load %arg5[%c0_21, %c0_22] : memref<216x128xf32, #tpu.memory_space<vmem>>, vector<144x128xf32>
    %c0_23 = arith.constant 0 : index
    %c0_24 = arith.constant 0 : index
    %c0_25 = arith.constant 0 : index
    %37 = vector.load %arg2[%c0_23, %c0_24, %c0_25] : memref<7x128x128xbf16, #tpu.memory_space<vmem>>, vector<1x128x128xbf16>
    %38 = vector.shape_cast %37 : vector<1x128x128xbf16> to vector<128x128xbf16>
    %39 = arith.extf %38 : vector<128x128xbf16> to vector<128x128xf32>
    %cst_26 = arith.constant dense<0.000000e+00> : vector<144x128xf32>
    %40 = tpu.matmul %36, %39, %cst_26 {dimension_numbers = #tpu.dot_dimension_numbers<[1], [0], [0], [1], [0, 0, 1, 1], [], []>} : vector<144x128xf32>, vector<128x128xf32>, vector<144x128xf32> -> vector<144x128xf32>
    %41 = arith.addf %35, %40 : vector<144x128xf32>
    %c12 = arith.constant 12 : index
    %c0_27 = arith.constant 0 : index
    %42 = vector.load %arg5[%c12, %c0_27] : memref<216x128xf32, #tpu.memory_space<vmem>>, vector<144x128xf32>
    %c1_28 = arith.constant 1 : index
    %c0_29 = arith.constant 0 : index
    %c0_30 = arith.constant 0 : index
    %43 = vector.load %arg2[%c1_28, %c0_29, %c0_30] : memref<7x128x128xbf16, #tpu.memory_space<vmem>>, vector<1x128x128xbf16>
    %44 = vector.shape_cast %43 : vector<1x128x128xbf16> to vector<128x128xbf16>
    %45 = arith.extf %44 : vector<128x128xbf16> to vector<128x128xf32>
    %cst_31 = arith.constant dense<0.000000e+00> : vector<144x128xf32>
    %46 = tpu.matmul %42, %45, %cst_31 {dimension_numbers = #tpu.dot_dimension_numbers<[1], [0], [0], [1], [0, 0, 1, 1], [], []>} : vector<144x128xf32>, vector<128x128xf32>, vector<144x128xf32> -> vector<144x128xf32>
    %47 = arith.addf %41, %46 : vector<144x128xf32>
    %c24 = arith.constant 24 : index
    %c0_32 = arith.constant 0 : index
    %48 = vector.load %arg5[%c24, %c0_32] : memref<216x128xf32, #tpu.memory_space<vmem>>, vector<144x128xf32>
    %c2_33 = arith.constant 2 : index
    %c0_34 = arith.constant 0 : index
    %c0_35 = arith.constant 0 : index
    %49 = vector.load %arg2[%c2_33, %c0_34, %c0_35] : memref<7x128x128xbf16, #tpu.memory_space<vmem>>, vector<1x128x128xbf16>
    %50 = vector.shape_cast %49 : vector<1x128x128xbf16> to vector<128x128xbf16>
    %51 = arith.extf %50 : vector<128x128xbf16> to vector<128x128xf32>
    %cst_36 = arith.constant dense<0.000000e+00> : vector<144x128xf32>
    %52 = tpu.matmul %48, %51, %cst_36 {dimension_numbers = #tpu.dot_dimension_numbers<[1], [0], [0], [1], [0, 0, 1, 1], [], []>} : vector<144x128xf32>, vector<128x128xf32>, vector<144x128xf32> -> vector<144x128xf32>
    %53 = arith.addf %47, %52 : vector<144x128xf32>
    %c36_37 = arith.constant 36 : index
    %c0_38 = arith.constant 0 : index
    %54 = vector.load %arg5[%c36_37, %c0_38] : memref<216x128xf32, #tpu.memory_space<vmem>>, vector<144x128xf32>
    %c3_39 = arith.constant 3 : index
    %c0_40 = arith.constant 0 : index
    %c0_41 = arith.constant 0 : index
    %55 = vector.load %arg2[%c3_39, %c0_40, %c0_41] : memref<7x128x128xbf16, #tpu.memory_space<vmem>>, vector<1x128x128xbf16>
    %56 = vector.shape_cast %55 : vector<1x128x128xbf16> to vector<128x128xbf16>
    %57 = arith.extf %56 : vector<128x128xbf16> to vector<128x128xf32>
    %cst_42 = arith.constant dense<0.000000e+00> : vector<144x128xf32>
    %58 = tpu.matmul %54, %57, %cst_42 {dimension_numbers = #tpu.dot_dimension_numbers<[1], [0], [0], [1], [0, 0, 1, 1], [], []>} : vector<144x128xf32>, vector<128x128xf32>, vector<144x128xf32> -> vector<144x128xf32>
    %59 = arith.addf %53, %58 : vector<144x128xf32>
    %c48 = arith.constant 48 : index
    %c0_43 = arith.constant 0 : index
    %60 = vector.load %arg5[%c48, %c0_43] : memref<216x128xf32, #tpu.memory_space<vmem>>, vector<144x128xf32>
    %c4 = arith.constant 4 : index
    %c0_44 = arith.constant 0 : index
    %c0_45 = arith.constant 0 : index
    %61 = vector.load %arg2[%c4, %c0_44, %c0_45] : memref<7x128x128xbf16, #tpu.memory_space<vmem>>, vector<1x128x128xbf16>
    %62 = vector.shape_cast %61 : vector<1x128x128xbf16> to vector<128x128xbf16>
    %63 = arith.extf %62 : vector<128x128xbf16> to vector<128x128xf32>
    %cst_46 = arith.constant dense<0.000000e+00> : vector<144x128xf32>
    %64 = tpu.matmul %60, %63, %cst_46 {dimension_numbers = #tpu.dot_dimension_numbers<[1], [0], [0], [1], [0, 0, 1, 1], [], []>} : vector<144x128xf32>, vector<128x128xf32>, vector<144x128xf32> -> vector<144x128xf32>
    %65 = arith.addf %59, %64 : vector<144x128xf32>
    %c60 = arith.constant 60 : index
    %c0_47 = arith.constant 0 : index
    %66 = vector.load %arg5[%c60, %c0_47] : memref<216x128xf32, #tpu.memory_space<vmem>>, vector<144x128xf32>
    %c5 = arith.constant 5 : index
    %c0_48 = arith.constant 0 : index
    %c0_49 = arith.constant 0 : index
    %67 = vector.load %arg2[%c5, %c0_48, %c0_49] : memref<7x128x128xbf16, #tpu.memory_space<vmem>>, vector<1x128x128xbf16>
    %68 = vector.shape_cast %67 : vector<1x128x128xbf16> to vector<128x128xbf16>
    %69 = arith.extf %68 : vector<128x128xbf16> to vector<128x128xf32>
    %cst_50 = arith.constant dense<0.000000e+00> : vector<144x128xf32>
    %70 = tpu.matmul %66, %69, %cst_50 {dimension_numbers = #tpu.dot_dimension_numbers<[1], [0], [0], [1], [0, 0, 1, 1], [], []>} : vector<144x128xf32>, vector<128x128xf32>, vector<144x128xf32> -> vector<144x128xf32>
    %71 = arith.addf %65, %70 : vector<144x128xf32>
    %c72 = arith.constant 72 : index
    %c0_51 = arith.constant 0 : index
    %72 = vector.load %arg5[%c72, %c0_51] : memref<216x128xf32, #tpu.memory_space<vmem>>, vector<144x128xf32>
    %c6 = arith.constant 6 : index
    %c0_52 = arith.constant 0 : index
    %c0_53 = arith.constant 0 : index
    %73 = vector.load %arg2[%c6, %c0_52, %c0_53] : memref<7x128x128xbf16, #tpu.memory_space<vmem>>, vector<1x128x128xbf16>
    %74 = vector.shape_cast %73 : vector<1x128x128xbf16> to vector<128x128xbf16>
    %75 = arith.extf %74 : vector<128x128xbf16> to vector<128x128xf32>
    %cst_54 = arith.constant dense<0.000000e+00> : vector<144x128xf32>
    %76 = tpu.matmul %72, %75, %cst_54 {dimension_numbers = #tpu.dot_dimension_numbers<[1], [0], [0], [1], [0, 0, 1, 1], [], []>} : vector<144x128xf32>, vector<128x128xf32>, vector<144x128xf32> -> vector<144x128xf32>
    %77 = arith.addf %71, %76 : vector<144x128xf32>
    %cst_55 = arith.constant dense<0.000000e+00> : vector<128xf32>
    %78 = vector.multi_reduction <add>, %77, %cst_55 [0] : vector<144x128xf32> to vector<128xf32>
    %79 = vector.shape_cast %78 : vector<128xf32> to vector<1x128xf32>
    %cst_56 = arith.constant 0.0069444445 : f32
    %80 = vector.broadcast %cst_56 : f32 to vector<1x128xf32>
    %81 = arith.mulf %79, %80 : vector<1x128xf32>
    %82 = vector.broadcast %81 : vector<1x128xf32> to vector<144x128xf32>
    %83 = arith.subf %77, %82 : vector<144x128xf32>
    %84 = arith.mulf %83, %83 : vector<144x128xf32>
    %cst_57 = arith.constant dense<0.000000e+00> : vector<128xf32>
    %85 = vector.multi_reduction <add>, %84, %cst_57 [0] : vector<144x128xf32> to vector<128xf32>
    %86 = vector.shape_cast %85 : vector<128xf32> to vector<1x128xf32>
    %cst_58 = arith.constant 0.0069444445 : f32
    %87 = vector.broadcast %cst_58 : f32 to vector<1x128xf32>
    %88 = arith.mulf %86, %87 : vector<1x128xf32>
    %cst_59 = arith.constant 1.000000e-03 : f32
    %89 = vector.broadcast %cst_59 : f32 to vector<1x128xf32>
    %90 = arith.addf %88, %89 : vector<1x128xf32>
    %91 = math.rsqrt %90 : vector<1x128xf32>
    %92 = arith.mulf %2, %91 : vector<1x128xf32>
    %93 = vector.broadcast %92 : vector<1x128xf32> to vector<144x128xf32>
    %94 = arith.mulf %83, %93 : vector<144x128xf32>
    %95 = vector.broadcast %3 : vector<1x128xf32> to vector<144x128xf32>
    %96 = arith.addf %94, %95 : vector<144x128xf32>
    %97 = tpu.transpose %96, [1, 0] : vector<144x128xf32> -> vector<128x144xf32>
    %c0_60 = arith.constant 0 : index
    %c0_61 = arith.constant 0 : index
    %98 = vector.load %arg4[%c0_60, %c0_61] : memref<128x144xf32, #tpu.memory_space<vmem>>, vector<128x144xf32>
    tpu.vector_store %arg4[%c0_60, %c0_61], %97 {strides = array<i32>} : memref<128x144xf32, #tpu.memory_space<vmem>>, vector<128x144xf32>,
    return
  }
}

</mosaic_0001>

<bundles_post_ra>
// kernel: forward.1
= control target key start
LH: loop header
LB: loop body
LE: loop exit
PB: predicated region body
PF: predicated region fallthrough
CT: control target
= control target key end

     0   :  { %vm2808_vm0 = vcmask 130048   ;;  %s5764_s0 = inlined_call_operand.vmem [shape: f32[768,144], index: 0, kind: input, shape index: {}]   ;;  %s5765_s1 = inlined_call_operand.vmem [shape: bf16[128,768], index: 1, kind: input, shape index: {}]   ;;  %s5766_s2 = inlined_call_operand.vmem [shape: bf16[7,128,128], index: 2, kind: input, shape index: {}]   ;;  %s5767_s3 = inlined_call_operand.vmem [shape: f32[4,128], index: 3, kind: input, shape index: {}]   ;;  %s5768_s4 = inlined_call_operand.vmem [shape: f32[128,144], index: 4, kind: output, shape index: {}]  }
   0x1   :  { %v196_v0 = vld [vmem:[%s5764_s0 + $0xf8] sm:$0xff]  ;;  %v195_v2 = vld [vmem:[%s5764_s0 + $0xf0] sm:$0xff]  ;;  %v194_v4 = vld [vmem:[%s5764_s0 + $0xe8] sm:$0xff] }
   0x2   :  { %v260_v1 = vld [vmem:[%s5764_s0 + $0x2f8] sm:$0xff]  ;;  %357 = vmatprep.subr.mxu0 %v196_v0  ;;  %v259_v3 = vld [vmem:[%s5764_s0 + $0x2f0] sm:$0xff]  ;;  %v258_v5 = vld [vmem:[%s5764_s0 + $0x2e8] sm:$0xff] }
   0x3   :  { %518 = vmatprep.subr.mxu1 %v260_v1  ;;  %358 = vmatpush1.msra.mxu0 %v195_v2  ;;  %v193_v6 = vld [vmem:[%s5764_s0 + $0xe0] sm:$0xff]  ;;  %v192_v8 = vld [vmem:[%s5764_s0 + $0xd8] sm:$0xff]  ;;  %v191_v10 = vld [vmem:[%s5764_s0 + $0xd0] sm:$0xff] }
   0x4   :  { %519 = vmatpush1.msra.mxu1 %v259_v3  ;;  %v257_v7 = vld [vmem:[%s5764_s0 + $0x2e0] sm:$0xff]  ;;  %359 = vmatprep.subr.mxu0 %v194_v4  ;;  %v256_v9 = vld [vmem:[%s5764_s0 + $0x2d8] sm:$0xff]  ;;  %v255_v11 = vld [vmem:[%s5764_s0 + $0x2d0] sm:$0xff] }
   0x5   :  { %520 = vmatprep.subr.mxu1 %v258_v5  ;;  %360 = vmatpush1.msra.mxu0 %v193_v6  ;;  %v190_v12 = vld [vmem:[%s5764_s0 + $0xc8] sm:$0xff]  ;;  %v189_v14 = vld [vmem:[%s5764_s0 + $0xc0] sm:$0xff]  ;;  %v188_v16 = vld [vmem:[%s5764_s0 + $0xb8] sm:$0xff] }
   0x6   :  { %521 = vmatpush1.msra.mxu1 %v257_v7  ;;  %v254_v13 = vld [vmem:[%s5764_s0 + $0x2c8] sm:$0xff]  ;;  %361 = vmatprep.subr.mxu0 %v192_v8  ;;  %v253_v15 = vld [vmem:[%s5764_s0 + $0x2c0] sm:$0xff]  ;;  %v252_v17 = vld [vmem:[%s5764_s0 + $0x2b8] sm:$0xff] }
   0x7   :  { %522 = vmatprep.subr.mxu1 %v256_v9  ;;  %362 = vmatpush1.msra.mxu0 %v191_v10  ;;  %v187_v18 = vld [vmem:[%s5764_s0 + $0xb0] sm:$0xff]  ;;  %v186_v20 = vld [vmem:[%s5764_s0 + $0xa8] sm:$0xff]  ;;  %v185_v22 = vld [vmem:[%s5764_s0 + $0xa0] sm:$0xff] }
   0x8   :  { %523 = vmatpush1.msra.mxu1 %v255_v11  ;;  %363 = vmatprep.subr.mxu0 %v190_v12  ;;  %v251_v19 = vld [vmem:[%s5764_s0 + $0x2b0] sm:$0xff]  ;;  %v250_v21 = vld [vmem:[%s5764_s0 + $0x2a8] sm:$0xff]  ;;  %v249_v23 = vld [vmem:[%s5764_s0 + $0x2a0] sm:$0xff] }
   0x9   :  { %524 = vmatprep.subr.mxu1 %v254_v13  ;;  %364 = vmatpush1.msra.mxu0 %v189_v14  ;;  %v184_v24 = vld [vmem:[%s5764_s0 + $0x98] sm:$0xff]  ;;  %v183_v26 = vld [vmem:[%s5764_s0 + $0x90] sm:$0xff]  ;;  %v182_v28 = vld [vmem:[%s5764_s0 + $0x88] sm:$0xff] }
   0xa   :  { %525 = vmatpush1.msra.mxu1 %v253_v15  ;;  %365 = vmatprep.subr.mxu0 %v188_v16  ;;  %v248_v25 = vld [vmem:[%s5764_s0 + $0x298] sm:$0xff]  ;;  %v247_v27 = vld [vmem:[%s5764_s0 + $0x290] sm:$0xff]  ;;  %v246_v29 = vld [vmem:[%s5764_s0 + $0x288] sm:$0xff] }
   0xb   :  { %526 = vmatprep.subr.mxu1 %v252_v17  ;;  %366 = vmatpush1.msra.mxu0 %v187_v18  ;;  %v181_v30 = vld [vmem:[%s5764_s0 + $0x80] sm:$0xff]  ;;  %v180_v32 = vld [vmem:[%s5764_s0 + $0x78] sm:$0xff]  ;;  %v179_v34 = vld [vmem:[%s5764_s0 + $0x70] sm:$0xff] }
   0xc   :  { %527 = vmatpush1.msra.mxu1 %v251_v19  ;;  %367 = vmatprep.subr.mxu0 %v186_v20  ;;  %v245_v31 = vld [vmem:[%s5764_s0 + $0x280] sm:$0xff]  ;;  %v244_v33 = vld [vmem:[%s5764_s0 + $0x278] sm:$0xff]  ;;  %v243_v35 = vld [vmem:[%s5764_s0 + $0x270] sm:$0xff] }
   0xd   :  { %528 = vmatprep.subr.mxu1 %v250_v21  ;;  %368 = vmatpush1.msra.mxu0 %v185_v22  ;;  %v178_v36 = vld [vmem:[%s5764_s0 + $0x68] sm:$0xff]  ;;  %v177_v38 = vld [vmem:[%s5764_s0 + $0x60] sm:$0xff]  ;;  %v176_v40 = vld [vmem:[%s5764_s0 + $0x58] sm:$0xff] }
   0xe   :  { %529 = vmatpush1.msra.mxu1 %v249_v23  ;;  %369 = vmatprep.subr.mxu0 %v184_v24  ;;  %v242_v37 = vld [vmem:[%s5764_s0 + $0x268] sm:$0xff]  ;;  %v241_v39 = vld [vmem:[%s5764_s0 + $0x260] sm:$0xff]  ;;  %v240_v41 = vld [vmem:[%s5764_s0 + $0x258] sm:$0xff] }
   0xf   :  { %530 = vmatprep.subr.mxu1 %v248_v25  ;;  %370 = vmatpush1.msra.mxu0 %v183_v26  ;;  %v175_v42 = vld [vmem:[%s5764_s0 + $0x50] sm:$0xff]  ;;  %v174_v44 = vld [vmem:[%s5764_s0 + $0x48] sm:$0xff]  ;;  %v173_v46 = vld [vmem:[%s5764_s0 + $0x40] sm:$0xff] }
  0x10   :  { %531 = vmatpush1.msra.mxu1 %v247_v27  ;;  %371 = vmatprep.subr.mxu0 %v182_v28  ;;  %v239_v43 = vld [vmem:[%s5764_s0 + $0x250] sm:$0xff]  ;;  %v238_v45 = vld [vmem:[%s5764_s0 + $0x248] sm:$0xff]  ;;  %v237_v47 = vld [vmem:[%s5764_s0 + $0x240] sm:$0xff] }
  0x11   :  { %532 = vmatprep.subr.mxu1 %v246_v29  ;;  %372 = vmatpush1.msra.mxu0 %v181_v30  ;;  %v172_v48 = vld [vmem:[%s5764_s0 + $0x38] sm:$0xff]  ;;  %v171_v50 = vld [vmem:[%s5764_s0 + $0x30] sm:$0xff]  ;;  %v170_v52 = vld [vmem:[%s5764_s0 + $0x28] sm:$0xff] }
  0x12   :  { %533 = vmatpush1.msra.mxu1 %v245_v31  ;;  %373 = vmatprep.subr.mxu0 %v180_v32  ;;  %v236_v49 = vld [vmem:[%s5764_s0 + $0x238] sm:$0xff]  ;;  %v235_v51 = vld [vmem:[%s5764_s0 + $0x230] sm:$0xff]  ;;  %v234_v53 = vld [vmem:[%s5764_s0 + $0x228] sm:$0xff] }
  0x13   :  { %534 = vmatprep.subr.mxu1 %v244_v33  ;;  %374 = vmatpush1.msra.mxu0 %v179_v34  ;;  %v169_v54 = vld [vmem:[%s5764_s0 + $0x20] sm:$0xff]  ;;  %v168_v56 = vld [vmem:[%s5764_s0 + $0x18] sm:$0xff]  ;;  %v167_v58 = vld [vmem:[%s5764_s0 + $0x10] sm:$0xff] }
  0x14   :  { %535 = vmatpush1.msra.mxu1 %v243_v35  ;;  %375 = vmatprep.subr.mxu0 %v178_v36  ;;  %v233_v55 = vld [vmem:[%s5764_s0 + $0x220] sm:$0xff]  ;;  %v232_v57 = vld [vmem:[%s5764_s0 + $0x218] sm:$0xff]  ;;  %v231_v59 = vld [vmem:[%s5764_s0 + $0x210] sm:$0xff] }
  0x15   :  { %536 = vmatprep.subr.mxu1 %v242_v37  ;;  %376 = vmatpush1.msra.mxu0 %v177_v38  ;;  %v166_v60 = vld [vmem:[%s5764_s0 + $0x8] sm:$0xff]  ;;  %v165_v62 = vld [vmem:[%s5764_s0] sm:$0xff]  ;;  %v228_v0 = vld [vmem:[%s5764_s0 + $0x1f8] sm:$0xff] }
  0x16   :  { %537 = vmatpush1.msra.mxu1 %v241_v39  ;;  %377 = vmatprep.subr.mxu0 %v176_v40  ;;  %v230_v61 = vld [vmem:[%s5764_s0 + $0x208] sm:$0xff]  ;;  %v229_v63 = vld [vmem:[%s5764_s0 + $0x200] sm:$0xff]  ;;  %v292_v1 = vld [vmem:[%s5764_s0 + $0x3f8] sm:$0xff] }
  0x17   :  { %538 = vmatprep.subr.mxu1 %v240_v41  ;;  %378 = vmatpush1.msra.mxu0 %v175_v42  ;;  %v227_v2 = vld [vmem:[%s5764_s0 + $0x1f0] sm:$0xff]  ;;  %v226_v4 = vld [vmem:[%s5764_s0 + $0x1e8] sm:$0xff]  ;;  %v225_v6 = vld [vmem:[%s5764_s0 + $0x1e0] sm:$0xff] }
  0x18   :  { %539 = vmatpush1.msra.mxu1 %v239_v43  ;;  %379 = vmatprep.subr.mxu0 %v174_v44  ;;  %v291_v3 = vld [vmem:[%s5764_s0 + $0x3f0] sm:$0xff]  ;;  %v290_v5 = vld [vmem:[%s5764_s0 + $0x3e8] sm:$0xff]  ;;  %v289_v7 = vld [vmem:[%s5764_s0 + $0x3e0] sm:$0xff] }
  0x19   :  { %540 = vmatprep.subr.mxu1 %v238_v45  ;;  %380 = vmatpush1.msra.mxu0 %v173_v46  ;;  %v224_v8 = vld [vmem:[%s5764_s0 + $0x1d8] sm:$0xff]  ;;  %v223_v10 = vld [vmem:[%s5764_s0 + $0x1d0] sm:$0xff]  ;;  %v222_v12 = vld [vmem:[%s5764_s0 + $0x1c8] sm:$0xff] }
  0x1a   :  { %541 = vmatpush1.msra.mxu1 %v237_v47  ;;  %381 = vmatprep.subr.mxu0 %v172_v48  ;;  %v288_v9 = vld [vmem:[%s5764_s0 + $0x3d8] sm:$0xff]  ;;  %v287_v11 = vld [vmem:[%s5764_s0 + $0x3d0] sm:$0xff]  ;;  %v286_v13 = vld [vmem:[%s5764_s0 + $0x3c8] sm:$0xff] }
  0x1b   :  { %542 = vmatprep.subr.mxu1 %v236_v49  ;;  %382 = vmatpush1.msra.mxu0 %v171_v50  ;;  %v221_v14 = vld [vmem:[%s5764_s0 + $0x1c0] sm:$0xff]  ;;  %v220_v16 = vld [vmem:[%s5764_s0 + $0x1b8] sm:$0xff]  ;;  %v219_v18 = vld [vmem:[%s5764_s0 + $0x1b0] sm:$0xff] }
  0x1c   :  { %543 = vmatpush1.msra.mxu1 %v235_v51  ;;  %383 = vmatprep.subr.mxu0 %v170_v52  ;;  %v285_v15 = vld [vmem:[%s5764_s0 + $0x3c0] sm:$0xff]  ;;  %v284_v17 = vld [vmem:[%s5764_s0 + $0x3b8] sm:$0xff]  ;;  %v283_v19 = vld [vmem:[%s5764_s0 + $0x3b0] sm:$0xff] }
  0x1d   :  { %544 = vmatprep.subr.mxu1 %v234_v53  ;;  %384 = vmatpush1.msra.mxu0 %v169_v54  ;;  %v218_v20 = vld [vmem:[%s5764_s0 + $0x1a8] sm:$0xff]  ;;  %v217_v22 = vld [vmem:[%s5764_s0 + $0x1a0] sm:$0xff]  ;;  %v216_v24 = vld [vmem:[%s5764_s0 + $0x198] sm:$0xff] }
  0x1e   :  { %545 = vmatpush1.msra.mxu1 %v233_v55  ;;  %385 = vmatprep.subr.mxu0 %v168_v56  ;;  %v282_v21 = vld [vmem:[%s5764_s0 + $0x3a8] sm:$0xff]  ;;  %v281_v23 = vld [vmem:[%s5764_s0 + $0x3a0] sm:$0xff]  ;;  %v280_v25 = vld [vmem:[%s5764_s0 + $0x398] sm:$0xff] }
  0x1f   :  { %546 = vmatprep.subr.mxu1 %v232_v57  ;;  %386 = vmatpush1.msra.mxu0 %v167_v58  ;;  %v215_v26 = vld [vmem:[%s5764_s0 + $0x190] sm:$0xff]  ;;  %v214_v28 = vld [vmem:[%s5764_s0 + $0x188] sm:$0xff]  ;;  %v213_v30 = vld [vmem:[%s5764_s0 + $0x180] sm:$0xff] }
  0x20   :  { %547 = vmatpush1.msra.mxu1 %v231_v59  ;;  %387 = vmatprep.subr.mxu0 %v166_v60  ;;  %v279_v27 = vld [vmem:[%s5764_s0 + $0x390] sm:$0xff]  ;;  %v278_v29 = vld [vmem:[%s5764_s0 + $0x388] sm:$0xff]  ;;  %v277_v31 = vld [vmem:[%s5764_s0 + $0x380] sm:$0xff] }
  0x21   :  { %548 = vmatprep.subr.mxu1 %v230_v61  ;;  %388 = vmatpush1.msra.mxu0 %v165_v62  ;;  %v212_v32 = vld [vmem:[%s5764_s0 + $0x178] sm:$0xff]  ;;  %v211_v34 = vld [vmem:[%s5764_s0 + $0x170] sm:$0xff]  ;;  %v210_v36 = vld [vmem:[%s5764_s0 + $0x168] sm:$0xff] }
  0x22   :  { %549 = vmatpush1.msra.mxu1 %v229_v63  ;;  %389 = vmatprep.subr.mxu0 %v228_v0  ;;  %v276_v33 = vld [vmem:[%s5764_s0 + $0x378] sm:$0xff]  ;;  %v275_v35 = vld [vmem:[%s5764_s0 + $0x370] sm:$0xff]  ;;  %v274_v37 = vld [vmem:[%s5764_s0 + $0x368] sm:$0xff] }
  0x23   :  { %550 = vmatprep.subr.mxu1 %v292_v1  ;;  %390 = vmatpush2.msra.mxu0 %v227_v2  ;;  %v209_v38 = vld [vmem:[%s5764_s0 + $0x160] sm:$0xff]  ;;  %v208_v40 = vld [vmem:[%s5764_s0 + $0x158] sm:$0xff]  ;;  %v207_v42 = vld [vmem:[%s5764_s0 + $0x150] sm:$0xff] }
  0x24   :  { %551 = vmatpush2.msra.mxu1 %v291_v3  ;;  %391 = vmatprep.subr.mxu0 %v226_v4  ;;  %v273_v39 = vld [vmem:[%s5764_s0 + $0x360] sm:$0xff]  ;;  %v272_v41 = vld [vmem:[%s5764_s0 + $0x358] sm:$0xff]  ;;  %v271_v43 = vld [vmem:[%s5764_s0 + $0x350] sm:$0xff] }
  0x25   :  { %552 = vmatprep.subr.mxu1 %v290_v5  ;;  %392 = vmatpush2.msra.mxu0 %v225_v6  ;;  %v206_v44 = vld [vmem:[%s5764_s0 + $0x148] sm:$0xff]  ;;  %v205_v46 = vld [vmem:[%s5764_s0 + $0x140] sm:$0xff]  ;;  %v204_v48 = vld [vmem:[%s5764_s0 + $0x138] sm:$0xff] }
  0x26   :  { %553 = vmatpush2.msra.mxu1 %v289_v7  ;;  %393 = vmatprep.subr.mxu0 %v224_v8  ;;  %v270_v45 = vld [vmem:[%s5764_s0 + $0x348] sm:$0xff]  ;;  %v269_v47 = vld [vmem:[%s5764_s0 + $0x340] sm:$0xff]  ;;  %v268_v49 = vld [vmem:[%s5764_s0 + $0x338] sm:$0xff] }
  0x27   :  { %554 = vmatprep.subr.mxu1 %v288_v9  ;;  %394 = vmatpush2.msra.mxu0 %v223_v10  ;;  %v203_v50 = vld [vmem:[%s5764_s0 + $0x130] sm:$0xff]  ;;  %v202_v52 = vld [vmem:[%s5764_s0 + $0x128] sm:$0xff]  ;;  %v201_v54 = vld [vmem:[%s5764_s0 + $0x120] sm:$0xff] }
  0x28   :  { %555 = vmatpush2.msra.mxu1 %v287_v11  ;;  %395 = vmatprep.subr.mxu0 %v222_v12  ;;  %v267_v51 = vld [vmem:[%s5764_s0 + $0x330] sm:$0xff]  ;;  %v266_v53 = vld [vmem:[%s5764_s0 + $0x328] sm:$0xff]  ;;  %v265_v55 = vld [vmem:[%s5764_s0 + $0x320] sm:$0xff] }
  0x29   :  { %556 = vmatprep.subr.mxu1 %v286_v13  ;;  %396 = vmatpush2.msra.mxu0 %v221_v14  ;;  %v21_v56 = vld [vmem:[%s5765_s1] sm:$0xff]  ;;  %v200_v57 = vld [vmem:[%s5764_s0 + $0x118] sm:$0xff]  ;;  %v22_v59 = vld [vmem:[%s5765_s1 + $0x8] sm:$0xff] }
  0x2a   :  { %557 = vmatpush2.msra.mxu1 %v285_v15  ;;  %397 = vmatprep.subr.mxu0 %v220_v16  ;;  %v264_v58 = vld [vmem:[%s5764_s0 + $0x318] sm:$0xff]  ;;  %v199_v60 = vld [vmem:[%s5764_s0 + $0x110] sm:$0xff]  ;;  %v198_v62 = vld [vmem:[%s5764_s0 + $0x108] sm:$0xff]  ;;  %v70_v0 = vunpack.c.h.bf16 %v21_v56  ;;  %v72_v3 = vunpack.c.h.bf16 %v22_v59  ;;  %v69_v5 = vunpack.c.l.bf16 %v21_v56  ;;  %v71_v7 = vunpack.c.l.bf16 %v22_v59 }
  0x2b   :  { %558 = vmatprep.subr.mxu1 %v284_v17  ;;  %398 = vmatpush2.msra.mxu0 %v219_v18  ;;  %v263_v61 = vld [vmem:[%s5764_s0 + $0x310] sm:$0xff]  ;;  %v262_v63 = vld [vmem:[%s5764_s0 + $0x308] sm:$0xff]  ;;  %v24_v1 = vld [vmem:[%s5765_s1 + $0x18] sm:$0xff] }
  0x2c   :  { %559 = vmatpush2.msra.mxu1 %v283_v19  ;;  %399 = vmatprep.subr.mxu0 %v218_v20  ;;  %v197_v2 = vld [vmem:[%s5764_s0 + $0x100] sm:$0xff]  ;;  %v76_v8 = vunpack.c.h.bf16 %v24_v1  ;;  %v324_v9 = vld [vmem:[%s5764_s0 + $0x4f8] sm:$0xff]  ;;  %v323_v11 = vld [vmem:[%s5764_s0 + $0x4f0] sm:$0xff]  ;;  %v75_v17 = vunpack.c.l.bf16 %v24_v1 }
  0x2d   :  { %560 = vmatprep.subr.mxu1 %v282_v21  ;;  %400 = vmatpush2.msra.mxu0 %v217_v22  ;;  %v25_v4 = vld [vmem:[%s5765_s1 + $0x20] sm:$0xff]  ;;  %v27_v12 = vld [vmem:[%s5765_s1 + $0x30] sm:$0xff]  ;;  %v322_v13 = vld [vmem:[%s5764_s0 + $0x4e8] sm:$0xff] }
  0x2e   :  { %561 = vmatpush2.msra.mxu1 %v281_v23  ;;  %401 = vmatprep.subr.mxu0 %v216_v24  ;;  %v261_v6 = vld [vmem:[%s5764_s0 + $0x300] sm:$0xff]  ;;  %v78_v10 = vunpack.c.h.bf16 %v25_v4  ;;  %v77_v14 = vunpack.c.l.bf16 %v25_v4  ;;  %v28_v15 = vld [vmem:[%s5765_s1 + $0x38] sm:$0xff]  ;;  %v82_v19 = vunpack.c.h.bf16 %v27_v12  ;;  %v319_v20 = vld [vmem:[%s5764_s0 + $0x4d0] sm:$0xff] }
  0x2f   :  { %562 = vmatprep.subr.mxu1 %v280_v25  ;;  %402 = vmatpush2.msra.mxu0 %v215_v26  ;;  %v321_v16 = vld [vmem:[%s5764_s0 + $0x4e0] sm:$0xff]  ;;  %v320_v18 = vld [vmem:[%s5764_s0 + $0x4d8] sm:$0xff]  ;;  %v84_v21 = vunpack.c.h.bf16 %v28_v15  ;;  %v30_v22 = vld [vmem:[%s5765_s1 + $0x48] sm:$0xff]  ;;  %v83_v24 = vunpack.c.l.bf16 %v28_v15 }
  0x30   :  { %563 = vmatpush2.msra.mxu1 %v279_v27  ;;  %403 = vmatprep.subr.mxu0 %v214_v28  ;;  %v318_v23 = vld [vmem:[%s5764_s0 + $0x4c8] sm:$0xff]  ;;  %v31_v25 = vld [vmem:[%s5765_s1 + $0x50] sm:$0xff]  ;;  %v317_v26 = vld [vmem:[%s5764_s0 + $0x4c0] sm:$0xff]  ;;  %v81_v27 = vunpack.c.l.bf16 %v27_v12 }
  0x31   :  { %564 = vmatprep.subr.mxu1 %v278_v29  ;;  %404 = vmatpush2.msra.mxu0 %v213_v30  ;;  %v316_v28 = vld [vmem:[%s5764_s0 + $0x4b8] sm:$0xff]  ;;  %v88_v29 = vunpack.c.h.bf16 %v30_v22  ;;  %v315_v30 = vld [vmem:[%s5764_s0 + $0x4b0] sm:$0xff]  ;;  %v305_v56 = vld [vmem:[%s5764_s0 + $0x460] sm:$0xff] }
  0x32   :  { %565 = vmatpush2.msra.mxu1 %v277_v31  ;;  %405 = vmatprep.subr.mxu0 %v212_v32  ;;  %v90_v31 = vunpack.c.h.bf16 %v31_v25  ;;  %v33_v32 = vld [vmem:[%s5765_s1 + $0x60] sm:$0xff]  ;;  %v43_v1 = vld [vmem:[%s5765_s1 + $0xb0] sm:$0xff]  ;;  %v300_v4 = vld [vmem:[%s5764_s0 + $0x438] sm:$0xff] }
  0x33   :  { %566 = vmatprep.subr.mxu1 %v276_v33  ;;  %406 = vmatpush2.msra.mxu0 %v211_v34  ;;  %v314_v33 = vld [vmem:[%s5764_s0 + $0x4a8] sm:$0xff]  ;;  %v89_v34 = vunpack.c.l.bf16 %v31_v25  ;;  %v297_v12 = vld [vmem:[%s5764_s0 + $0x420] sm:$0xff] }
  0x34   :  { %567 = vmatpush2.msra.mxu1 %v275_v35  ;;  %407 = vmatprep.subr.mxu0 %v210_v36  ;;  %v34_v35 = vld [vmem:[%s5765_s1 + $0x68] sm:$0xff]  ;;  %v313_v36 = vld [vmem:[%s5764_s0 + $0x4a0] sm:$0xff] }
  0x35   :  { %568 = vmatprep.subr.mxu1 %v274_v37  ;;  %408 = vmatpush2.msra.mxu0 %v209_v38  ;;  %v87_v37 = vunpack.c.l.bf16 %v30_v22  ;;  %v312_v38 = vld [vmem:[%s5764_s0 + $0x498] sm:$0xff]  ;;  %v293_v22 = vld [vmem:[%s5764_s0 + $0x400] sm:$0xff] }
  0x36   :  { %569 = vmatpush2.msra.mxu1 %v273_v39  ;;  %409 = vmatprep.subr.mxu0 %v208_v40  ;;  %v94_v39 = vunpack.c.h.bf16 %v33_v32  ;;  %v311_v40 = vld [vmem:[%s5764_s0 + $0x490] sm:$0xff] }
  0x37   :  { %570 = vmatprep.subr.mxu1 %v272_v41  ;;  %410 = vmatpush2.msra.mxu0 %v207_v42  ;;  %v96_v41 = vunpack.c.h.bf16 %v34_v35  ;;  %v36_v42 = vld [vmem:[%s5765_s1 + $0x78] sm:$0xff] }
  0x38   :  { %571 = vmatpush2.msra.mxu1 %v271_v43  ;;  %411 = vmatprep.subr.mxu0 %v206_v44  ;;  %v310_v43 = vld [vmem:[%s5764_s0 + $0x488] sm:$0xff]  ;;  %v95_v44 = vunpack.c.l.bf16 %v34_v35 }
  0x39   :  { %572 = vmatprep.subr.mxu1 %v270_v45  ;;  %412 = vmatpush2.msra.mxu0 %v205_v46  ;;  %v37_v45 = vld [vmem:[%s5765_s1 + $0x80] sm:$0xff] }
  0x3a   :  { %573 = vmatpush2.msra.mxu1 %v269_v47  ;;  %413 = vmatprep.subr.mxu0 %v204_v48  ;;  %v309_v46 = vld [vmem:[%s5764_s0 + $0x480] sm:$0xff]  ;;  %v93_v47 = vunpack.c.l.bf16 %v33_v32  ;;  %v308_v48 = vld [vmem:[%s5764_s0 + $0x478] sm:$0xff] }
  0x3b   :  { %574 = vmatprep.subr.mxu1 %v268_v49  ;;  %414 = vmatpush2.msra.mxu0 %v203_v50  ;;  %v100_v49 = vunpack.c.h.bf16 %v36_v42  ;;  %v307_v50 = vld [vmem:[%s5764_s0 + $0x470] sm:$0xff]  ;;  %v353_v32 = vld [vmem:[%s5764_s0 + $0x5e0] sm:$0xff] }
  0x3c   :  { %575 = vmatpush2.msra.mxu1 %v267_v51  ;;  %415 = vmatprep.subr.mxu0 %v202_v52  ;;  %v102_v51 = vunpack.c.h.bf16 %v37_v45  ;;  %v39_v52 = vld [vmem:[%s5765_s1 + $0x90] sm:$0xff] }
  0x3d   :  { %576 = vmatprep.subr.mxu1 %v266_v53  ;;  %416 = vmatpush2.msra.mxu0 %v201_v54  ;;  %v306_v53 = vld [vmem:[%s5764_s0 + $0x468] sm:$0xff]  ;;  %v101_v54 = vunpack.c.l.bf16 %v37_v45  ;;  %v106_v59 = vunpack.c.h.bf16 %v39_v52 }
  0x3e   :  { %577 = vmatpush2.msra.mxu1 %v265_v55  ;;  %417 = vmatprep.subr.mxu0 %v200_v57  ;;  %v40_v55 = vld [vmem:[%s5765_s1 + $0x98] sm:$0xff]  ;;  %v99_v57 = vunpack.c.l.bf16 %v36_v42  ;;  %v349_v42 = vld [vmem:[%s5764_s0 + $0x5c0] sm:$0xff] }
  0x3f   :  { %578 = vmatprep.subr.mxu1 %v264_v58  ;;  %418 = vmatpush2.msra.mxu0 %v199_v60  ;;  %v304_v58 = vld [vmem:[%s5764_s0 + $0x458] sm:$0xff]  ;;  %v303_v60 = vld [vmem:[%s5764_s0 + $0x450] sm:$0xff] }
  0x40   :  { %579 = vmatpush2.msra.mxu1 %v263_v61  ;;  %419 = vmatprep.subr.mxu0 %v198_v62  ;;  %v108_v61 = vunpack.c.h.bf16 %v40_v55  ;;  %v42_v62 = vld [vmem:[%s5765_s1 + $0xa8] sm:$0xff] }
  0x41   :  { %580 = vmatprep.subr.mxu1 %v262_v63  ;;  %420 = vmatpush2.msra.mxu0 %v197_v2  ;;  %v302_v63 = vld [vmem:[%s5764_s0 + $0x448] sm:$0xff]  ;;  %v301_v2 = vld [vmem:[%s5764_s0 + $0x440] sm:$0xff] }
  0x42   :  { %421 = vmatprep.mubr.f32.mxu0 %v70_v0  ;;  %581 = vmatpush2.msra.mxu1 %v261_v6  ;;  %v107_v0 = vunpack.c.l.bf16 %v40_v55  ;;  %v299_v6 = vld [vmem:[%s5764_s0 + $0x430] sm:$0xff] }
  0x43   :  { %582 = vmatprep.mubr.f32.mxu1 %v72_v3  ;;  %422 = vmatmul.mubr.f32.vlgmr.msra.gmra.mxu0 %v69_v5  ;;  %v105_v3 = vunpack.c.l.bf16 %v39_v52  ;;  %v112_v5 = vunpack.c.h.bf16 %v42_v62  ;;  %v345_v52 = vld [vmem:[%s5764_s0 + $0x5a0] sm:$0xff] }
  0x44   :  { %583 = vmatmul.mubr.f32.vlgmr.msra.gmra.mxu1 %v71_v7  ;;  %679 = vmatprep.subr.mxu0 %v324_v9  ;;  %v114_v7 = vunpack.c.h.bf16 %v43_v1  ;;  %v298_v9 = vld [vmem:[%s5764_s0 + $0x428] sm:$0xff] }
  0x45   :  { %427 = vmatprep.mubr.f32.mxu0 %v76_v8  ;;  %680 = vmatpush1.msra.mxu0 %v323_v11  ;;  %v45_v8 = vld [vmem:[%s5765_s1 + $0xc0] sm:$0xff]  ;;  %v46_v11 = vld [vmem:[%s5765_s1 + $0xc8] sm:$0xff] }
  0x46   :  { %588 = vmatprep.mubr.f32.mxu1 %v78_v10  ;;  %681 = vmatprep.subr.mxu0 %v322_v13  ;;  %v113_v10 = vunpack.c.l.bf16 %v43_v1  ;;  %v111_v13 = vunpack.c.l.bf16 %v42_v62  ;;  %v118_v15 = vunpack.c.h.bf16 %v45_v8  ;;  %v341_v62 = vld [vmem:[%s5764_s0 + $0x580] sm:$0xff] }
  0x47   :  { %682 = vmatpush1.msra.mxu0 %v321_v16  ;;  %v295_v16 = vld [vmem:[%s5764_s0 + $0x410] sm:$0xff] }
  0x48   :  { %589 = vmatmul.mubr.f32.gmra.mxu1 %v77_v14  ;;  %428 = vmatmul.mubr.f32.gmra.mxu0 %v75_v17  ;;  %v296_v14 = vld [vmem:[%s5764_s0 + $0x418] sm:$0xff]  ;;  %v120_v17 = vunpack.c.h.bf16 %v46_v11 }
  0x49   :  { %683 = vmatprep.subr.mxu0 %v320_v18  ;;  %433 = vmatprep.mubr.f32.mxu0 %v82_v19  ;;  %v48_v18 = vld [vmem:[%s5765_s1 + $0xd8] sm:$0xff]  ;;  %v294_v19 = vld [vmem:[%s5764_s0 + $0x408] sm:$0xff] }
  0x4a   :  { %684 = vmatpush1.msra.mxu0 %v319_v20  ;;  %594 = vmatprep.mubr.f32.mxu1 %v84_v21  ;;  %v119_v20 = vunpack.c.l.bf16 %v46_v11  ;;  %v49_v21 = vld [vmem:[%s5765_s1 + $0xe0] sm:$0xff]  ;;  %v124_v25 = vunpack.c.h.bf16 %v48_v18 }
  0x4b   :  { %685 = vmatprep.subr.mxu0 %v318_v23  ;;  %v117_v23 = vunpack.c.l.bf16 %v45_v8  ;;  %v337_v8 = vld [vmem:[%s5764_s0 + $0x560] sm:$0xff] }
  0x4c   :  { %686 = vmatpush1.msra.mxu0 %v317_v26  ;;  %595 = vmatmul.mubr.f32.gmra.mxu1 %v83_v24  ;;  %v356_v24 = vld [vmem:[%s5764_s0 + $0x5f8] sm:$0xff]  ;;  %v355_v26 = vld [vmem:[%s5764_s0 + $0x5f0] sm:$0xff] }
  0x4d   :  { %434 = vmatmul.mubr.f32.gmra.mxu0 %v81_v27  ;;  %687 = vmatprep.subr.mxu0 %v316_v28  ;;  %v126_v27 = vunpack.c.h.bf16 %v49_v21  ;;  %v51_v28 = vld [vmem:[%s5765_s1 + $0xf0] sm:$0xff] }
  0x4e   :  { %688 = vmatpush1.msra.mxu0 %v315_v30  ;;  %439 = vmatprep.mubr.f32.mxu0 %v88_v29  ;;  %v354_v29 = vld [vmem:[%s5764_s0 + $0x5e8] sm:$0xff]  ;;  %v125_v30 = vunpack.c.l.bf16 %v49_v21  ;;  %v130_v35 = vunpack.c.h.bf16 %v51_v28 }
  0x4f   :  { %689 = vmatprep.subr.mxu0 %v314_v33  ;;  %600 = vmatprep.mubr.f32.mxu1 %v90_v31  ;;  %v52_v31 = vld [vmem:[%s5765_s1 + $0xf8] sm:$0xff]  ;;  %v123_v33 = vunpack.c.l.bf16 %v48_v18  ;;  %v333_v18 = vld [vmem:[%s5764_s0 + $0x540] sm:$0xff] }
  0x50   :  { %690 = vmatpush1.msra.mxu0 %v313_v36  ;;  %601 = vmatmul.mubr.f32.gmra.mxu1 %v89_v34  ;;  %v352_v34 = vld [vmem:[%s5764_s0 + $0x5d8] sm:$0xff]  ;;  %v351_v36 = vld [vmem:[%s5764_s0 + $0x5d0] sm:$0xff] }
  0x51   :  { %440 = vmatmul.mubr.f32.gmra.mxu0 %v87_v37  ;;  %691 = vmatprep.subr.mxu0 %v312_v38  ;;  %v132_v37 = vunpack.c.h.bf16 %v52_v31  ;;  %v54_v38 = vld [vmem:[%s5765_s1 + $0x108] sm:$0xff] }
  0x52   :  { %692 = vmatpush1.msra.mxu0 %v311_v40  ;;  %445 = vmatprep.mubr.f32.mxu0 %v94_v39  ;;  %v350_v39 = vld [vmem:[%s5764_s0 + $0x5c8] sm:$0xff]  ;;  %v131_v40 = vunpack.c.l.bf16 %v52_v31  ;;  %v136_v45 = vunpack.c.h.bf16 %v54_v38  ;;  %v327_v31 = vld [vmem:[%s5764_s0 + $0x510] sm:$0xff] }
  0x53   :  { %693 = vmatprep.subr.mxu0 %v310_v43  ;;  %606 = vmatprep.mubr.f32.mxu1 %v96_v41  ;;  %v55_v41 = vld [vmem:[%s5765_s1 + $0x110] sm:$0xff]  ;;  %v129_v43 = vunpack.c.l.bf16 %v51_v28 }
  0x54   :  { %694 = vmatpush1.msra.mxu0 %v309_v46  ;;  %607 = vmatmul.mubr.f32.gmra.mxu1 %v95_v44  ;;  %v348_v44 = vld [vmem:[%s5764_s0 + $0x5b8] sm:$0xff]  ;;  %v347_v46 = vld [vmem:[%s5764_s0 + $0x5b0] sm:$0xff] }
  0x55   :  { %446 = vmatmul.mubr.f32.gmra.mxu0 %v93_v47  ;;  %695 = vmatprep.subr.mxu0 %v308_v48  ;;  %v138_v47 = vunpack.c.h.bf16 %v55_v41  ;;  %v57_v48 = vld [vmem:[%s5765_s1 + $0x120] sm:$0xff] }
  0x56   :  { %696 = vmatpush1.msra.mxu0 %v307_v50  ;;  %451 = vmatprep.mubr.f32.mxu0 %v100_v49  ;;  %v346_v49 = vld [vmem:[%s5764_s0 + $0x5a8] sm:$0xff]  ;;  %v137_v50 = vunpack.c.l.bf16 %v55_v41  ;;  %v142_v55 = vunpack.c.h.bf16 %v57_v48 }
  0x57   :  { %697 = vmatprep.subr.mxu0 %v306_v53  ;;  %612 = vmatprep.mubr.f32.mxu1 %v102_v51  ;;  %v58_v51 = vld [vmem:[%s5765_s1 + $0x128] sm:$0xff]  ;;  %v135_v53 = vunpack.c.l.bf16 %v54_v38 }
  0x58   :  { %698 = vmatpush1.msra.mxu0 %v305_v56  ;;  %613 = vmatmul.mubr.f32.gmra.mxu1 %v101_v54  ;;  %v344_v54 = vld [vmem:[%s5764_s0 + $0x598] sm:$0xff]  ;;  %v343_v56 = vld [vmem:[%s5764_s0 + $0x590] sm:$0xff] }
  0x59   :  { %452 = vmatmul.mubr.f32.gmra.mxu0 %v99_v57  ;;  %699 = vmatprep.subr.mxu0 %v304_v58  ;;  %v144_v57 = vunpack.c.h.bf16 %v58_v51  ;;  %v60_v58 = vld [vmem:[%s5765_s1 + $0x138] sm:$0xff] }
  0x5a   :  { %700 = vmatpush1.msra.mxu0 %v303_v60  ;;  %457 = vmatprep.mubr.f32.mxu0 %v106_v59  ;;  %v342_v59 = vld [vmem:[%s5764_s0 + $0x588] sm:$0xff]  ;;  %v143_v60 = vunpack.c.l.bf16 %v58_v51  ;;  %v148_v1 = vunpack.c.h.bf16 %v60_v58 }
  0x5b   :  { %701 = vmatprep.subr.mxu0 %v302_v63  ;;  %618 = vmatprep.mubr.f32.mxu1 %v108_v61  ;;  %v61_v61 = vld [vmem:[%s5765_s1 + $0x140] sm:$0xff]  ;;  %v141_v63 = vunpack.c.l.bf16 %v57_v48 }
  0x5c   :  { %702 = vmatpush1.msra.mxu0 %v301_v2  ;;  %619 = vmatmul.mubr.f32.gmra.mxu1 %v107_v0  ;;  %v340_v0 = vld [vmem:[%s5764_s0 + $0x578] sm:$0xff]  ;;  %v339_v2 = vld [vmem:[%s5764_s0 + $0x570] sm:$0xff] }
  0x5d   :  { %458 = vmatmul.mubr.f32.gmra.mxu0 %v105_v3  ;;  %703 = vmatprep.subr.mxu0 %v300_v4  ;;  %v150_v3 = vunpack.c.h.bf16 %v61_v61  ;;  %v63_v4 = vld [vmem:[%s5765_s1 + $0x150] sm:$0xff] }
  0x5e   :  { %704 = vmatpush1.msra.mxu0 %v299_v6  ;;  %463 = vmatprep.mubr.f32.mxu0 %v112_v5  ;;  %v338_v5 = vld [vmem:[%s5764_s0 + $0x568] sm:$0xff]  ;;  %v149_v6 = vunpack.c.l.bf16 %v61_v61  ;;  %v154_v11 = vunpack.c.h.bf16 %v63_v4  ;;  %v53_v61 = vld [vmem:[%s5765_s1 + $0x100] sm:$0xff] }
  0x5f   :  { %705 = vmatprep.subr.mxu0 %v298_v9  ;;  %624 = vmatprep.mubr.f32.mxu1 %v114_v7  ;;  %v64_v7 = vld [vmem:[%s5765_s1 + $0x158] sm:$0xff]  ;;  %v147_v9 = vunpack.c.l.bf16 %v60_v58  ;;  %v50_v58 = vld [vmem:[%s5765_s1 + $0xe8] sm:$0xff] }
  0x60   :  { %706 = vmatpush1.msra.mxu0 %v297_v12  ;;  %625 = vmatmul.mubr.f32.gmra.mxu1 %v113_v10  ;;  %v336_v10 = vld [vmem:[%s5764_s0 + $0x558] sm:$0xff]  ;;  %v335_v12 = vld [vmem:[%s5764_s0 + $0x550] sm:$0xff] }
  0x61   :  { %464 = vmatmul.mubr.f32.gmra.mxu0 %v111_v13  ;;  %707 = vmatprep.subr.mxu0 %v296_v14  ;;  %v156_v13 = vunpack.c.h.bf16 %v64_v7  ;;  %v66_v14 = vld [vmem:[%s5765_s1 + $0x168] sm:$0xff] }
  0x62   :  { %708 = vmatpush1.msra.mxu0 %v295_v16  ;;  %469 = vmatprep.mubr.f32.mxu0 %v118_v15  ;;  %v334_v15 = vld [vmem:[%s5764_s0 + $0x548] sm:$0xff]  ;;  %v155_v16 = vunpack.c.l.bf16 %v64_v7  ;;  %v160_v21 = vunpack.c.h.bf16 %v66_v14  ;;  %v159_v28 = vunpack.c.l.bf16 %v66_v14 }
  0x63   :  { %709 = vmatprep.subr.mxu0 %v294_v19  ;;  %630 = vmatprep.mubr.f32.mxu1 %v120_v17  ;;  %v67_v17 = vld [vmem:[%s5765_s1 + $0x170] sm:$0xff]  ;;  %v153_v19 = vunpack.c.l.bf16 %v63_v4 }
  0x64   :  { %710 = vmatpush1.msra.mxu0 %v293_v22  ;;  %631 = vmatmul.mubr.f32.gmra.mxu1 %v119_v20  ;;  %v332_v20 = vld [vmem:[%s5764_s0 + $0x538] sm:$0xff]  ;;  %v331_v22 = vld [vmem:[%s5764_s0 + $0x530] sm:$0xff] }
  0x65   :  { %470 = vmatmul.mubr.f32.gmra.mxu0 %v117_v23  ;;  %711 = vmatprep.subr.mxu0 %v356_v24  ;;  %v162_v23 = vunpack.c.h.bf16 %v67_v17  ;;  %v23_v24 = vld [vmem:[%s5765_s1 + $0x10] sm:$0xff] }
  0x66   :  { %712 = vmatpush2.msra.mxu0 %v355_v26  ;;  %475 = vmatprep.mubr.f32.mxu0 %v124_v25  ;;  %v330_v25 = vld [vmem:[%s5764_s0 + $0x528] sm:$0xff]  ;;  %v161_v26 = vunpack.c.l.bf16 %v67_v17 }
  0x67   :  { %713 = vmatprep.subr.mxu0 %v354_v29  ;;  %636 = vmatprep.mubr.f32.mxu1 %v126_v27  ;;  %v329_v27 = vld [vmem:[%s5764_s0 + $0x520] sm:$0xff]  ;;  %v328_v29 = vld [vmem:[%s5764_s0 + $0x518] sm:$0xff] }
  0x68   :  { %714 = vmatpush2.msra.mxu0 %v353_v32  ;;  %637 = vmatmul.mubr.f32.gmra.mxu1 %v125_v30  ;;  %v74_v30 = vunpack.c.h.bf16 %v23_v24  ;;  %v26_v32 = vld [vmem:[%s5765_s1 + $0x28] sm:$0xff] }
  0x69   :  { %476 = vmatmul.mubr.f32.gmra.mxu0 %v123_v33  ;;  %715 = vmatprep.subr.mxu0 %v352_v34  ;;  %v326_v33 = vld [vmem:[%s5764_s0 + $0x508] sm:$0xff]  ;;  %v325_v34 = vld [vmem:[%s5764_s0 + $0x500] sm:$0xff]  ;;  %v79_v38 = vunpack.c.l.bf16 %v26_v32 }
  0x6a   :  { %716 = vmatpush2.msra.mxu0 %v351_v36  ;;  %481 = vmatprep.mubr.f32.mxu0 %v130_v35  ;;  %v73_v35 = vunpack.c.l.bf16 %v23_v24  ;;  %v80_v36 = vunpack.c.h.bf16 %v26_v32 }
  0x6b   :  { %717 = vmatprep.subr.mxu0 %v350_v39  ;;  %642 = vmatprep.mubr.f32.mxu1 %v132_v37  ;;  %v29_v37 = vld [vmem:[%s5765_s1 + $0x40] sm:$0xff] }
  0x6c   :  { %718 = vmatpush2.msra.mxu0 %v349_v42  ;;  %643 = vmatmul.mubr.f32.gmra.mxu1 %v131_v40  ;;  %v86_v39 = vunpack.c.h.bf16 %v29_v37  ;;  %v32_v40 = vld [vmem:[%s5765_s1 + $0x58] sm:$0xff]  ;;  %v85_v41 = vunpack.c.l.bf16 %v29_v37 }
  0x6d   :  { %482 = vmatmul.mubr.f32.gmra.mxu0 %v129_v43  ;;  %719 = vmatprep.subr.mxu0 %v348_v44  ;;  %v92_v42 = vunpack.c.h.bf16 %v32_v40  ;;  %v35_v43 = vld [vmem:[%s5765_s1 + $0x70] sm:$0xff]  ;;  %v91_v44 = vunpack.c.l.bf16 %v32_v40 }
  0x6e   :  { %720 = vmatpush2.msra.mxu0 %v347_v46  ;;  %487 = vmatprep.mubr.f32.mxu0 %v136_v45  ;;  %v98_v45 = vunpack.c.h.bf16 %v35_v43  ;;  %v38_v46 = vld [vmem:[%s5765_s1 + $0x88] sm:$0xff] }
  0x6f   :  { %721 = vmatprep.subr.mxu0 %v346_v49  ;;  %648 = vmatprep.mubr.f32.mxu1 %v138_v47  ;;  %v97_v47 = vunpack.c.l.bf16 %v35_v43  ;;  %v104_v48 = vunpack.c.h.bf16 %v38_v46  ;;  %v41_v49 = vld [vmem:[%s5765_s1 + $0xa0] sm:$0xff] }
  0x70   :  { %722 = vmatpush2.msra.mxu0 %v345_v52  ;;  %649 = vmatmul.mubr.f32.gmra.mxu1 %v137_v50  ;;  %v103_v50 = vunpack.c.l.bf16 %v38_v46  ;;  %v110_v51 = vunpack.c.h.bf16 %v41_v49  ;;  %v44_v52 = vld [vmem:[%s5765_s1 + $0xb8] sm:$0xff] }
  0x71   :  { %488 = vmatmul.mubr.f32.gmra.mxu0 %v135_v53  ;;  %723 = vmatprep.subr.mxu0 %v344_v54  ;;  %v109_v53 = vunpack.c.l.bf16 %v41_v49  ;;  %v116_v54 = vunpack.c.h.bf16 %v44_v52 }
  0x72   :  { %724 = vmatpush2.msra.mxu0 %v343_v56  ;;  %493 = vmatprep.mubr.f32.mxu0 %v142_v55  ;;  %v47_v55 = vld [vmem:[%s5765_s1 + $0xd0] sm:$0xff]  ;;  %v115_v56 = vunpack.c.l.bf16 %v44_v52 }
  0x73   :  { %725 = vmatprep.subr.mxu0 %v342_v59  ;;  %654 = vmatprep.mubr.f32.mxu1 %v144_v57  ;;  %v122_v57 = vunpack.c.h.bf16 %v47_v55  ;;  %v121_v59 = vunpack.c.l.bf16 %v47_v55 }
  0x74   :  { %726 = vmatpush2.msra.mxu0 %v341_v62  ;;  %655 = vmatmul.mubr.f32.gmra.mxu1 %v143_v60  ;;  %v128_v60 = vunpack.c.h.bf16 %v50_v58  ;;  %v127_v62 = vunpack.c.l.bf16 %v50_v58 }
  0x75   :  { %494 = vmatmul.mubr.f32.gmra.mxu0 %v141_v63  ;;  %727 = vmatprep.subr.mxu0 %v340_v0  ;;  %v134_v63 = vunpack.c.h.bf16 %v53_v61  ;;  %v56_v0 = vld [vmem:[%s5765_s1 + $0x118] sm:$0xff] }
  0x76   :  { %728 = vmatpush2.msra.mxu0 %v339_v2  ;;  %499 = vmatprep.mubr.f32.mxu0 %v148_v1  ;;  %v133_v1 = vunpack.c.l.bf16 %v53_v61  ;;  %v140_v2 = vunpack.c.h.bf16 %v56_v0  ;;  %v139_v4 = vunpack.c.l.bf16 %v56_v0 }
  0x77   :  { %729 = vmatprep.subr.mxu0 %v338_v5  ;;  %660 = vmatprep.mubr.f32.mxu1 %v150_v3  ;;  %v59_v3 = vld [vmem:[%s5765_s1 + $0x130] sm:$0xff] }
  0x78   :  { %730 = vmatpush2.msra.mxu0 %v337_v8  ;;  %661 = vmatmul.mubr.f32.gmra.mxu1 %v149_v6  ;;  %v146_v5 = vunpack.c.h.bf16 %v59_v3  ;;  %v62_v6 = vld [vmem:[%s5765_s1 + $0x148] sm:$0xff]  ;;  %v145_v7 = vunpack.c.l.bf16 %v59_v3 }
  0x79   :  { %500 = vmatmul.mubr.f32.gmra.mxu0 %v147_v9  ;;  %731 = vmatprep.subr.mxu0 %v336_v10  ;;  %v152_v8 = vunpack.c.h.bf16 %v62_v6  ;;  %v65_v9 = vld [vmem:[%s5765_s1 + $0x160] sm:$0xff]  ;;  %v151_v10 = vunpack.c.l.bf16 %v62_v6 }
  0x7a   :  { %732 = vmatpush2.msra.mxu0 %v335_v12  ;;  %505 = vmatprep.mubr.f32.mxu0 %v154_v11  ;;  %v158_v11 = vunpack.c.h.bf16 %v65_v9  ;;  %v68_v12 = vld [vmem:[%s5765_s1 + $0x178] sm:$0xff] }
  0x7b   :  { %733 = vmatprep.subr.mxu0 %v334_v15  ;;  %666 = vmatprep.mubr.f32.mxu1 %v156_v13  ;;  %v157_v13 = vunpack.c.l.bf16 %v65_v9  ;;  %v164_v14 = vunpack.c.h.bf16 %v68_v12  ;;  %v163_v15 = vunpack.c.l.bf16 %v68_v12 }
  0x7c   :  { %734 = vmatpush2.msra.mxu0 %v333_v18  ;;  %667 = vmatmul.mubr.f32.gmra.mxu1 %v155_v16 }
  0x7d   :  { %506 = vmatmul.mubr.f32.gmra.mxu0 %v153_v19  ;;  %735 = vmatprep.subr.mxu0 %v332_v20 }
  0x7e   :  { %736 = vmatpush2.msra.mxu0 %v331_v22  ;;  %511 = vmatprep.mubr.f32.mxu0 %v160_v21 }
  0x7f   :  { %737 = vmatprep.subr.mxu0 %v330_v25  ;;  %672 = vmatprep.mubr.f32.mxu1 %v162_v23 }
  0x80   :  { %738 = vmatpush2.msra.mxu0 %v329_v27  ;;  %673 = vmatmul.mubr.f32.gmra.mxu1 %v161_v26 }
  0x81   :  { %512 = vmatmul.mubr.f32.gmra.mxu0 %v159_v28  ;;  %739 = vmatprep.subr.mxu0 %v328_v29 }
  0x82   :  { %740 = vmatpush2.msra.mxu0 %v327_v31  ;;  %743 = vmatprep.mubr.f32.mxu0 %v74_v30 }
  0x83   :  { %741 = vmatprep.subr.mxu0 %v326_v33 }
  0x84   :  { %742 = vmatpush2.msra.mxu0 %v325_v34 }
  0x85   :  { %744 = vmatmul.mubr.f32.vlgmr.msra.gmra.mxu0 %v73_v35 }
  0x86   :  { %749 = vmatprep.mubr.f32.mxu0 %v80_v36 }
  0x89   :  { %750 = vmatmul.mubr.f32.gmra.mxu0 %v79_v38 }
  0x8a   :  { %755 = vmatprep.mubr.f32.mxu0 %v86_v39 }
  0x8d   :  { %756 = vmatmul.mubr.f32.gmra.mxu0 %v85_v41 }
  0x8e   :  { %761 = vmatprep.mubr.f32.mxu0 %v92_v42 }
  0x91   :  { %762 = vmatmul.mubr.f32.gmra.mxu0 %v91_v44 }
  0x92   :  { %767 = vmatprep.mubr.f32.mxu0 %v98_v45 }
  0x95   :  { %768 = vmatmul.mubr.f32.gmra.mxu0 %v97_v47 }
  0x96   :  { %773 = vmatprep.mubr.f32.mxu0 %v104_v48 }
  0x99   :  { %774 = vmatmul.mubr.f32.gmra.mxu0 %v103_v50 }
  0x9a   :  { %779 = vmatprep.mubr.f32.mxu0 %v110_v51 }
  0x9d   :  { %780 = vmatmul.mubr.f32.gmra.mxu0 %v109_v53 }
  0x9e   :  { %785 = vmatprep.mubr.f32.mxu0 %v116_v54 }
  0xa1   :  { %786 = vmatmul.mubr.f32.gmra.mxu0 %v115_v56 }
  0xa2   :  { %791 = vmatprep.mubr.f32.mxu0 %v122_v57 }
  0xa5   :  { %792 = vmatmul.mubr.f32.gmra.mxu0 %v121_v59 }
  0xa6   :  { %797 = vmatprep.mubr.f32.mxu0 %v128_v60 }
  0xa9   :  { %798 = vmatmul.mubr.f32.gmra.mxu0 %v127_v62 }
  0xaa   :  { %803 = vmatprep.mubr.f32.mxu0 %v134_v63 }
  0xad   :  { %804 = vmatmul.mubr.f32.gmra.mxu0 %v133_v1 }
  0xae   :  { %809 = vmatprep.mubr.f32.mxu0 %v140_v2 }
  0xb1   :  { %810 = vmatmul.mubr.f32.gmra.mxu0 %v139_v4 }
  0xb2   :  { %815 = vmatprep.mubr.f32.mxu0 %v146_v5 }
  0xb5   :  { %816 = vmatmul.mubr.f32.gmra.mxu0 %v145_v7 }
  0xb6   :  { %821 = vmatprep.mubr.f32.mxu0 %v152_v8 }
  0xb9   :  { %822 = vmatmul.mubr.f32.gmra.mxu0 %v151_v10 }
  0xba   :  { %827 = vmatprep.mubr.f32.mxu0 %v158_v11 }
  0xbd   :  { %828 = vmatmul.mubr.f32.gmra.mxu0 %v157_v13 }
  0xbe   :  { %833 = vmatprep.mubr.f32.mxu0 %v164_v14 }
  0xc1   :  { %834 = vmatmul.mubr.f32.gmra.mxu0 %v163_v15 }
 0x103   :  { %v423_v16 = vpop.f32.mrf.mxu0 }
 0x104   :  { %v584_v17 = vpop.f32.mrf.mxu1 }
 0x105   :  { %v425_v18 = vpop.f32.mrf.mxu0  ;;  %v585_v1 = vadd.f32 %v584_v17, %v423_v16 }
 0x106   :  { %v586_v19 = vpop.f32.mrf.mxu1 }
 0x107   :  { %v587_v3 = vadd.f32 %v586_v19, %v425_v18 }
 0x108   :  { %v429_v20 = vpop.f32.mrf.mxu0  ;;  %v590_v21 = vpop.f32.mrf.mxu1 }
 0x109   :  { %v591_v7 = vadd.f32 %v590_v21, %v429_v20 }
 0x10a   :  { %v431_v22 = vpop.f32.mrf.mxu0  ;;  %v592_v24 = vpop.f32.mrf.mxu1 }
 0x10b   :  { %v593_v10 = vadd.f32 %v592_v24, %v431_v22 }
 0x10c   :  { %v596_v27 = vpop.f32.mrf.mxu1 }
 0x10d   :  { %v435_v23 = vpop.f32.mrf.mxu0 }
 0x10e   :  { %v598_v30 = vpop.f32.mrf.mxu1  ;;  %v597_v14 = vadd.f32 %v596_v27, %v435_v23 }
 0x10f   :  { %v437_v25 = vpop.f32.mrf.mxu0 }
 0x110   :  { %v602_v33 = vpop.f32.mrf.mxu1  ;;  %v599_v17 = vadd.f32 %v598_v30, %v437_v25 }
 0x111   :  { %v4656_v26 = vpop.f32.mrf.mxu0 }
 0x112   :  { %v604_v36 = vpop.f32.mrf.mxu1  ;;  %v603_v20 = vadd.f32 %v602_v33, %v4656_v26 }
 0x113   :  { %v4658_v28 = vpop.f32.mrf.mxu0 }
 0x114   :  { %v608_v39 = vpop.f32.mrf.mxu1  ;;  %v605_v22 = vadd.f32 %v604_v36, %v4658_v28 }
 0x115   :  { %v4660_v29 = vpop.f32.mrf.mxu0 }
 0x116   :  { %v610_v42 = vpop.f32.mrf.mxu1  ;;  %v609_v23 = vadd.f32 %v608_v39, %v4660_v29 }
 0x117   :  { %v4662_v31 = vpop.f32.mrf.mxu0 }
 0x118   :  { %v614_v45 = vpop.f32.mrf.mxu1  ;;  %v611_v30 = vadd.f32 %v610_v42, %v4662_v31 }
 0x119   :  { %v4664_v32 = vpop.f32.mrf.mxu0 }
 0x11a   :  { %v4686_v48 = vpop.f32.mrf.mxu1  ;;  %v615_v33 = vadd.f32 %v614_v45, %v4664_v32 }
 0x11b   :  { %v4666_v34 = vpop.f32.mrf.mxu0 }
 0x11c   :  { %v4692_v51 = vpop.f32.mrf.mxu1  ;;  %v617_v36 = vadd.f32 %v4686_v48, %v4666_v34 }
 0x11d   :  { %v4668_v35 = vpop.f32.mrf.mxu0 }
 0x11e   :  { %v4698_v54 = vpop.f32.mrf.mxu1 }
 0x11f   :  { %v4670_v37 = vpop.f32.mrf.mxu0 }
 0x120   :  { %v4704_v57 = vpop.f32.mrf.mxu1 }
 0x121   :  { %v4672_v38 = vpop.f32.mrf.mxu0 }
 0x122   :  { %v4710_v60 = vpop.f32.mrf.mxu1  ;;  %v627_v34 = vadd.f32 %v4704_v57, %v4672_v38 }
 0x123   :  { %v4674_v40 = vpop.f32.mrf.mxu0 }
 0x124   :  { %v4716_v63 = vpop.f32.mrf.mxu1 }
 0x125   :  { %v4676_v41 = vpop.f32.mrf.mxu0 }
 0x126   :  { %v4720_v5 = vpop.f32.mrf.mxu1 }
 0x127   :  { %v4678_v43 = vpop.f32.mrf.mxu0 }
 0x128   :  { %v4722_v12 = vpop.f32.mrf.mxu1 }
 0x129   :  { %v4680_v44 = vpop.f32.mrf.mxu0 }
 0x12a   :  { %v640_v19 = vpop.f32.mrf.mxu1 }
 0x12b   :  { %v4682_v46 = vpop.f32.mrf.mxu0 }
 0x12d   :  { %v4684_v47 = vpop.f32.mrf.mxu0 }
 0x12f   :  { %v4688_v49 = vpop.f32.mrf.mxu0 }
 0x131   :  { %v4690_v50 = vpop.f32.mrf.mxu0 }
 0x133   :  { %v4694_v52 = vpop.f32.mrf.mxu0 }
 0x135   :  { %v4696_v53 = vpop.f32.mrf.mxu0 }
 0x137   :  { %v4700_v55 = vpop.f32.mrf.mxu0 }
 0x139   :  { %v4702_v56 = vpop.f32.mrf.mxu0 }
 0x13b   :  { %v4706_v58 = vpop.f32.mrf.mxu0 }
 0x13d   :  { %v4708_v59 = vpop.f32.mrf.mxu0 }
 0x13f   :  { %v4712_v61 = vpop.f32.mrf.mxu0 }
 0x141   :  { %v4714_v62 = vpop.f32.mrf.mxu0 }
 0x143   :  { %v4718_v0 = vpop.f32.mrf.mxu0 }
 0x145   :  { %v745_v2 = vpop.f32.mrf.mxu0 }
 0x146   :  { %v746_v4 = vadd.f32 %v745_v2, %v585_v1 }
 0x147   :  { %v747_v6 = vpop.f32.mrf.mxu0 }
 0x148   :  { %840 = vxpose.xlu0.b32.start [1/16] %v746_v4, 128  ;;  %v748_v8 = vadd.f32 %v747_v6, %v587_v3  ;;  %v644_v3 = vpop.f32.mrf.mxu1 }
 0x149   :  { %v751_v9 = vpop.f32.mrf.mxu0 }
 0x14a   :  { %v752_v11 = vadd.f32 %v751_v9, %v591_v7  ;;  %872 = vxpose.xlu1.b32.start [1/16] (narrow) %v748_v8, 16  ;;  %v646_v7 = vpop.f32.mrf.mxu1 }
 0x14b   :  { %v753_v13 = vpop.f32.mrf.mxu0 }
 0x14c   :  { %v754_v15 = vadd.f32 %v753_v13, %v593_v10  ;;  %841 = vxpose.xlu0.b32.cont [2/16] %v752_v11, 128  ;;  %v650_v29 = vpop.f32.mrf.mxu1  ;;  %v621_v10 = vadd.f32 %v4692_v51, %v4668_v35  ;;  %v623_v11 = vadd.f32 %v4698_v54, %v4670_v37  ;;  %v633_v37 = vadd.f32 %v4716_v63, %v4676_v41 }
 0x14d   :  { %v757_v16 = vpop.f32.mrf.mxu0 }
 0x14e   :  { %v758_v18 = vadd.f32 %v757_v16, %v597_v14  ;;  %873 = vxpose.xlu1.b32.cont [2/16] (narrow) %v754_v15, 16  ;;  %v652_v45 = vpop.f32.mrf.mxu1  ;;  %v629_v15 = vadd.f32 %v4710_v60, %v4674_v40  ;;  %v639_v40 = vadd.f32 %v4722_v12, %v4680_v44  ;;  %v651_v12 = vadd.f32 %v650_v29, %v4690_v50 }
 0x14f   :  { %v759_v1 = vpop.f32.mrf.mxu0 }
 0x150   :  { %v760_v21 = vadd.f32 %v759_v1, %v599_v17  ;;  %842 = vxpose.xlu0.b32.cont [3/16] %v758_v18, 128  ;;  %v656_v51 = vpop.f32.mrf.mxu1  ;;  %v635_v18 = vadd.f32 %v4720_v5, %v4678_v43  ;;  %v647_v5 = vadd.f32 %v646_v7, %v4688_v49 }
 0x151   :  { %v763_v2 = vpop.f32.mrf.mxu0 }
 0x152   :  { %v764_v24 = vadd.f32 %v763_v2, %v603_v20  ;;  %874 = vxpose.xlu1.b32.cont [3/16] (narrow) %v760_v21, 16  ;;  %v658_v57 = vpop.f32.mrf.mxu1  ;;  %v641_v21 = vadd.f32 %v640_v19, %v4682_v46  ;;  %v653_v19 = vadd.f32 %v652_v45, %v4694_v52 }
 0x153   :  { %v765_v4 = vpop.f32.mrf.mxu0  ;;  %v659_v7 = vadd.f32 %v658_v57, %v4700_v55 }
 0x154   :  { %v766_v27 = vadd.f32 %v765_v4, %v605_v22  ;;  %843 = vxpose.xlu0.b32.cont [4/16] %v764_v24, 128  ;;  %v662_v41 = vpop.f32.mrf.mxu1  ;;  %v645_v22 = vadd.f32 %v644_v3, %v4684_v47  ;;  %v657_v3 = vadd.f32 %v656_v51, %v4696_v53 }
 0x155   :  { %v769_v25 = vpop.f32.mrf.mxu0 }
 0x156   :  { %v770_v6 = vadd.f32 %v769_v25, %v609_v23  ;;  %875 = vxpose.xlu1.b32.cont [4/16] (narrow) %v766_v27, 16  ;;  %v664_v23 = vpop.f32.mrf.mxu1 }
 0x157   :  { %v771_v26 = vpop.f32.mrf.mxu0 }
 0x158   :  { %v772_v8 = vadd.f32 %v771_v26, %v611_v30  ;;  %844 = vxpose.xlu0.b32.cont [5/16] %v770_v6, 128  ;;  %v668_v30 = vpop.f32.mrf.mxu1 }
 0x159   :  { %v775_v28 = vpop.f32.mrf.mxu0 }
 0x15a   :  { %v776_v9 = vadd.f32 %v775_v28, %v615_v33  ;;  %876 = vxpose.xlu1.b32.cont [5/16] (narrow) %v772_v8, 16  ;;  %v670_v33 = vpop.f32.mrf.mxu1  ;;  %v663_v8 = vadd.f32 %v662_v41, %v4702_v56 }
 0x15b   :  { %v777_v39 = vpop.f32.mrf.mxu0 }
 0x15c   :  { %v778_v31 = vadd.f32 %v777_v39, %v617_v36  ;;  %845 = vxpose.xlu0.b32.cont [6/16] %v776_v9, 128  ;;  %v665_v36 = vadd.f32 %v664_v23, %v4706_v58  ;;  %v674_v29 = vpop.f32.mrf.mxu1  ;;  %v669_v39 = vadd.f32 %v668_v30, %v4708_v59 }
 0x15d   :  { %v781_v42 = vpop.f32.mrf.mxu0 }
 0x15e   :  { %v782_v32 = vadd.f32 %v781_v42, %v621_v10  ;;  %877 = vxpose.xlu1.b32.cont [6/16] (narrow) %v778_v31, 16  ;;  %v671_v31 = vadd.f32 %v670_v33, %v4712_v61  ;;  %v3180_v61 = vld [vmem:[%s5766_s2 + $0x78] sm:$0xff]  }
 0x15f   :  { %v783_v13 = vpop.f32.mrf.mxu0 }
 0x160   :  { %v784_v48 = vadd.f32 %v783_v13, %v623_v11  ;;  %846 = vxpose.xlu0.b32.cont [7/16] %v782_v32, 128  ;;  %v676_v11 = vpop.f32.mrf.mxu1  ;;  %v675_v32 = vadd.f32 %v674_v29, %v4714_v62  ;;  %v3004_v62 = vunpack.c.l.bf16 %v3180_v61 }
 0x161   :  { %v787_v14 = vpop.f32.mrf.mxu0  ;;  %v677_v13 = vadd.f32 %v676_v11, %v4718_v0  ;;  %v3179_v0 = vld [vmem:[%s5766_s2 + $0x70] sm:$0xff]  }
 0x162   :  { %v788_v35 = vadd.f32 %v787_v14, %v627_v34  ;;  %878 = vxpose.xlu1.b32.cont [7/16] (narrow) %v784_v48, 16  ;;  %v3001_v51 = vunpack.c.h.bf16 %v3179_v0 }
 0x163   :  { %v789_v16 = vpop.f32.mrf.mxu0 }
 0x164   :  { %v790_v54 = vadd.f32 %v789_v16, %v629_v15  ;;  %847 = vxpose.xlu0.b32.cont [8/16] %v788_v35, 128  ;;  %v3005_v15 = vunpack.c.h.bf16 %v3180_v61  ;;  %v3000_v16 = vunpack.c.l.bf16 %v3179_v0 }
 0x165   :  { %v793_v17 = vpop.f32.mrf.mxu0 }
 0x166   :  { %v794_v38 = vadd.f32 %v793_v17, %v633_v37  ;;  %879 = vxpose.xlu1.b32.cont [8/16] (narrow) %v790_v54, 16  ;;  %3459 = vmatprep.subr.mxu1 %v3005_v15  ;;  %v3178_v37 = vld [vmem:[%s5766_s2 + $0x68] sm:$0xff]  }
 0x167   :  { %v795_v1 = vpop.f32.mrf.mxu0  ;;  %3460 = vmatpush3.msra.mxu1 %v3005_v15  ;;  %v2997_v17 = vunpack.c.h.bf16 %v3178_v37 }
 0x168   :  { %v796_v60 = vadd.f32 %v795_v1, %v635_v18  ;;  %848 = vxpose.xlu0.b32.cont [9/16] %v794_v38, 128  ;;  %3461 = vmatprep.subr.mxu1 %v3004_v62  ;;  %v2996_v18 = vunpack.c.l.bf16 %v3178_v37  ;;  %v3177_v38 = vld [vmem:[%s5766_s2 + $0x60] sm:$0xff]  }
 0x169   :  { %v799_v20 = vpop.f32.mrf.mxu0  ;;  %3462 = vmatpush3.msra.mxu1 %v3004_v62  ;;  %v2993_v1 = vunpack.c.h.bf16 %v3177_v38  ;;  %v3181_v62 = vld [vmem:[%s5766_s2 + $0x80] sm:$0xff]  }
 0x16a   :  { %v800_v2 = vadd.f32 %v799_v20, %v639_v40  ;;  %880 = vxpose.xlu1.b32.cont [9/16] (narrow) %v796_v60, 16  ;;  %3463 = vmatprep.subr.mxu1 %v3001_v51  ;;  %v3188_v40 = vld [vmem:[%s5766_s2 + $0xb8] sm:$0xff]   ;;  %v2992_v60 = vunpack.c.l.bf16 %v3177_v38  ;;  %v3008_v37 = vunpack.c.l.bf16 %v3181_v62 }
 0x16b   :  { %v801_v63 = vpop.f32.mrf.mxu0  ;;  %3464 = vmatpush3.msra.mxu1 %v3001_v51  ;;  %v3037_v20 = vunpack.c.h.bf16 %v3188_v40 }
 0x16c   :  { %v802_v24 = vadd.f32 %v801_v63, %v641_v21  ;;  %849 = vxpose.xlu0.b32.cont [10/16] %v800_v2, 128  ;;  %3465 = vmatprep.subr.mxu1 %v3000_v16  ;;  %v3176_v21 = vld [vmem:[%s5766_s2 + $0x58] sm:$0xff]   ;;  %v3036_v63 = vunpack.c.l.bf16 %v3188_v40 }
 0x16d   :  { %v805_v43 = vpop.f32.mrf.mxu0  ;;  %3466 = vmatpush3.msra.mxu1 %v3000_v16  ;;  %v2989_v41 = vunpack.c.h.bf16 %v3176_v21  ;;  %3577 = vmatprep.subr.mxu0 %v3037_v20  ;;  %v3009_v16 = vunpack.c.h.bf16 %v3181_v62 }
 0x16e   :  { %v806_v4 = vadd.f32 %v805_v43, %v645_v22  ;;  %881 = vxpose.xlu1.b32.cont [10/16] (narrow) %v802_v24, 16  ;;  %3467 = vmatprep.subr.mxu1 %v2997_v17  ;;  %v3187_v22 = vld [vmem:[%s5766_s2 + $0xb0] sm:$0xff]   ;;  %v2988_v24 = vunpack.c.l.bf16 %v3176_v21 }
 0x16f   :  { %v807_v44 = vpop.f32.mrf.mxu0  ;;  %3468 = vmatpush3.msra.mxu1 %v2997_v17  ;;  %3578 = vmatpush3.msra.mxu0 %v3037_v20  ;;  %v3033_v43 = vunpack.c.h.bf16 %v3187_v22 }
 0x170   :  { %v808_v27 = vadd.f32 %v807_v44, %v647_v5  ;;  %850 = vxpose.xlu0.b32.cont [11/16] %v806_v4, 128  ;;  %3469 = vmatprep.subr.mxu1 %v2996_v18  ;;  %v3175_v5 = vld [vmem:[%s5766_s2 + $0x50] sm:$0xff]   ;;  %v3032_v44 = vunpack.c.l.bf16 %v3187_v22 }
 0x171   :  { %v811_v46 = vpop.f32.mrf.mxu0  ;;  %3470 = vmatpush3.msra.mxu1 %v2996_v18  ;;  %3579 = vmatprep.subr.mxu0 %v3036_v63  ;;  %v2985_v23 = vunpack.c.h.bf16 %v3175_v5 }
 0x172   :  { %v812_v25 = vadd.f32 %v811_v46, %v651_v12  ;;  %882 = vxpose.xlu1.b32.cont [11/16] (narrow) %v808_v27, 16  ;;  %3471 = vmatprep.subr.mxu1 %v2993_v1  ;;  %v3186_v12 = vld [vmem:[%s5766_s2 + $0xa8] sm:$0xff]   ;;  %v2984_v27 = vunpack.c.l.bf16 %v3175_v5 }
 0x173   :  { %v813_v47 = vpop.f32.mrf.mxu0  ;;  %3472 = vmatpush3.msra.mxu1 %v2993_v1  ;;  %3580 = vmatpush3.msra.mxu0 %v3036_v63  ;;  %v3029_v46 = vunpack.c.h.bf16 %v3186_v12  ;;  %v3028_v30 = vunpack.c.l.bf16 %v3186_v12  ;;  %v3171_v1 = vld [vmem:[%s5766_s2 + $0x30] sm:$0xff]   ;;  %v3170_v63 = vld [vmem:[%s5766_s2 + $0x28] sm:$0xff]  }
 0x174   :  { %v814_v6 = vadd.f32 %v813_v47, %v653_v19  ;;  %851 = vxpose.xlu0.b32.cont [12/16] %v812_v25, 128  ;;  %3473 = vmatprep.subr.mxu1 %v2992_v60  ;;  %v3174_v19 = vld [vmem:[%s5766_s2 + $0x48] sm:$0xff]   ;;  %v2969_v40 = vunpack.c.h.bf16 %v3171_v1  ;;  %v2968_v21 = vunpack.c.l.bf16 %v3171_v1 }
 0x175   :  { %v817_v49 = vpop.f32.mrf.mxu0  ;;  %3474 = vmatpush3.msra.mxu1 %v2992_v60  ;;  %3581 = vmatprep.subr.mxu0 %v3033_v43  ;;  %v2981_v47 = vunpack.c.h.bf16 %v3174_v19 }
 0x176   :  { %v818_v26 = vadd.f32 %v817_v49, %v657_v3  ;;  %883 = vxpose.xlu1.b32.cont [12/16] (narrow) %v814_v6, 16  ;;  %3475 = vmatprep.subr.mxu1 %v2989_v41  ;;  %v3185_v3 = vld [vmem:[%s5766_s2 + $0xa0] sm:$0xff]   ;;  %v3910_v6 = vmov 0.0  }
 0x177   :  { %v819_v50 = vpop.f32.mrf.mxu0  ;;  %3476 = vmatpush3.msra.mxu1 %v2989_v41  ;;  %3582 = vmatpush3.msra.mxu0 %v3033_v43  ;;  %1054 = vst [vmem:[#allocation2 + $0x8] sm:$0xff] %v3910_v6  ;;  %1055 = vst [vmem:[#allocation2 + $0x10] sm:$0xff] %v3910_v6  ;;  %v3025_v49 = vunpack.c.h.bf16 %v3185_v3 }
 0x178   :  { %v820_v28 = vadd.f32 %v819_v50, %v659_v7  ;;  %852 = vxpose.xlu0.b32.cont [13/16] %v818_v26, 128  ;;  %3477 = vmatprep.subr.mxu1 %v2988_v24  ;;  %1056 = vst [vmem:[#allocation2 + $0x18] sm:$0xff] %v3910_v6  ;;  %1057 = vst [vmem:[#allocation2 + $0x20] sm:$0xf] %v3910_v6  ;;  %v2980_v7 = vunpack.c.l.bf16 %v3174_v19  ;;  %v3173_v26 = vld [vmem:[%s5766_s2 + $0x40] sm:$0xff]   ;;  %v3024_v50 = vunpack.c.l.bf16 %v3185_v3 }
 0x179   :  { %v823_v52 = vpop.f32.mrf.mxu0  ;;  %3478 = vmatpush3.msra.mxu1 %v2988_v24  ;;  %3583 = vmatprep.subr.mxu0 %v3032_v44  ;;  %1058 = vst [vmem:[#allocation2 + $0xb4] sm:$0xff] %v3910_v6  ;;  %1059 = vst [vmem:[#allocation2 + $0xbc] sm:$0xff] %v3910_v6  ;;  %v2965_v24 = vunpack.c.h.bf16 %v3170_v63 }
 0x17a   :  { %v824_v9 = vadd.f32 %v823_v52, %v663_v8  ;;  %884 = vxpose.xlu1.b32.cont [13/16] (narrow) %v820_v28, 16  ;;  %3479 = vmatprep.subr.mxu1 %v2985_v23  ;;  %1060 = vst [vmem:[#allocation2 + $0xc4] sm:$0xff] %v3910_v6  ;;  %1061 = vst [vmem:[#allocation2 + $0xcc] sm:$0xff] %v3910_v6  ;;  %v2977_v8 = vunpack.c.h.bf16 %v3173_v26  ;;  %v3184_v28 = vld [vmem:[%s5766_s2 + $0x98] sm:$0xff]  }
 0x17b   :  { %v825_v53 = vpop.f32.mrf.mxu0  ;;  %3480 = vmatpush3.msra.mxu1 %v2985_v23  ;;  %3584 = vmatpush3.msra.mxu0 %v3032_v44  ;;  %1062 = vst [vmem:[#allocation2 + $0xd4] sm:$0xf] %v3910_v6  ;;  %v3021_v52 = vunpack.c.h.bf16 %v3184_v28  ;;  %v3020_v29 = vunpack.c.l.bf16 %v3184_v28  ;;  %v2964_v23 = vunpack.c.l.bf16 %v3170_v63  ;;  %v4868_v44 = vld [vmem:[%s5766_s2 + $0x138] sm:$0xff]  }
 0x17c   :  { %v826_v10 = vadd.f32 %v825_v53, %v665_v36  ;;  %853 = vxpose.xlu0.b32.cont [14/16] %v824_v9, 128  ;;  %3481 = vmatprep.subr.mxu1 %v2984_v27  ;;  %v2976_v36 = vunpack.c.l.bf16 %v3173_v26  ;;  %v3168_v26 = vld [vmem:[%s5766_s2 + $0x18] sm:$0xff]  }
 0x17d   :  { %v829_v55 = vpop.f32.mrf.mxu0  ;;  %3585 = vmatprep.subr.mxu0 %v3029_v46  ;;  %3482 = vmatpush3.msra.mxu1 %v2984_v27  ;;  %v3101_v27 = vunpack.c.h.bf16 %v4868_v44 }
 0x17e   :  { %v830_v42 = vadd.f32 %v829_v55, %v669_v39  ;;  %885 = vxpose.xlu1.b32.cont [14/16] (narrow) %v826_v10, 16  ;;  %3586 = vmatpush3.msra.mxu0 %v3029_v46  ;;  %v1131_v53 = vld [vmem:[#allocation2 + $0xc] sm:$0xff]  ;;  %v3169_v46 = vld [vmem:[%s5766_s2 + $0x20] sm:$0xff]  }
 0x17f   :  { %v831_v56 = vpop.f32.mrf.mxu0  ;;  %3587 = vmatprep.subr.mxu0 %v3028_v30  ;;  %3483 = vmatprep.subr.mxu1 %v2981_v47  ;;  %v3183_v10 = vld [vmem:[%s5766_s2 + $0x90] sm:$0xff]  }
 0x180   :  { %v832_v45 = vadd.f32 %v831_v56, %v671_v31  ;;  %854 = vxpose.xlu0.b32.cont [15/16] %v830_v42, 128  ;;  %3588 = vmatpush3.msra.mxu0 %v3028_v30  ;;  %v1132_v55 = vld [vmem:[#allocation2 + $0x14] sm:$0xff]  ;;  %v3017_v31 = vunpack.c.h.bf16 %v3183_v10  ;;  %v3016_v56 = vunpack.c.l.bf16 %v3183_v10 }
 0x181   :  { %v835_v58 = vpop.f32.mrf.mxu0  ;;  %3484 = vmatpush3.msra.mxu1 %v2981_v47  ;;  %3589 = vmatprep.subr.mxu0 %v3025_v49  ;;  %v2961_v47 = vunpack.c.h.bf16 %v3169_v46 }
 0x182   :  { %v836_v34 = vadd.f32 %v835_v58, %v675_v32  ;;  %886 = vxpose.xlu1.b32.cont [15/16] (narrow) %v832_v45, 16  ;;  %3485 = vmatprep.subr.mxu1 %v2980_v7  ;;  %v3182_v45 = vld [vmem:[%s5766_s2 + $0x88] sm:$0xff]   ;;  %v3172_v58 = vld [vmem:[%s5766_s2 + $0x38] sm:$0xff]  }
 0x183   :  { %v837_v48 = vpop.f32.mrf.mxu0  ;;  %3590 = vmatpush3.msra.mxu0 %v3025_v49  ;;  %3486 = vmatpush3.msra.mxu1 %v2980_v7  ;;  %v3012_v15 = vunpack.c.l.bf16 %v3182_v45  ;;  %v2972_v0 = vunpack.c.l.bf16 %v3172_v58  ;;  %v2960_v49 = vunpack.c.l.bf16 %v3169_v46 }
 0x184   :  { %v838_v59 = vadd.f32 %v837_v48, %v677_v13  ;;  %855 = vxpose.xlu0.b32.end [16/16] %v836_v34, 128  ;;  %3591 = vmatprep.subr.mxu0 %v3024_v50  ;;  %v3013_v13 = vunpack.c.h.bf16 %v3182_v45  ;;  %v2973_v34 = vunpack.c.h.bf16 %v3172_v58  ;;  %v1133_v48 = vld [vmem:[#allocation2 + $0x1c] sm:$0xff] }
 0x185   :  { %3487 = vmatprep.subr.mxu1 %v2977_v8  ;;  %3592 = vmatpush3.msra.mxu0 %v3024_v50 }
 0x186   :  { %887 = vxpose.xlu1.b32.end [16/16] (narrow) %v838_v59, 16  ;;  %3488 = vmatpush3.msra.mxu1 %v2977_v8  ;;  %v2957_v8 = vunpack.c.h.bf16 %v3168_v26 }
 0x187   :  { %3593 = vmatprep.subr.mxu0 %v3021_v52  ;;  %3489 = vmatprep.subr.mxu1 %v2976_v36 }
 0x188   :  { %3594 = vmatpush3.msra.mxu0 %v3021_v52  ;;  %3490 = vmatpush3.msra.mxu1 %v2976_v36  ;;  %v2956_v36 = vunpack.c.l.bf16 %v3168_v26 }
 0x189   :  { %3595 = vmatprep.subr.mxu0 %v3020_v29  ;;  %3491 = vmatprep.mubr.f32.mxu1 %v1131_v53  ;;  %v3167_v53 = vld [vmem:[%s5766_s2 + $0x10] sm:$0xff]  }
 0x18a   :  { %3596 = vmatpush3.msra.mxu0 %v3020_v29  ;;  %3492 = vmatmul.mubr.f32.vlgmr.msra.gmra.mxu1 %v1132_v55  ;;  %v2952_v55 = vunpack.c.l.bf16 %v3167_v53 }
 0x18b   :  { %3597 = vmatprep.subr.mxu0 %v3017_v31  ;;  %3609 = vmatprep.mubr.f32.mxu0 %v3910_v6 }
 0x18c   :  { %3598 = vmatpush3.msra.mxu0 %v3017_v31  ;;  %3494 = vmatprep.mubr.f32.mxu1 %v1133_v48 }
 0x18d   :  { %3599 = vmatprep.subr.mxu0 %v3016_v56  ;;  %3518 = vmatprep.subr.mxu1 %v2973_v34 }
 0x18e   :  { %3600 = vmatpush3.msra.mxu0 %v3016_v56  ;;  %3519 = vmatpush3.msra.mxu1 %v2973_v34 }
 0x18f   :  { %3601 = vmatprep.subr.mxu0 %v3013_v13  ;;  %3520 = vmatprep.subr.mxu1 %v2972_v0 }
 0x190   :  { %3602 = vmatpush3.msra.mxu0 %v3013_v13  ;;  %3521 = vmatpush3.msra.mxu1 %v2972_v0  ;;  %v2943_v13 = vld [vmem:[%s5766_s2] sm:$0xff]  }
 0x191   :  { %3603 = vmatprep.subr.mxu0 %v3012_v15  ;;  %3522 = vmatprep.subr.mxu1 %v2969_v40  ;;  %v2945_v34 = vunpack.c.h.bf16 %v2943_v13 }
 0x192   :  { %3604 = vmatpush3.msra.mxu0 %v3012_v15  ;;  %3523 = vmatpush3.msra.mxu1 %v2969_v40 }
 0x193   :  { %3605 = vmatprep.subr.mxu0 %v3009_v16  ;;  %3524 = vmatprep.subr.mxu1 %v2968_v21 }
 0x194   :  { %3606 = vmatpush3.msra.mxu0 %v3009_v16  ;;  %3525 = vmatpush3.msra.mxu1 %v2968_v21 }
 0x195   :  { %3607 = vmatprep.subr.mxu0 %v3008_v37  ;;  %3526 = vmatprep.subr.mxu1 %v2965_v24 }
 0x196   :  { %3608 = vmatpush3.msra.mxu0 %v3008_v37  ;;  %3527 = vmatpush3.msra.mxu1 %v2965_v24 }
 0x197   :  { %3528 = vmatprep.subr.mxu1 %v2964_v23  ;;  %3695 = vmatprep.subr.mxu0 %v3101_v27 }
 0x198   :  { %3529 = vmatpush3.msra.mxu1 %v2964_v23 }
 0x199   :  { %3530 = vmatprep.subr.mxu1 %v2961_v47 }
 0x19a   :  { %3531 = vmatpush3.msra.mxu1 %v2961_v47 }
 0x19b   :  { %3532 = vmatprep.subr.mxu1 %v2960_v49 }
 0x19c   :  { %3533 = vmatpush3.msra.mxu1 %v2960_v49 }
 0x19d   :  { %3534 = vmatprep.subr.mxu1 %v2957_v8 }
 0x19e   :  { %3535 = vmatpush3.msra.mxu1 %v2957_v8 }
 0x19f   :  { %3536 = vmatprep.subr.mxu1 %v2956_v36 }
 0x1a0   :  { %3537 = vmatpush3.msra.mxu1 %v2956_v36 }
 0x1c4   :  { %v4761_v14 = vpop.trf.xlu0 }
 0x1c6   :  { %v4877_v30 = vpop.trf.xlu1 }
 0x1c8   :  { %v4766_v35 = vpop.trf.xlu0 }
 0x1c9   :  { %v904_v39 = vadd.f32 %v4766_v35, %v4761_v14 }
 0x1ca   :  { %v4889_v52 = vpop.trf.xlu1 }
 0x1cc   :  { %v4771_v54 = vpop.trf.xlu0 }
 0x1cd   :  { %v905_v42 = vadd.f32 %v904_v39, %v4771_v54  ;;  %v2953_v39 = vunpack.c.h.bf16 %v3167_v53 }
 0x1cf   :  { %3538 = vmatprep.subr.mxu1 %v2953_v39 }
 0x1d0   :  { %v4776_v57 = vpop.trf.xlu0  ;;  %3539 = vmatpush3.msra.mxu1 %v2953_v39 }
 0x1d1   :  { %v906_v32 = vadd.f32 %v905_v42, %v4776_v57  ;;  %v3166_v42 = vld [vmem:[%s5766_s2 + $0x8] sm:$0xff]   ;;  %3540 = vmatprep.subr.mxu1 %v2952_v55 }
 0x1d2   :  { %v2949_v56 = vunpack.c.h.bf16 %v3166_v42  ;;  %3541 = vmatpush3.msra.mxu1 %v2952_v55  ;;  %v2948_v45 = vunpack.c.l.bf16 %v3166_v42 }
 0x1d4   :  { %v4784_v2 = vpop.trf.xlu0  ;;  %3542 = vmatprep.subr.mxu1 %v2949_v56 }
 0x1d5   :  { %v907_v59 = vadd.f32 %v906_v32, %v4784_v2  ;;  %3543 = vmatpush3.msra.mxu1 %v2949_v56 }
 0x1d6   :  { %3544 = vmatprep.subr.mxu1 %v2948_v45 }
 0x1d7   :  { %3545 = vmatpush3.msra.mxu1 %v2948_v45 }
 0x1d8   :  { %v4792_v4 = vpop.trf.xlu0  ;;  %3546 = vmatprep.subr.mxu1 %v2945_v34 }
 0x1d9   :  { %v908_v51 = vadd.f32 %v907_v59, %v4792_v4  ;;  %v2944_v59 = vunpack.c.l.bf16 %v2943_v13  ;;  %3547 = vmatpush3.msra.mxu1 %v2945_v34 }
 0x1db   :  { %3548 = vmatprep.subr.mxu1 %v2944_v59 }
 0x1dc   :  { %v4800_v25 = vpop.trf.xlu0  ;;  %3549 = vmatpush3.msra.mxu1 %v2944_v59 }
 0x1dd   :  { %v909_v17 = vadd.f32 %v908_v51, %v4800_v25  ;;  %v4905_v51 = vld [vmem:[%s5766_s2 + $0xf8] sm:$0xff]  }
 0x1de   :  { %v3069_v16 = vunpack.c.h.bf16 %v4905_v51 }
 0x1e0   :  { %v4817_v33 = vpop.trf.xlu0  ;;  %3636 = vmatprep.subr.mxu1 %v3069_v16 }
 0x1e1   :  { %v910_v38 = vadd.f32 %v909_v17, %v4817_v33 }
 0x1e4   :  { %v4822_v9 = vpop.trf.xlu0 }
 0x1e5   :  { %v911_v60 = vadd.f32 %v910_v38, %v4822_v9 }
 0x1e8   :  { %v4830_v11 = vpop.trf.xlu0 }
 0x1e9   :  { %v912_v41 = vadd.f32 %v911_v60, %v4830_v11 }
 0x1ec   :  { %v4841_v61 = vpop.trf.xlu0 }
 0x1ed   :  { %v913_v22 = vadd.f32 %v912_v41, %v4841_v61 }
 0x1f0   :  { %v4848_v18 = vpop.trf.xlu0 }
 0x1f1   :  { %v914_v5 = vadd.f32 %v913_v22, %v4848_v18 }
 0x1f4   :  { %v4855_v20 = vpop.trf.xlu0 }
 0x1f5   :  { %v915_v12 = vadd.f32 %v914_v5, %v4855_v20 }
 0x1f8   :  { %v4862_v43 = vpop.trf.xlu0 }
 0x1f9   :  { %v916_v3 = vadd.f32 %v915_v12, %v4862_v43 }
 0x1fc   :  { %v4875_v19 = vpop.trf.xlu0 }
 0x1fd   :  { %v917_v7 = vadd.f32 %v916_v3, %v4875_v19 }
 0x200   :  { %v4886_v50 = vpop.trf.xlu0 }
 0x201   :  { %v918_v28 = vadd.f32 %v917_v7, %v4886_v50 }
 0x203   :  { %v919_v29 = vadd.f32 %v918_v28, %v4877_v30 }
 0x205   :  { %v920_v10 = vadd.f32 %v919_v29, %v4889_v52 }
 0x207   :  { %v921_v31 = vrot.slane %v920_v10, 4 }
 0x209   :  { %v922_v32 = vadd.f32 %v921_v31, %v920_v10 }
 0x20b   :  { %v923_v58 = vrot.slane %v922_v32, 2 }
 0x20d   :  { %v924_v48 = vadd.f32 %v923_v58, %v922_v32 }
 0x20f   :  { %v925_v15 = vrot.slane %v924_v48, 1 }
 0x211   :  { %v926_v62 = vadd.f32 %v925_v15, %v924_v48 }
 0x213   :  { %v927_v0 = vmul.f32 0.0069444445, %v926_v62 }
 0x215   :  { %v4909_v37 = vsub.f32 %v4761_v14, %v927_v0  ;;  %v4912_v17 = vsub.f32 %v4766_v35, %v927_v0  ;;  %v4917_v38 = vsub.f32 %v4771_v54, %v927_v0  ;;  %v4924_v60 = vsub.f32 %v4776_v57, %v927_v0 }
 0x216   :  { %v4927_v14 = vsub.f32 %v4784_v2, %v927_v0  ;;  %v933_v41 = vsub.f32 %v4792_v4, %v927_v0  ;;  %v934_v22 = vsub.f32 %v4800_v25, %v927_v0  ;;  %v935_v5 = vsub.f32 %v4817_v33, %v927_v0 }
 0x217   :  { %v946_v1 = vmul.f32 %v4909_v37, %v4909_v37  ;;  %v947_v40 = vmul.f32 %v4912_v17, %v4912_v17  ;;  %v948_v35 = vmul.f32 %v4917_v38, %v4917_v38  ;;  %v949_v54 = vmul.f32 %v4924_v60, %v4924_v60 }
 0x218   :  { %v950_v24 = vmul.f32 %v4927_v14, %v4927_v14  ;;  %v951_v2 = vmul.f32 %v933_v41, %v933_v41  ;;  %v936_v12 = vsub.f32 %v4822_v9, %v927_v0  ;;  %v952_v46 = vmul.f32 %v934_v22, %v934_v22 }
 0x219   :  { %v964_v21 = vadd.f32 %v947_v40, %v946_v1  ;;  %v937_v4 = vsub.f32 %v4830_v11, %v927_v0  ;;  %v953_v3 = vmul.f32 %v935_v5, %v935_v5  ;;  %v938_v7 = vsub.f32 %v4841_v61, %v927_v0 }
 0x21a   :  { %v954_v26 = vmul.f32 %v936_v12, %v936_v12  ;;  %v939_v8 = vsub.f32 %v4848_v18, %v927_v0  ;;  %v940_v33 = vsub.f32 %v4855_v20, %v927_v0  ;;  %v941_v9 = vsub.f32 %v4862_v43, %v927_v0 }
 0x21b   :  { %v965_v63 = vadd.f32 %v964_v21, %v948_v35  ;;  %v955_v28 = vmul.f32 %v937_v4, %v937_v4  ;;  %v956_v29 = vmul.f32 %v938_v7, %v938_v7  ;;  %v942_v11 = vsub.f32 %v4875_v19, %v927_v0 }
 0x21c   :  { %v957_v39 = vmul.f32 %v939_v8, %v939_v8  ;;  %v958_v55 = vmul.f32 %v940_v33, %v940_v33  ;;  %v943_v61 = vsub.f32 %v4886_v50, %v927_v0  ;;  %v959_v42 = vmul.f32 %v941_v9, %v941_v9 }
 0x21d   :  { %v966_v57 = vadd.f32 %v965_v63, %v949_v54  ;;  %v944_v18 = vsub.f32 %v4877_v30, %v927_v0  ;;  %v960_v32 = vmul.f32 %v942_v11, %v942_v11  ;;  %v945_v20 = vsub.f32 %v4889_v52, %v927_v0  ;;  %v17_v52 = vld [vmem:[%s5767_s3] sm:$0x1] }
 0x21e   :  { %v961_v58 = vmul.f32 %v943_v61, %v943_v61  ;;  %v991_v30 = vlaneseq }
 0x21f   :  { %v967_v23 = vadd.f32 %v966_v57, %v950_v24  ;;  %v962_v34 = vmul.f32 %v944_v18, %v944_v18  ;;  %v963_v48 = vmul.f32 %v945_v20, %v945_v20 }
 0x220   :  { %v4948_v63 = vshrl.u32 %v991_v30, 7 }
 0x221   :  { %v968_v47 = vadd.f32 %v967_v23, %v951_v2  ;;  %v2844_v23 = vld [vmem:[%s5767_s3 + $0x1] ss:$0 sm:$0xff] }
 0x222   :  { %5771 = vst [vmem:[#allocation3_spill] sm:$0xff] %v4948_v63  ;;  %v5769_v0 = vsub.s32 0, %v4948_v63 }
 0x223   :  { %v969_v49 = vadd.f32 %v968_v47, %v952_v46 }
 0x225   :  { %v970_v25 = vadd.f32 %v969_v49, %v953_v3 }
 0x227   :  { %v971_v36 = vadd.f32 %v970_v25, %v954_v26 }
 0x229   :  { %v972_v53 = vadd.f32 %v971_v36, %v955_v28 }
 0x22b   :  { %v973_v10 = vadd.f32 %v972_v53, %v956_v29 }
 0x22d   :  { %v974_v31 = vadd.f32 %v973_v10, %v957_v39 }
 0x22f   :  { %v975_v56 = vadd.f32 %v974_v31, %v958_v55 }
 0x231   :  { %v976_v45 = vadd.f32 %v975_v56, %v959_v42 }
 0x233   :  { %v977_v13 = vadd.f32 %v976_v45, %v960_v32 }
 0x235   :  { %v978_v43 = vadd.f32 %v977_v13, %v961_v58 }
 0x237   :  { %v979_v59 = vadd.f32 %v978_v43, %v962_v34 }
 0x239   :  { %v980_v15 = vadd.f32 %v979_v59, %v963_v48 }
 0x23b   :  { %v981_v19 = vrot.slane %v980_v15, 4 }
 0x23d   :  { %v982_v62 = vadd.f32 %v981_v19, %v980_v15 }
 0x23f   :  { %v983_v1 = vrot.slane %v982_v62, 2 }
 0x241   :  { %v984_v40 = vadd.f32 %v983_v1, %v982_v62 }
 0x243   :  { %v985_v50 = vrot.slane %v984_v40, 1 }
 0x245   :  { %v986_v35 = vadd.f32 %v985_v50, %v984_v40 }
 0x247   :  { %v987_v21 = vmul.f32 0.0069444445, %v986_v35 }
 0x249   :  { %v988_v54 = vadd.f32 0.001, %v987_v21 }
 0x24b   :  { %3905 = vrsqrt.f32 %v988_v54 }
 0x258   :  { %v3906_v24 = vpop.eup %3905 }
 0x259   :  { %v990_v57 = vmul.f32 %v3906_v24, %v17_v52 }
 0x25b   :  { %v994_v2 = vrot.slane %v990_v57, %v5769_v0  ;;  %v3203_v57 = vld [vmem:[%s5766_s2 + $0x130] sm:$0xff]  }
 0x25d   :  { %v1000_v46 = vmul.f32 %v994_v2, %v933_v41  ;;  %v1001_v47 = vmul.f32 %v994_v2, %v934_v22  ;;  %v1002_v3 = vmul.f32 %v994_v2, %v935_v5  ;;  %v1003_v49 = vmul.f32 %v994_v2, %v936_v12 }
 0x25e   :  { %v1004_v26 = vmul.f32 %v994_v2, %v937_v4  ;;  %v1005_v25 = vmul.f32 %v994_v2, %v938_v7  ;;  %v1006_v28 = vmul.f32 %v994_v2, %v939_v8  ;;  %v1007_v36 = vmul.f32 %v994_v2, %v940_v33 }
 0x25f   :  { %v1008_v29 = vmul.f32 %v994_v2, %v941_v9  ;;  %v1009_v53 = vmul.f32 %v994_v2, %v942_v11  ;;  %v1010_v39 = vmul.f32 %v994_v2, %v943_v61  ;;  %v1011_v10 = vmul.f32 %v994_v2, %v944_v18 }
 0x260   :  { %v1012_v55 = vmul.f32 %v994_v2, %v945_v20  ;;  %v1024_v31 = vadd.f32 %v2844_v23, %v1002_v3  ;;  %v4959_v42 = vadd.f32 %v2844_v23, %v1003_v49  ;;  %v4961_v56 = vadd.f32 %v2844_v23, %v1004_v26  ;;  %v3202_v3 = vld [vmem:[%s5766_s2 + $0x128] sm:$0xff]  }
 0x261   :  { %v4963_v32 = vadd.f32 %v2844_v23, %v1005_v25  ;;  %v4965_v41 = vadd.f32 %v2844_v23, %v1006_v28  ;;  %v4967_v22 = vadd.f32 %v2844_v23, %v1007_v36  ;;  %v4969_v5 = vadd.f32 %v2844_v23, %v1008_v29 }
 0x262   :  { %v4971_v12 = vadd.f32 %v2844_v23, %v1009_v53  ;;  %v1032_v4 = vadd.f32 %v2844_v23, %v1010_v39  ;;  %v1033_v7 = vadd.f32 %v2844_v23, %v1011_v10  ;;  %v1034_v8 = vadd.f32 %v2844_v23, %v1012_v55  ;;  %v3200_v39 = vld [vmem:[%s5766_s2 + $0x118] sm:$0xff]  }
 0x263   :  { %v1043_v33 = vmax.f32 %v4959_v42, 0.0  ;;  %v1044_v9 = vmax.f32 %v4961_v56, 0.0  ;;  %v1045_v11 = vmax.f32 %v4963_v32, 0.0  ;;  %v1046_v61 = vmax.f32 %v4965_v41, 0.0  ;;  %v3199_v42 = vld [vmem:[%s5766_s2 + $0x110] sm:$0xff]   ;;  %v3198_v32 = vld [vmem:[%s5766_s2 + $0x108] sm:$0xff]  }
 0x264   :  { %v1047_v18 = vmax.f32 %v4967_v22, 0.0  ;;  %v1048_v45 = vmax.f32 %v4969_v5, 0.0  ;;  %v1049_v20 = vmax.f32 %v4971_v12, 0.0  ;;  %v1050_v58 = vmax.f32 %v1032_v4, 0.0  ;;  %v3197_v22 = vld [vmem:[%s5766_s2 + $0x100] sm:$0xff]  }
 0x265   :  { %v1051_v13 = vmax.f32 %v1033_v7, 0.0  ;;  %v1052_v34 = vmax.f32 %v1034_v8, 0.0  ;;  %1071 = vst [vmem:[#allocation2 + $0x64] sm:$0xff] %v1043_v33  ;;  %1072 = vst [vmem:[#allocation2 + $0x6c] sm:$0xff] %v1044_v9  ;;  %v995_v43 = vmul.f32 %v994_v2, %v4909_v37  ;;  %v996_v48 = vmul.f32 %v994_v2, %v4912_v17 }
 0x266   :  { %1073 = vst [vmem:[#allocation2 + $0x74] sm:$0xff] %v1045_v11  ;;  %1074 = vst [vmem:[#allocation2 + $0x7c] sm:$0xff] %v1046_v61  ;;  %v997_v59 = vmul.f32 %v994_v2, %v4917_v38  ;;  %v998_v15 = vmul.f32 %v994_v2, %v4924_v60  ;;  %v999_v19 = vmul.f32 %v994_v2, %v4927_v14  ;;  %v4999_v40 = vmax.f32 %v1024_v31, 0.0 }
 0x267   :  { %1075 = vst [vmem:[#allocation2 + $0x84] sm:$0xff] %v1047_v18  ;;  %1076 = vst [vmem:[#allocation2 + $0x8c] sm:$0xff] %v1048_v45  ;;  %v1022_v62 = vadd.f32 %v2844_v23, %v1000_v46  ;;  %v1017_v37 = vadd.f32 %v2844_v23, %v995_v43  ;;  %v1018_v17 = vadd.f32 %v2844_v23, %v996_v48  ;;  %v3100_v2 = vunpack.c.l.bf16 %v4868_v44  ;;  %v3201_v44 = vld [vmem:[%s5766_s2 + $0x120] sm:$0xff]   ;;  %v3220_v48 = vld [vmem:[%s5766_s2 + $0x1b8] sm:$0xff]  }
 0x268   :  { %1077 = vst [vmem:[#allocation2 + $0x94] sm:$0xff] %v1049_v20  ;;  %1078 = vst [vmem:[#allocation2 + $0x9c] sm:$0xff] %v1050_v58  ;;  %v1023_v1 = vadd.f32 %v2844_v23, %v1001_v47  ;;  %v1019_v50 = vadd.f32 %v2844_v23, %v997_v59  ;;  %v1020_v35 = vadd.f32 %v2844_v23, %v998_v15  ;;  %v3097_v47 = vunpack.c.h.bf16 %v3203_v57 }
 0x269   :  { %1079 = vst [vmem:[#allocation2 + $0xa4] sm:$0xff] %v1051_v13  ;;  %1080 = vst [vmem:[#allocation2 + $0xac] sm:$0xff] %v1052_v34  ;;  %v1021_v21 = vadd.f32 %v2844_v23, %v999_v19  ;;  %v5001_v54 = vmax.f32 %v1022_v62, 0.0  ;;  %v5003_v30 = vmax.f32 %v1017_v37, 0.0  ;;  %v5005_v38 = vmax.f32 %v1018_v17, 0.0  ;;  %v3195_v34 = vld [vmem:[%s5766_s2 + $0xf0] sm:$0xff]  }
 0x26a   :  { %v5007_v60 = vmax.f32 %v1023_v1, 0.0  ;;  %1070 = vst [vmem:[#allocation2 + $0x5c] sm:$0xff] %v4999_v40  ;;  %v5010_v14 = vmax.f32 %v1019_v50, 0.0  ;;  %v5012_v52 = vmax.f32 %v1020_v35, 0.0  ;;  %v3096_v49 = vunpack.c.l.bf16 %v3203_v57  ;;  %v3194_v19 = vld [vmem:[%s5766_s2 + $0xe8] sm:$0xff]   ;;  %v3193_v50 = vld [vmem:[%s5766_s2 + $0xe0] sm:$0xff]  }
 0x26b   :  { %v5014_v24 = vmax.f32 %v1021_v21, 0.0  ;;  %1068 = vst [vmem:[#allocation2 + $0x4c] sm:$0xff] %v5001_v54  ;;  %1063 = vst [vmem:[#allocation2 + $0x24] sm:$0xff] %v5003_v30  ;;  %3495 = vmatmul.mubr.f32.gmra.mxu1 %v5003_v30  ;;  %v3093_v28 = vunpack.c.h.bf16 %v3202_v3  ;;  %v3089_v53 = vunpack.c.h.bf16 %v3201_v44  ;;  %v3088_v10 = vunpack.c.l.bf16 %v3201_v44  ;;  %v3218_v57 = vld [vmem:[%s5766_s2 + $0x1a8] sm:$0xff]  }
 0x26c   :  { %1064 = vst [vmem:[#allocation2 + $0x2c] sm:$0xff] %v5005_v38  ;;  %1069 = vst [vmem:[#allocation2 + $0x54] sm:$0xff] %v5007_v60  ;;  %3497 = vmatprep.mubr.f32.mxu1 %v5005_v38  ;;  %v3085_v4 = vunpack.c.h.bf16 %v3200_v39  ;;  %v3084_v7 = vunpack.c.l.bf16 %v3200_v39  ;;  %v5084_v8 = vld [vmem:[#allocation2 + $0x68] sm:$0xff]  ;;  %v3073_v58 = vunpack.c.h.bf16 %v3197_v22  ;;  %v3072_v12 = vunpack.c.l.bf16 %v3197_v22 }
 0x26d   :  { %1065 = vst [vmem:[#allocation2 + $0x34] sm:$0xff] %v5010_v14  ;;  %1066 = vst [vmem:[#allocation2 + $0x3c] sm:$0xff] %v5012_v52  ;;  %v5092_v41 = vld [vmem:[#allocation2 + $0x70] sm:$0xff]  ;;  %v3068_v13 = vunpack.c.l.bf16 %v4905_v51  ;;  %v3065_v51 = vunpack.c.h.bf16 %v3195_v34  ;;  %v5131_v59 = vunpack.c.h.bf16 %v3220_v48  ;;  %v3064_v15 = vunpack.c.l.bf16 %v3195_v34  ;;  %v3214_v22 = vld [vmem:[%s5766_s2 + $0x188] sm:$0xff]  }
 0x26e   :  { %1067 = vst [vmem:[#allocation2 + $0x44] sm:$0xff] %v5014_v24  ;;  %v5105_v5 = vld [vmem:[#allocation2 + $0x80] sm:$0xff]  ;;  %v3061_v62 = vunpack.c.h.bf16 %v3194_v19  ;;  %v5147_v37 = vunpack.c.l.bf16 %v3220_v48  ;;  %v3060_v17 = vunpack.c.l.bf16 %v3194_v19  ;;  %v3057_v35 = vunpack.c.h.bf16 %v3193_v50  ;;  %v3212_v34 = vld [vmem:[%s5766_s2 + $0x178] sm:$0xff]  }
 0x26f   :  { %3498 = vmatmul.mubr.f32.gmra.mxu1 %v5010_v14  ;;  %v5122_v43 = vld [vmem:[#allocation2 + $0x98] sm:$0xff]  ;;  %v5254_v48 = vunpack.c.l.bf16 %v3214_v22  ;;  %v3133_v19 = vunpack.c.h.bf16 %v3212_v34 }
 0x270   :  { %3500 = vmatprep.mubr.f32.mxu1 %v5012_v52 }
 0x271   :  { %v5079_v56 = vld [vmem:[#allocation2 + $0x60] sm:$0xff] }
 0x272   :  { %v5031_v23 = vld [vmem:[#allocation2 + $0x20] sm:$0xff] }
 0x273   :  { %v5033_v46 = vld [vmem:[#allocation2 + $0x28] sm:$0xff]  ;;  %3610 = vmatmul.mubr.f32.vlgmr.msra.gmra.mxu0 %v5031_v23  ;;  %3501 = vmatmul.mubr.f32.gmra.mxu1 %v5014_v24  ;;  %v5066_v55 = vld [vmem:[#allocation2 + $0x50] sm:$0xff]  ;;  %v5071_v31 = vld [vmem:[#allocation2 + $0x58] sm:$0xff] }
 0x274   :  { %3612 = vmatprep.mubr.f32.mxu0 %v5033_v46  ;;  %3696 = vmatpush3.msra.mxu0 %v3101_v27  ;;  %v5044_v26 = vld [vmem:[#allocation2 + $0x30] sm:$0xff]  ;;  %v5047_v25 = vld [vmem:[#allocation2 + $0x38] sm:$0xff]  ;;  %v3092_v27 = vunpack.c.l.bf16 %v3202_v3  ;;  %v3217_v3 = vld [vmem:[%s5766_s2 + $0x1a0] sm:$0xff]  }
 0x275   :  { %3697 = vmatprep.subr.mxu0 %v3100_v2  ;;  %3503 = vmatprep.mubr.f32.mxu1 %v5001_v54  ;;  %v5054_v36 = vld [vmem:[#allocation2 + $0x40] sm:$0xff]  ;;  %v5058_v29 = vld [vmem:[#allocation2 + $0x48] sm:$0xff]  ;;  %v5197_v44 = vunpack.c.l.bf16 %v3217_v3 }
 0x276   :  { %3698 = vmatpush3.msra.mxu0 %v3100_v2  ;;  %v3056_v2 = vunpack.c.l.bf16 %v3193_v50  ;;  %v3211_v50 = vld [vmem:[%s5766_s2 + $0x170] sm:$0xff]  }
 0x277   :  { %3613 = vmatmul.mubr.f32.gmra.mxu0 %v5044_v26  ;;  %3699 = vmatprep.subr.mxu0 %v3097_v47 }
 0x278   :  { %3615 = vmatprep.mubr.f32.mxu0 %v5047_v25  ;;  %3700 = vmatpush3.msra.mxu0 %v3097_v47 }
 0x279   :  { %3701 = vmatprep.subr.mxu0 %v3096_v49  ;;  %3504 = vmatmul.mubr.f32.gmra.mxu1 %v5007_v60 }
 0x27a   :  { %3702 = vmatpush3.msra.mxu0 %v3096_v49  ;;  %3506 = vmatprep.mubr.f32.mxu1 %v4999_v40  ;;  %v5183_v49 = vunpack.c.l.bf16 %v3218_v57 }
 0x27b   :  { %3616 = vmatmul.mubr.f32.gmra.mxu0 %v5054_v36  ;;  %3703 = vmatprep.subr.mxu0 %v3093_v28 }
 0x27c   :  { %3618 = vmatprep.mubr.f32.mxu0 %v5058_v29  ;;  %3704 = vmatpush3.msra.mxu0 %v3093_v28  ;;  %v3191_v28 = vld [vmem:[%s5766_s2 + $0xd0] sm:$0xff]  }
 0x27d   :  { %3705 = vmatprep.subr.mxu0 %v3092_v27  ;;  %3507 = vmatmul.mubr.f32.gmra.mxu1 %v1043_v33  ;;  %v3081_v33 = vunpack.c.h.bf16 %v3199_v42  ;;  %v3048_v39 = vunpack.c.l.bf16 %v3191_v28 }
 0x27e   :  { %3706 = vmatpush3.msra.mxu0 %v3092_v27  ;;  %3509 = vmatprep.mubr.f32.mxu1 %v1044_v9  ;;  %v3080_v9 = vunpack.c.l.bf16 %v3199_v42  ;;  %v3216_v27 = vld [vmem:[%s5766_s2 + $0x198] sm:$0xff]   ;;  %v3215_v42 = vld [vmem:[%s5766_s2 + $0x190] sm:$0xff]  }
 0x27f   :  { %3619 = vmatmul.mubr.f32.gmra.mxu0 %v5066_v55  ;;  %3707 = vmatprep.subr.mxu0 %v3089_v53 }
 0x280   :  { %3621 = vmatprep.mubr.f32.mxu0 %v5071_v31  ;;  %3708 = vmatpush3.msra.mxu0 %v3089_v53  ;;  %v5207_v53 = vunpack.c.h.bf16 %v3216_v27 }
 0x281   :  { %3709 = vmatprep.subr.mxu0 %v3088_v10  ;;  %3510 = vmatmul.mubr.f32.gmra.mxu1 %v1045_v11  ;;  %v5097_v11 = vld [vmem:[#allocation2 + $0x78] sm:$0xff] }
 0x282   :  { %3710 = vmatpush3.msra.mxu0 %v3088_v10  ;;  %3512 = vmatprep.mubr.f32.mxu1 %v1046_v61  ;;  %v3077_v61 = vunpack.c.h.bf16 %v3198_v32  ;;  %v3190_v10 = vld [vmem:[%s5766_s2 + $0xc8] sm:$0xff]  }
 0x283   :  { %3622 = vmatmul.mubr.f32.gmra.mxu0 %v5079_v56  ;;  %3711 = vmatprep.subr.mxu0 %v3085_v4 }
 0x284   :  { %3624 = vmatprep.mubr.f32.mxu0 %v5084_v8  ;;  %3712 = vmatpush3.msra.mxu0 %v3085_v4  ;;  %v5216_v4 = vunpack.c.l.bf16 %v3216_v27  ;;  %v1728_v27 = vld [vmem:[#allocation2 + $0x84] sm:$0xff] }
 0x285   :  { %3713 = vmatprep.subr.mxu0 %v3084_v7  ;;  %3513 = vmatmul.mubr.f32.gmra.mxu1 %v1047_v18  ;;  %v3076_v18 = vunpack.c.l.bf16 %v3198_v32  ;;  %v3044_v32 = vunpack.c.l.bf16 %v3190_v10 }
 0x286   :  { %3714 = vmatpush3.msra.mxu0 %v3084_v7  ;;  %3515 = vmatprep.mubr.f32.mxu1 %v1048_v45  ;;  %v5109_v45 = vld [vmem:[#allocation2 + $0x88] sm:$0xff]  ;;  %v3045_v7 = vunpack.c.h.bf16 %v3190_v10 }
 0x287   :  { %3625 = vmatmul.mubr.f32.gmra.mxu0 %v5092_v41  ;;  %3715 = vmatprep.subr.mxu0 %v3081_v33 }
 0x288   :  { %3627 = vmatprep.mubr.f32.mxu0 %v5097_v11  ;;  %3716 = vmatpush3.msra.mxu0 %v3081_v33  ;;  %v5225_v33 = vunpack.c.h.bf16 %v3215_v42 }
 0x289   :  { %3717 = vmatprep.subr.mxu0 %v3080_v9  ;;  %3516 = vmatmul.mubr.f32.gmra.mxu1 %v1049_v20  ;;  %v5113_v20 = vld [vmem:[#allocation2 + $0x90] sm:$0xff] }
 0x28a   :  { %3718 = vmatpush3.msra.mxu0 %v3080_v9  ;;  %3550 = vmatprep.mubr.f32.mxu1 %v3910_v6  ;;  %v3189_v9 = vld [vmem:[%s5766_s2 + $0xc0] sm:$0xff]  }
 0x28b   :  { %3628 = vmatmul.mubr.f32.gmra.mxu0 %v5105_v5  ;;  %3719 = vmatprep.subr.mxu0 %v3077_v61 }
 0x28c   :  { %3630 = vmatprep.mubr.f32.mxu0 %v5109_v45  ;;  %3720 = vmatpush3.msra.mxu0 %v3077_v61  ;;  %v5234_v61 = vunpack.c.l.bf16 %v3215_v42 }
 0x28d   :  { %3721 = vmatprep.subr.mxu0 %v3076_v18  ;;  %3551 = vmatmul.mubr.f32.vlgmr.msra.gmra.mxu1 %v3910_v6 }
 0x28e   :  { %3722 = vmatpush3.msra.mxu0 %v3076_v18  ;;  %3637 = vmatpush3.msra.mxu1 %v3069_v16  ;;  %v5129_v16 = vld [vmem:[#allocation2 + $0xa0] sm:$0xff]  ;;  %v3041_v18 = vunpack.c.h.bf16 %v3189_v9 }
 0x28f   :  { %3631 = vmatmul.mubr.f32.gmra.mxu0 %v5113_v20  ;;  %3723 = vmatprep.subr.mxu0 %v3073_v58 }
 0x290   :  { %3633 = vmatprep.mubr.f32.mxu0 %v5122_v43  ;;  %3724 = vmatpush3.msra.mxu0 %v3073_v58  ;;  %v5243_v58 = vunpack.c.h.bf16 %v3214_v22 }
 0x291   :  { %3725 = vmatprep.subr.mxu0 %v3072_v12  ;;  %3553 = vmatprep.mubr.f32.mxu1 %v3910_v6 }
 0x292   :  { %3638 = vmatprep.subr.mxu1 %v3068_v13  ;;  %3726 = vmatpush3.msra.mxu0 %v3072_v12  ;;  %v5248_v12 = vld [vmem:[#allocation2 + $0xa8] sm:$0xff] }
 0x293   :  { %3634 = vmatmul.mubr.f32.gmra.mxu0 %v5129_v16  ;;  %3554 = vmatmul.mubr.f32.gmra.mxu1 %v3910_v6  ;;  %v3219_v6 = vld [vmem:[%s5766_s2 + $0x1b0] sm:$0xff]  }
 0x294   :  { %3727 = vmatprep.mubr.f32.mxu0 %v5044_v26  ;;  %3639 = vmatpush3.msra.mxu1 %v3068_v13  ;;  %v5151_v1 = vunpack.c.h.bf16 %v3219_v6  ;;  %v5162_v21 = vunpack.c.l.bf16 %v3219_v6  ;;  %v3040_v13 = vunpack.c.l.bf16 %v3189_v9  ;;  %v1733_v9 = vld [vmem:[#allocation2 + $0xac] sm:$0xff] }
 0x295   :  { %3556 = vmatprep.mubr.f32.mxu1 %v5031_v23  ;;  %3640 = vmatprep.subr.mxu1 %v3065_v51  ;;  %v3192_v23 = vld [vmem:[%s5766_s2 + $0xd8] sm:$0xff]  }
 0x296   :  { %3641 = vmatpush3.msra.mxu1 %v3065_v51  ;;  %3813 = vmatprep.subr.mxu0 %v5131_v59  ;;  %v3053_v47 = vunpack.c.h.bf16 %v3192_v23  ;;  %v3213_v51 = vld [vmem:[%s5766_s2 + $0x180] sm:$0xff]  }
 0x297   :  { %3728 = vmatmul.mubr.f32.vlgmr.msra.gmra.mxu0 %v5047_v25  ;;  %3642 = vmatprep.subr.mxu1 %v3064_v15  ;;  %v5267_v6 = vunpack.c.h.bf16 %v3213_v51 }
 0x298   :  { %3730 = vmatprep.mubr.f32.mxu0 %v5054_v36  ;;  %3557 = vmatmul.mubr.f32.gmra.mxu1 %v5033_v46  ;;  %v5174_v46 = vunpack.c.h.bf16 %v3218_v57 }
 0x299   :  { %3643 = vmatpush3.msra.mxu1 %v3064_v15  ;;  %3559 = vmatprep.mubr.f32.mxu1 %v5044_v26  ;;  %v5188_v26 = vunpack.c.h.bf16 %v3217_v3  ;;  %v5260_v15 = vld [vmem:[#allocation2 + $0xb0] sm:$0xff] }
 0x29a   :  { %3644 = vmatprep.subr.mxu1 %v3061_v62  ;;  %3814 = vmatpush3.msra.mxu0 %v5131_v59  ;;  %v5310_v3 = vld [vmem:[#allocation2 + $0x74] sm:$0xff] }
 0x29b   :  { %3731 = vmatmul.mubr.f32.gmra.mxu0 %v5058_v29  ;;  %3645 = vmatpush3.msra.mxu1 %v3061_v62  ;;  %v5265_v62 = vld [vmem:[#allocation2 + $0xb8] sm:$0xff] }
 0x29c   :  { %3733 = vmatprep.mubr.f32.mxu0 %v5066_v55  ;;  %3815 = vmatprep.subr.mxu0 %v5147_v37 }
 0x29d   :  { %3816 = vmatpush3.msra.mxu0 %v5147_v37  ;;  %3560 = vmatmul.mubr.f32.gmra.mxu1 %v5047_v25  ;;  %v3052_v25 = vunpack.c.l.bf16 %v3192_v23 }
 0x29e   :  { %3646 = vmatprep.subr.mxu1 %v3060_v17  ;;  %3817 = vmatprep.subr.mxu0 %v5151_v1 }
 0x29f   :  { %3734 = vmatmul.mubr.f32.gmra.mxu0 %v5071_v31  ;;  %3562 = vmatprep.mubr.f32.mxu1 %v5054_v36  ;;  %v3049_v36 = vunpack.c.h.bf16 %v3191_v28 }
 0x2a0   :  { %3647 = vmatpush3.msra.mxu1 %v3060_v17  ;;  %3736 = vmatprep.mubr.f32.mxu0 %v5079_v56  ;;  %v5272_v17 = vunpack.c.l.bf16 %v3213_v51 }
 0x2a1   :  { %3818 = vmatpush3.msra.mxu0 %v5151_v1  ;;  %3648 = vmatprep.subr.mxu1 %v3057_v35 }
 0x2a2   :  { %3819 = vmatprep.subr.mxu0 %v5162_v21  ;;  %3649 = vmatpush3.msra.mxu1 %v3057_v35  ;;  %v3210_v35 = vld [vmem:[%s5766_s2 + $0x168] sm:$0xff]  }
 0x2a3   :  { %3820 = vmatpush3.msra.mxu0 %v5162_v21  ;;  %3563 = vmatmul.mubr.f32.gmra.mxu1 %v5058_v29  ;;  %v3124_v57 = vunpack.c.l.bf16 %v3210_v35 }
 0x2a4   :  { %3650 = vmatprep.subr.mxu1 %v3056_v2  ;;  %3737 = vmatmul.mubr.f32.gmra.mxu0 %v5084_v8 }
 0x2a5   :  { %3821 = vmatprep.subr.mxu0 %v5174_v46  ;;  %3565 = vmatprep.mubr.f32.mxu1 %v5066_v55 }
 0x2a6   :  { %3651 = vmatpush3.msra.mxu1 %v3056_v2  ;;  %3739 = vmatprep.mubr.f32.mxu0 %v5092_v41  ;;  %v3209_v2 = vld [vmem:[%s5766_s2 + $0x160] sm:$0xff]  }
 0x2a7   :  { %3822 = vmatpush3.msra.mxu0 %v5174_v46  ;;  %3652 = vmatprep.subr.mxu1 %v3053_v47  ;;  %v3120_v23 = vunpack.c.l.bf16 %v3209_v2 }
 0x2a8   :  { %3823 = vmatprep.subr.mxu0 %v5183_v49  ;;  %3653 = vmatpush3.msra.mxu1 %v3053_v47 }
 0x2a9   :  { %3824 = vmatpush3.msra.mxu0 %v5183_v49  ;;  %3566 = vmatmul.mubr.f32.gmra.mxu1 %v5071_v31 }
 0x2aa   :  { %3740 = vmatmul.mubr.f32.gmra.mxu0 %v5097_v11  ;;  %3825 = vmatprep.subr.mxu0 %v5188_v26 }
 0x2ab   :  { %3568 = vmatprep.mubr.f32.mxu1 %v5079_v56  ;;  %3654 = vmatprep.subr.mxu1 %v3052_v25 }
 0x2ac   :  { %3742 = vmatprep.mubr.f32.mxu0 %v5105_v5  ;;  %3826 = vmatpush3.msra.mxu0 %v5188_v26 }
 0x2ad   :  { %3655 = vmatpush3.msra.mxu1 %v3052_v25  ;;  %3827 = vmatprep.subr.mxu0 %v5197_v44  ;;  %v1727_v25 = vld [vmem:[#allocation2 + $0x7c] sm:$0xff] }
 0x2ae   :  { %3656 = vmatprep.subr.mxu1 %v3049_v36  ;;  %3828 = vmatpush3.msra.mxu0 %v5197_v44 }
 0x2af   :  { %3569 = vmatmul.mubr.f32.gmra.mxu1 %v5084_v8  ;;  %3743 = vmatmul.mubr.f32.gmra.mxu0 %v5109_v45 }
 0x2b0   :  { %3657 = vmatpush3.msra.mxu1 %v3049_v36  ;;  %3829 = vmatprep.subr.mxu0 %v5207_v53 }
 0x2b1   :  { %3571 = vmatprep.mubr.f32.mxu1 %v5092_v41  ;;  %3658 = vmatprep.subr.mxu1 %v3048_v39 }
 0x2b2   :  { %3745 = vmatprep.mubr.f32.mxu0 %v5113_v20  ;;  %3830 = vmatpush3.msra.mxu0 %v5207_v53 }
 0x2b3   :  { %3659 = vmatpush3.msra.mxu1 %v3048_v39  ;;  %3831 = vmatprep.subr.mxu0 %v5216_v4  ;;  %v1730_v39 = vld [vmem:[#allocation2 + $0x94] sm:$0xff] }
 0x2b4   :  { %3660 = vmatprep.subr.mxu1 %v3045_v7  ;;  %3832 = vmatpush3.msra.mxu0 %v5216_v4 }
 0x2b5   :  { %3572 = vmatmul.mubr.f32.gmra.mxu1 %v5097_v11  ;;  %3746 = vmatmul.mubr.f32.gmra.mxu0 %v5122_v43 }
 0x2b6   :  { %3661 = vmatpush3.msra.mxu1 %v3045_v7  ;;  %3833 = vmatprep.subr.mxu0 %v5225_v33  ;;  %v1731_v7 = vld [vmem:[#allocation2 + $0x9c] sm:$0xff] }
 0x2b7   :  { %3574 = vmatprep.mubr.f32.mxu1 %v5105_v5  ;;  %3748 = vmatprep.mubr.f32.mxu0 %v5129_v16 }
 0x2b8   :  { %3834 = vmatpush3.msra.mxu0 %v5225_v33  ;;  %3662 = vmatprep.subr.mxu1 %v3044_v32 }
 0x2b9   :  { %3835 = vmatprep.subr.mxu0 %v5234_v61  ;;  %3663 = vmatpush3.msra.mxu1 %v3044_v32 }
 0x2ba   :  { %3836 = vmatpush3.msra.mxu0 %v5234_v61  ;;  %3575 = vmatmul.mubr.f32.gmra.mxu1 %v5109_v45 }
 0x2bb   :  { %3664 = vmatprep.subr.mxu1 %v3041_v18  ;;  %3749 = vmatmul.mubr.f32.gmra.mxu0 %v5248_v12 }
 0x2bc   :  { %3837 = vmatprep.subr.mxu0 %v5243_v58  ;;  %3665 = vmatpush3.msra.mxu1 %v3041_v18 }
 0x2bd   :  { %3668 = vmatprep.mubr.f32.mxu1 %v5003_v30  ;;  %3751 = vmatprep.mubr.f32.mxu0 %v5260_v15  ;;  %v3132_v30 = vunpack.c.l.bf16 %v3212_v34 }
 0x2be   :  { %3838 = vmatpush3.msra.mxu0 %v5243_v58  ;;  %3666 = vmatprep.subr.mxu1 %v3040_v13 }
 0x2bf   :  { %3839 = vmatprep.subr.mxu0 %v5254_v48  ;;  %3667 = vmatpush3.msra.mxu1 %v3040_v13 }
 0x2c0   :  { %3840 = vmatpush3.msra.mxu0 %v5254_v48  ;;  %3669 = vmatmul.mubr.f32.vlgmr.msra.gmra.mxu1 %v5005_v38  ;;  %v3129_v38 = vunpack.c.h.bf16 %v3211_v50 }
 0x2c1   :  { %3752 = vmatmul.mubr.f32.gmra.mxu0 %v5265_v62  ;;  %3754 = vmatprep.subr.mxu1 %v3133_v19 }
 0x2c2   :  { %3841 = vmatprep.subr.mxu0 %v5267_v6  ;;  %3671 = vmatprep.mubr.f32.mxu1 %v5010_v14  ;;  %v3128_v14 = vunpack.c.l.bf16 %v3211_v50 }
 0x2c3   :  { %3755 = vmatpush3.msra.mxu1 %v3133_v19  ;;  %3842 = vmatpush3.msra.mxu0 %v5267_v6 }
 0x2c4   :  { %3845 = vmatprep.mubr.f32.mxu0 %v5058_v29  ;;  %3843 = vmatprep.subr.mxu0 %v5272_v17  ;;  %v3125_v29 = vunpack.c.h.bf16 %v3210_v35 }
 0x2c5   :  { %3756 = vmatprep.subr.mxu1 %v3132_v30  ;;  %3844 = vmatpush3.msra.mxu0 %v5272_v17 }
 0x2c6   :  { %3672 = vmatmul.mubr.f32.gmra.mxu1 %v5012_v52  ;;  %3846 = vmatmul.mubr.f32.vlgmr.msra.gmra.mxu0 %v5066_v55  ;;  %v3121_v55 = vunpack.c.h.bf16 %v3209_v2 }
 0x2c7   :  { %3757 = vmatpush3.msra.mxu1 %v3132_v30  ;;  %3674 = vmatprep.mubr.f32.mxu1 %v5014_v24 }
 0x2c8   :  { %3758 = vmatprep.subr.mxu1 %v3129_v38  ;;  %3848 = vmatprep.mubr.f32.mxu0 %v5071_v31  ;;  %v5299_v31 = vld [vmem:[#allocation2 + $0x64] sm:$0xff] }
 0x2c9   :  { %3759 = vmatpush3.msra.mxu1 %v3129_v38 }
 0x2ca   :  { %3760 = vmatprep.subr.mxu1 %v3128_v14  ;;  %3675 = vmatmul.mubr.f32.gmra.mxu1 %v5001_v54 }
 0x2cb   :  { %3761 = vmatpush3.msra.mxu1 %v3128_v14  ;;  %3849 = vmatmul.mubr.f32.gmra.mxu0 %v5079_v56  ;;  %v3208_v56 = vld [vmem:[%s5766_s2 + $0x158] sm:$0xff]  }
 0x2cc   :  { %3677 = vmatprep.mubr.f32.mxu1 %v5007_v60  ;;  %3762 = vmatprep.subr.mxu1 %v3125_v29  ;;  %v3117_v47 = vunpack.c.h.bf16 %v3208_v56 }
 0x2cd   :  { %3851 = vmatprep.mubr.f32.mxu0 %v5084_v8  ;;  %3763 = vmatpush3.msra.mxu1 %v3125_v29  ;;  %v5307_v8 = vld [vmem:[#allocation2 + $0x6c] sm:$0xff] }
 0x2ce   :  { %3678 = vmatmul.mubr.f32.gmra.mxu1 %v4999_v40  ;;  %3764 = vmatprep.subr.mxu1 %v3124_v57 }
 0x2cf   :  { %3852 = vmatmul.mubr.f32.gmra.mxu0 %v5092_v41  ;;  %3680 = vmatprep.mubr.f32.mxu1 %v5299_v31  ;;  %v3207_v41 = vld [vmem:[%s5766_s2 + $0x150] sm:$0xff]  }
 0x2d0   :  { %3765 = vmatpush3.msra.mxu1 %v3124_v57  ;;  %3854 = vmatprep.mubr.f32.mxu0 %v5097_v11  ;;  %v3116_v11 = vunpack.c.l.bf16 %v3208_v56  ;;  %v3113_v28 = vunpack.c.h.bf16 %v3207_v41  ;;  %v3112_v36 = vunpack.c.l.bf16 %v3207_v41 }
 0x2d1   :  { %3766 = vmatprep.subr.mxu1 %v3121_v55 }
 0x2d2   :  { %3767 = vmatpush3.msra.mxu1 %v3121_v55 }
 0x2d3   :  { %3681 = vmatmul.mubr.f32.gmra.mxu1 %v5307_v8  ;;  %3768 = vmatprep.subr.mxu1 %v3120_v23 }
 0x2d4   :  { %3855 = vmatmul.mubr.f32.gmra.mxu0 %v5105_v5  ;;  %3683 = vmatprep.mubr.f32.mxu1 %v5310_v3  ;;  %v3206_v5 = vld [vmem:[%s5766_s2 + $0x148] sm:$0xff]  }
 0x2d5   :  { %3769 = vmatpush3.msra.mxu1 %v3120_v23  ;;  %3857 = vmatprep.mubr.f32.mxu0 %v5109_v45  ;;  %v1729_v45 = vld [vmem:[#allocation2 + $0x8c] sm:$0xff]  ;;  %v3109_v10 = vunpack.c.h.bf16 %v3206_v5  ;;  %v3108_v42 = vunpack.c.l.bf16 %v3206_v5 }
 0x2d6   :  { %3770 = vmatprep.subr.mxu1 %v3117_v47 }
 0x2d7   :  { %3771 = vmatpush3.msra.mxu1 %v3117_v47 }
 0x2d8   :  { %3684 = vmatmul.mubr.f32.gmra.mxu1 %v1727_v25  ;;  %3858 = vmatmul.mubr.f32.gmra.mxu0 %v5113_v20  ;;  %v3205_v20 = vld [vmem:[%s5766_s2 + $0x140] sm:$0xff]  }
 0x2d9   :  { %3686 = vmatprep.mubr.f32.mxu1 %v1728_v27  ;;  %3772 = vmatprep.subr.mxu1 %v3116_v11  ;;  %v3105_v32 = vunpack.c.h.bf16 %v3205_v20 }
 0x2da   :  { %3860 = vmatprep.mubr.f32.mxu0 %v5122_v43  ;;  %3773 = vmatpush3.msra.mxu1 %v3116_v11  ;;  %v1732_v43 = vld [vmem:[#allocation2 + $0xa4] sm:$0xff] }
 0x2db   :  { %3774 = vmatprep.subr.mxu1 %v3113_v28 }
 0x2dc   :  { %3687 = vmatmul.mubr.f32.gmra.mxu1 %v1729_v45  ;;  %3861 = vmatmul.mubr.f32.gmra.mxu0 %v5129_v16  ;;  %v3104_v16 = vunpack.c.l.bf16 %v3205_v20 }
 0x2dd   :  { %3775 = vmatpush3.msra.mxu1 %v3113_v28  ;;  %3689 = vmatprep.mubr.f32.mxu1 %v1730_v39 }
 0x2de   :  { %3776 = vmatprep.subr.mxu1 %v3112_v36 }
 0x2df   :  { %3777 = vmatpush3.msra.mxu1 %v3112_v36 }
 0x2e0   :  { %3778 = vmatprep.subr.mxu1 %v3109_v10  ;;  %3690 = vmatmul.mubr.f32.gmra.mxu1 %v1731_v7 }
 0x2e1   :  { %3779 = vmatpush3.msra.mxu1 %v3109_v10  ;;  %3692 = vmatprep.mubr.f32.mxu1 %v1732_v43 }
 0x2e2   :  { %3780 = vmatprep.subr.mxu1 %v3108_v42 }
 0x2e3   :  { %3781 = vmatpush3.msra.mxu1 %v3108_v42 }
 0x2e4   :  { %3693 = vmatmul.mubr.f32.gmra.mxu1 %v1733_v9  ;;  %3782 = vmatprep.subr.mxu1 %v3105_v32 }
 0x2e5   :  { %3783 = vmatpush3.msra.mxu1 %v3105_v32  ;;  %3786 = vmatprep.mubr.f32.mxu1 %v5012_v52  ;;  %v2405_v52 = vld [vmem:[#allocation2 + $0xd0] sm:$0xff] }
 0x2e6   :  { %3784 = vmatprep.subr.mxu1 %v3104_v16 }
 0x2e7   :  { %3785 = vmatpush3.msra.mxu1 %v3104_v16 }
 0x2e8   :  { %3787 = vmatmul.mubr.f32.vlgmr.msra.gmra.mxu1 %v5014_v24  ;;  %3872 = vmatprep.subr.mxu1 %v5131_v59  ;;  %v3493_v24 = vpop.f32.mrf.mxu1 }
 0x2e9   :  { %3789 = vmatprep.mubr.f32.mxu1 %v5001_v54  ;;  %3888 = vmatpush3.msra.mxu1 %v5131_v59  ;;  %v2403_v54 = vld [vmem:[#allocation2 + $0xc0] sm:$0xff] }
 0x2ea   :  { %3873 = vmatprep.subr.mxu1 %v5147_v37  ;;  %v1248_v59 = vpop.f32.mrf.mxu1 }
 0x2eb   :  { %3889 = vmatpush3.msra.mxu1 %v5147_v37 }
 0x2ec   :  { %3790 = vmatmul.mubr.f32.gmra.mxu1 %v5007_v60  ;;  %3874 = vmatprep.subr.mxu1 %v5151_v1  ;;  %v2404_v60 = vld [vmem:[#allocation2 + $0xc8] sm:$0xff] }
 0x2ed   :  { %3792 = vmatprep.mubr.f32.mxu1 %v4999_v40  ;;  %3890 = vmatpush3.msra.mxu1 %v5151_v1  ;;  %v3909_v40 = vld [vmem:[#allocation2 + $0x8] sm:$0xff] }
 0x2ee   :  { %3875 = vmatprep.subr.mxu1 %v5162_v21 }
 0x2ef   :  { %3891 = vmatpush3.msra.mxu1 %v5162_v21 }
 0x2f0   :  { %3793 = vmatmul.mubr.f32.gmra.mxu1 %v5299_v31  ;;  %3876 = vmatprep.subr.mxu1 %v5174_v46 }
 0x2f1   :  { %3795 = vmatprep.mubr.f32.mxu1 %v5307_v8  ;;  %3892 = vmatpush3.msra.mxu1 %v5174_v46 }
 0x2f2   :  { %3877 = vmatprep.subr.mxu1 %v5183_v49 }
 0x2f3   :  { %3893 = vmatpush3.msra.mxu1 %v5183_v49 }
 0x2f4   :  { %3796 = vmatmul.mubr.f32.gmra.mxu1 %v5310_v3  ;;  %3878 = vmatprep.subr.mxu1 %v5188_v26 }
 0x2f5   :  { %3798 = vmatprep.mubr.f32.mxu1 %v1727_v25  ;;  %3894 = vmatpush3.msra.mxu1 %v5188_v26 }
 0x2f6   :  { %3879 = vmatprep.subr.mxu1 %v5197_v44 }
 0x2f7   :  { %3895 = vmatpush3.msra.mxu1 %v5197_v44 }
 0x2f8   :  { %3799 = vmatmul.mubr.f32.gmra.mxu1 %v1728_v27  ;;  %3880 = vmatprep.subr.mxu1 %v5207_v53 }
 0x2f9   :  { %3801 = vmatprep.mubr.f32.mxu1 %v1729_v45  ;;  %3896 = vmatpush3.msra.mxu1 %v5207_v53 }
 0x2fa   :  { %3881 = vmatprep.subr.mxu1 %v5216_v4 }
 0x2fb   :  { %3897 = vmatpush3.msra.mxu1 %v5216_v4 }
 0x2fc   :  { %3802 = vmatmul.mubr.f32.gmra.mxu1 %v1730_v39  ;;  %3882 = vmatprep.subr.mxu1 %v5225_v33 }
 0x2fd   :  { %3804 = vmatprep.mubr.f32.mxu1 %v1731_v7  ;;  %3898 = vmatpush3.msra.mxu1 %v5225_v33 }
 0x2fe   :  { %3883 = vmatprep.subr.mxu1 %v5234_v61 }
 0x2ff   :  { %3899 = vmatpush3.msra.mxu1 %v5234_v61 }
 0x300   :  { %3805 = vmatmul.mubr.f32.gmra.mxu1 %v1732_v43  ;;  %3884 = vmatprep.subr.mxu1 %v5243_v58 }
 0x301   :  { %3807 = vmatprep.mubr.f32.mxu1 %v1733_v9  ;;  %3900 = vmatpush3.msra.mxu1 %v5243_v58 }
 0x302   :  { %3885 = vmatprep.subr.mxu1 %v5254_v48 }
 0x303   :  { %3901 = vmatpush3.msra.mxu1 %v5254_v48 }
 0x304   :  { %3808 = vmatmul.mubr.f32.gmra.mxu1 %v3909_v40  ;;  %3886 = vmatprep.subr.mxu1 %v5267_v6 }
 0x305   :  { %3810 = vmatprep.mubr.f32.mxu1 %v3909_v40  ;;  %3902 = vmatpush3.msra.mxu1 %v5267_v6 }
 0x306   :  { %3887 = vmatprep.subr.mxu1 %v5272_v17 }
 0x307   :  { %3903 = vmatpush3.msra.mxu1 %v5272_v17 }
 0x308   :  { %3811 = vmatmul.mubr.f32.gmra.mxu1 %v3909_v40 }
 0x309   :  { %3863 = vmatprep.mubr.f32.mxu1 %v5248_v12 }
 0x30c   :  { %3864 = vmatmul.mubr.f32.vlgmr.msra.gmra.mxu1 %v5260_v15 }
 0x30d   :  { %3866 = vmatprep.mubr.f32.mxu1 %v5265_v62 }
 0x310   :  { %3867 = vmatmul.mubr.f32.gmra.mxu1 %v2403_v54 }
 0x311   :  { %3869 = vmatprep.mubr.f32.mxu1 %v2404_v60 }
 0x314   :  { %3870 = vmatmul.mubr.f32.gmra.mxu1 %v2405_v52 }
 0x32b   :  { %v3496_v37 = vpop.f32.mrf.mxu1 }
 0x32d   :  { %v1258_v1 = vpop.f32.mrf.mxu1 }
 0x32f   :  { %v3499_v21 = vpop.f32.mrf.mxu1 }
 0x331   :  { %v1268_v46 = vpop.f32.mrf.mxu1 }
 0x333   :  { %v3611_v49 = vpop.f32.mrf.mxu0  ;;  %v3502_v26 = vpop.f32.mrf.mxu1 }
 0x335   :  { %v1609_v44 = vpop.f32.mrf.mxu0  ;;  %v1278_v53 = vpop.f32.mrf.mxu1 }
 0x337   :  { %v3614_v4 = vpop.f32.mrf.mxu0 }
 0x339   :  { %v1619_v33 = vpop.f32.mrf.mxu0  ;;  %v3505_v61 = vpop.f32.mrf.mxu1 }
 0x33b   :  { %v3617_v22 = vpop.f32.mrf.mxu0  ;;  %v1288_v18 = vpop.f32.mrf.mxu1 }
 0x33d   :  { %v1629_v58 = vpop.f32.mrf.mxu0  ;;  %v3508_v12 = vpop.f32.mrf.mxu1 }
 0x33f   :  { %v3620_v13 = vpop.f32.mrf.mxu0  ;;  %v1298_v34 = vpop.f32.mrf.mxu1 }
 0x341   :  { %v1639_v48 = vpop.f32.mrf.mxu0  ;;  %v5370_v51 = vpop.f32.mrf.mxu1 }
 0x343   :  { %v3623_v15 = vpop.f32.mrf.mxu0  ;;  %v5372_v19 = vpop.f32.mrf.mxu1 }
 0x345   :  { %v1649_v62 = vpop.f32.mrf.mxu0  ;;  %v5374_v6 = vpop.f32.mrf.mxu1 }
 0x347   :  { %v3626_v17 = vpop.f32.mrf.mxu0  ;;  %v5376_v30 = vpop.f32.mrf.mxu1 }
 0x349   :  { %v1659_v50 = vpop.f32.mrf.mxu0  ;;  %v5378_v38 = vpop.f32.mrf.mxu1 }
 0x34b   :  { %v3629_v35 = vpop.f32.mrf.mxu0  ;;  %v5380_v14 = vpop.f32.mrf.mxu1 }
 0x34d   :  { %v1669_v29 = vpop.f32.mrf.mxu0  ;;  %v3552_v57 = vpop.f32.mrf.mxu1 }
 0x34e   :  { %v1409_v2 = vadd.f32 %v3552_v57, %v3493_v24 }
 0x34f   :  { %v3632_v55 = vpop.f32.mrf.mxu0  ;;  %v1403_v31 = vpop.f32.mrf.mxu1 }
 0x350   :  { %v1404_v23 = vadd.f32 %v1403_v31, %v1248_v59  ;;  %v5382_v56 = vadd.f32 %v3611_v49, %v1409_v2 }
 0x351   :  { %v1679_v8 = vpop.f32.mrf.mxu0 }
 0x352   :  { %v5384_v47 = vadd.f32 %v1609_v44, %v1404_v23 }
 0x353   :  { %v3635_v3 = vpop.f32.mrf.mxu0  ;;  %v3555_v41 = vpop.f32.mrf.mxu1 }
 0x354   :  { %v1419_v11 = vadd.f32 %v3555_v41, %v3496_v37 }
 0x355   :  { %v1689_v25 = vpop.f32.mrf.mxu0  ;;  %v1413_v28 = vpop.f32.mrf.mxu1 }
 0x356   :  { %v1414_v27 = vadd.f32 %v1413_v28, %v1258_v1  ;;  %v5386_v5 = vadd.f32 %v3614_v4, %v1419_v11 }
 0x357   :  { %v5388_v36 = vpop.f32.mrf.mxu0 }
 0x358   :  { %v3558_v45 = vpop.f32.mrf.mxu1  ;;  %v5390_v39 = vadd.f32 %v1619_v33, %v1414_v27 }
 0x359   :  { %v5392_v10 = vpop.f32.mrf.mxu0  ;;  %v1429_v20 = vadd.f32 %v3558_v45, %v3499_v21 }
 0x35a   :  { %v1423_v42 = vpop.f32.mrf.mxu1 }
 0x35b   :  { %v5394_v7 = vpop.f32.mrf.mxu0  ;;  %v1424_v43 = vadd.f32 %v1423_v42, %v1268_v46  ;;  %v5396_v32 = vadd.f32 %v3617_v22, %v1429_v20 }
 0x35d   :  { %v5398_v16 = vpop.f32.mrf.mxu0  ;;  %v3561_v9 = vpop.f32.mrf.mxu1  ;;  %v5400_v40 = vadd.f32 %v1629_v58, %v1424_v43 }
 0x35e   :  { %v1439_v54 = vadd.f32 %v3561_v9, %v3502_v26 }
 0x35f   :  { %v5402_v60 = vpop.f32.mrf.mxu0  ;;  %v1433_v52 = vpop.f32.mrf.mxu1 }
 0x360   :  { %v1434_v24 = vadd.f32 %v1433_v52, %v1278_v53  ;;  %v5404_v59 = vadd.f32 %v3620_v13, %v1439_v54 }
 0x361   :  { %v5406_v37 = vpop.f32.mrf.mxu0 }
 0x362   :  { %v5408_v1 = vadd.f32 %v1639_v48, %v1434_v24 }
 0x363   :  { %v3564_v21 = vpop.f32.mrf.mxu1 }
 0x364   :  { %v1449_v46 = vadd.f32 %v3564_v21, %v3505_v61  ;;  %v5410_v49 = vpop.f32.mrf.mxu0 }
 0x365   :  { %v1443_v44 = vpop.f32.mrf.mxu1 }
 0x366   :  { %v1444_v4 = vadd.f32 %v1443_v44, %v1288_v18  ;;  %v5412_v33 = vadd.f32 %v3623_v15, %v1449_v46  ;;  %v5414_v22 = vpop.f32.mrf.mxu0 }
 0x368   :  { %v5416_v26 = vadd.f32 %v1649_v62, %v1444_v4 }
 0x369   :  { %v3567_v58 = vpop.f32.mrf.mxu1 }
 0x36a   :  { %v1459_v53 = vadd.f32 %v3567_v58, %v3508_v12  ;;  %v5418_v57 = vpop.f32.mrf.mxu0 }
 0x36b   :  { %v1453_v13 = vpop.f32.mrf.mxu1 }
 0x36c   :  { %v1454_v2 = vadd.f32 %v1453_v13, %v1298_v34  ;;  %v5420_v48 = vadd.f32 %v3626_v17, %v1459_v53  ;;  %v5424_v23 = vpop.f32.mrf.mxu0 }
 0x36e   :  { %v5422_v31 = vadd.f32 %v1659_v50, %v1454_v2 }
 0x36f   :  { %v3570_v61 = vpop.f32.mrf.mxu1  ;;  %v5430_v11 = vpop.f32.mrf.mxu0 }
 0x370   :  { %v1469_v18 = vadd.f32 %v3570_v61, %v5370_v51 }
 0x371   :  { %v1463_v15 = vpop.f32.mrf.mxu1  ;;  %v5435_v50 = vpop.f32.mrf.mxu0 }
 0x372   :  { %v1464_v41 = vadd.f32 %v1463_v15, %v5372_v19  ;;  %v5428_v62 = vadd.f32 %v3629_v35, %v1469_v18 }
 0x374   :  { %v5432_v12 = vadd.f32 %v1669_v29, %v1464_v41 }
 0x375   :  { %v3573_v28 = vpop.f32.mrf.mxu1  ;;  %v5443_v35 = vpop.f32.mrf.mxu0 }
 0x376   :  { %v1479_v34 = vadd.f32 %v3573_v28, %v5374_v6 }
 0x377   :  { %v1473_v17 = vpop.f32.mrf.mxu1  ;;  %v5450_v9 = vpop.f32.mrf.mxu0 }
 0x378   :  { %v1474_v27 = vadd.f32 %v1473_v17, %v5376_v30  ;;  %v5438_v45 = vadd.f32 %v3632_v55, %v1479_v34 }
 0x37a   :  { %v3576_v51 = vpop.f32.mrf.mxu1  ;;  %v5440_v20 = vadd.f32 %v1679_v8, %v1474_v27 }
 0x37b   :  { %v1489_v19 = vadd.f32 %v3576_v51, %v5378_v38  ;;  %v5452_v55 = vpop.f32.mrf.mxu0 }
 0x37c   :  { %v1483_v42 = vpop.f32.mrf.mxu1  ;;  %5773 = vst [vmem:[#allocation5_spill] sm:$0xff] %v5452_v55 }
 0x37d   :  { %v1484_v29 = vadd.f32 %v1483_v42, %v5380_v14  ;;  %v5446_v43 = vadd.f32 %v3635_v3, %v1489_v19  ;;  %v5454_v8 = vpop.f32.mrf.mxu0 }
 0x37e   :  { %5774 = vst [vmem:[#allocation6_spill] sm:$0xff] %v5454_v8 }
 0x37f   :  { %5772 = vst [vmem:[#allocation4_spill] sm:$0xff] %v5446_v43  ;;  %v5448_v6 = vadd.f32 %v1689_v25, %v1484_v29 }
 0x380   :  { %v3670_v54 = vpop.f32.mrf.mxu1 }
 0x381   :  { %v5456_v21 = vpop.f32.mrf.mxu0  ;;  %v1923_v17 = vadd.f32 %v3670_v54, %v5382_v56 }
 0x382   :  { %v1833_v30 = vpop.f32.mrf.mxu1  ;;  %5775 = vst [vmem:[#allocation7_spill] sm:$0xff] %v5456_v21 }
 0x383   :  { %v5458_v14 = vpop.f32.mrf.mxu0  ;;  %v1922_v19 = vadd.f32 %v1833_v30, %v5384_v47  ;;  %v2147_v29 = vadd.f32 %v5388_v36, %v1923_v17 }
 0x384   :  { %5776 = vst [vmem:[#allocation8_spill] sm:$0xff] %v5458_v14 }
 0x385   :  { %v2146_v55 = vadd.f32 %v5392_v10, %v1922_v19 }
 0x386   :  { %v3673_v52 = vpop.f32.mrf.mxu1  ;;  %v3847_v4 = vpop.f32.mrf.mxu0 }
 0x387   :  { %v1925_v0 = vadd.f32 %v3673_v52, %v5386_v5 }
 0x388   :  { %v1843_v24 = vpop.f32.mrf.mxu1  ;;  %v2505_v53 = vpop.f32.mrf.mxu0 }
 0x389   :  { %v1924_v14 = vadd.f32 %v1843_v24, %v5390_v39  ;;  %v2149_v47 = vadd.f32 %v5394_v7, %v1925_v0 }
 0x38a   :  { %v3676_v38 = vpop.f32.mrf.mxu1 }
 0x38b   :  { %v3850_v61 = vpop.f32.mrf.mxu0  ;;  %v1927_v54 = vadd.f32 %v3676_v38, %v5396_v32  ;;  %v2148_v52 = vadd.f32 %v5398_v16, %v1924_v14 }
 0x38c   :  { %v1853_v46 = vpop.f32.mrf.mxu1 }
 0x38d   :  { %v2515_v41 = vpop.f32.mrf.mxu0  ;;  %v2151_v32 = vadd.f32 %v5402_v60, %v1927_v54 }
 0x38e   :  { %v3679_v44 = vpop.f32.mrf.mxu1 }
 0x38f   :  { %v3853_v27 = vpop.f32.mrf.mxu0  ;;  %v1929_v0 = vadd.f32 %v3679_v44, %v5404_v59 }
 0x390   :  { %v1863_v3 = vpop.f32.mrf.mxu1 }
 0x391   :  { %v2525_v63 = vpop.f32.mrf.mxu0  ;;  %v1928_v7 = vadd.f32 %v1863_v3, %v5408_v1  ;;  %v2153_v44 = vadd.f32 %v5410_v49, %v1929_v0 }
 0x393   :  { %v3682_v25 = vpop.f32.mrf.mxu1 }
 0x395   :  { %v1873_v58 = vpop.f32.mrf.mxu1 }
 0x396   :  { %v1930_v60 = vadd.f32 %v1873_v58, %v5416_v26 }
 0x398   :  { %v5460_v13 = vpop.f32.mrf.mxu1 }
 0x399   :  { %v1933_v58 = vadd.f32 %v5460_v13, %v5420_v48 }
 0x39a   :  { %v5462_v2 = vpop.f32.mrf.mxu1 }
 0x39b   :  { %v1932_v49 = vadd.f32 %v5462_v2, %v5422_v31  ;;  %v2157_v13 = vadd.f32 %v5430_v11, %v1933_v58 }
 0x39c   :  { %v5464_v18 = vpop.f32.mrf.mxu1 }
 0x39d   :  { %v2156_v31 = vadd.f32 %v5435_v50, %v1932_v49  ;;  %v5784_v49 = vld [vmem:[#allocation8_spill] sm:$0xff] }
 0x39e   :  { %v5466_v15 = vpop.f32.mrf.mxu1 }
 0x3a0   :  { %v5468_v28 = vpop.f32.mrf.mxu1 }
 0x3a2   :  { %v5470_v34 = vpop.f32.mrf.mxu1 }
 0x3a4   :  { %v5473_v51 = vpop.f32.mrf.mxu1 }
 0x3a5   :  { %5777 = vst [vmem:[#allocation9_spill] sm:$0xff] %v5473_v51  ;;  %v3856_v51 = vpop.f32.mrf.mxu0 }
 0x3a6   :  { %v5476_v42 = vpop.f32.mrf.mxu1 }
 0x3a7   :  { %5778 = vst [vmem:[#allocation10_spill] sm:$0xff] %v5476_v42  ;;  %v1926_v42 = vadd.f32 %v1853_v46, %v5400_v40 }
 0x3a8   :  { %v3788_v21 = vpop.f32.mrf.mxu1 }
 0x3a9   :  { %v2371_v43 = vadd.f32 %v3788_v21, %v2147_v29 }
 0x3aa   :  { %v2281_v8 = vpop.f32.mrf.mxu1 }
 0x3ab   :  { %v2370_v56 = vadd.f32 %v2281_v8, %v2146_v55  ;;  %v5485_v36 = vadd.f32 %v3847_v4, %v2371_v43  ;;  %v2535_v8 = vpop.f32.mrf.mxu0  ;;  %v2150_v43 = vadd.f32 %v5406_v37, %v1926_v42  ;;  %v2152_v37 = vadd.f32 %v5414_v22, %v1928_v7 }
 0x3ac   :  { %v3791_v30 = vpop.f32.mrf.mxu1 }
 0x3ad   :  { %v5487_v5 = vadd.f32 %v2505_v53, %v2370_v56  ;;  %v2373_v24 = vadd.f32 %v3791_v30, %v2149_v47  ;;  %v1931_v53 = vadd.f32 %v3682_v25, %v5412_v33  ;;  %v3859_v17 = vpop.f32.mrf.mxu0 }
 0x3ae   :  { %v2291_v39 = vpop.f32.mrf.mxu1 }
 0x3af   :  { %v2612_v10 = vadd.f32 %v5485_v36, %v5487_v5  ;;  %v2372_v55 = vadd.f32 %v2291_v39, %v2148_v52  ;;  %v5498_v16 = vadd.f32 %v3850_v61, %v2373_v24  ;;  %v2545_v33 = vpop.f32.mrf.mxu0  ;;  %v2155_v26 = vadd.f32 %v5418_v57, %v1931_v53 }
 0x3b0   :  { %v3794_v38 = vpop.f32.mrf.mxu1  ;;  %v1935_v53 = vadd.f32 %v5464_v18, %v5428_v62 }
 0x3b1   :  { %v5495_v40 = vadd.f32 %v2515_v41, %v2372_v55  ;;  %v2375_v14 = vadd.f32 %v3794_v38, %v2151_v32  ;;  %v3862_v52 = vpop.f32.mrf.mxu0 }
 0x3b2   :  { %v2301_v21 = vpop.f32.mrf.mxu1 }
 0x3b3   :  { %v2613_v46 = vadd.f32 %v2612_v10, %v5495_v40  ;;  %v2374_v4 = vadd.f32 %v2301_v21, %v2150_v43  ;;  %v5508_v61 = vadd.f32 %v3853_v27, %v2375_v14  ;;  %v1934_v14 = vadd.f32 %v5466_v15, %v5432_v12  ;;  %v5779_v12 = vld [vmem:[#allocation10_spill] sm:$0xff] }
 0x3b4   :  { %v3797_v19 = vpop.f32.mrf.mxu1  ;;  %v1938_v15 = vadd.f32 %v5779_v12, %v5448_v6 }
 0x3b5   :  { %v5503_v59 = vadd.f32 %v2525_v63, %v2374_v4  ;;  %v2614_v1 = vadd.f32 %v2613_v46, %v5498_v16  ;;  %v2377_v42 = vadd.f32 %v3797_v19, %v2153_v44  ;;  %v2154_v63 = vadd.f32 %v5424_v23, %v1930_v60 }
 0x3b6   :  { %v2311_v3 = vpop.f32.mrf.mxu1  ;;  %v2158_v19 = vadd.f32 %v5450_v9, %v1934_v14  ;;  %v5783_v9 = vld [vmem:[#allocation9_spill] sm:$0xff] }
 0x3b7   :  { %v2615_v41 = vadd.f32 %v2614_v1, %v5503_v59  ;;  %v2376_v29 = vadd.f32 %v2311_v3, %v2152_v37  ;;  %v5520_v54 = vadd.f32 %v3856_v51, %v2377_v42  ;;  %v1937_v1 = vadd.f32 %v5468_v28, %v5438_v45 }
 0x3b8   :  { %v3800_v25 = vpop.f32.mrf.mxu1  ;;  %v2159_v37 = vadd.f32 %v5443_v35, %v1935_v53 }
 0x3b9   :  { %v5517_v22 = vadd.f32 %v2535_v8, %v2376_v29  ;;  %v2616_v27 = vadd.f32 %v2615_v41, %v5508_v61  ;;  %v2379_v30 = vadd.f32 %v3800_v25, %v2155_v26  ;;  %v2555_v8 = vpop.f32.mrf.mxu0  ;;  %v5780_v29 = vld [vmem:[#allocation6_spill] sm:$0xff] }
 0x3ba   :  { %v2321_v56 = vpop.f32.mrf.mxu1 }
 0x3bb   :  { %v2617_v47 = vadd.f32 %v2616_v27, %v5517_v22  ;;  %v2378_v57 = vadd.f32 %v2321_v56, %v2154_v63  ;;  %v5528_v10 = vadd.f32 %v3859_v17, %v2379_v30  ;;  %v1936_v17 = vadd.f32 %v5470_v34, %v5440_v20  ;;  %v5782_v34 = vld [vmem:[#allocation4_spill] sm:$0xff]  ;;  %v5785_v30 = vld [vmem:[#allocation7_spill] sm:$0xff] }
 0x3bc   :  { %v3803_v39 = vpop.f32.mrf.mxu1  ;;  %v1939_v25 = vadd.f32 %v5783_v9, %v5782_v34  ;;  %v2162_v27 = vadd.f32 %v5784_v49, %v1938_v15 }
 0x3bd   :  { %v5523_v23 = vadd.f32 %v2545_v33, %v2378_v57  ;;  %v2618_v48 = vadd.f32 %v2617_v47, %v5520_v54  ;;  %v2381_v24 = vadd.f32 %v3803_v39, %v2157_v13  ;;  %v2160_v62 = vadd.f32 %v5780_v29, %v1936_v17  ;;  %v5781_v33 = vld [vmem:[#allocation5_spill] sm:$0xff] }
 0x3be   :  { %v2331_v2 = vpop.f32.mrf.mxu1  ;;  %v2161_v26 = vadd.f32 %v5781_v33, %v1937_v1  ;;  %v2163_v57 = vadd.f32 %v5785_v30, %v1939_v25 }
 0x3bf   :  { %v2619_v51 = vadd.f32 %v2618_v48, %v5523_v23  ;;  %v2380_v55 = vadd.f32 %v2331_v2, %v2156_v31  ;;  %v2605_v43 = vadd.f32 %v3862_v52, %v2381_v24 }
 0x3c0   :  { %v3806_v32 = vpop.f32.mrf.mxu1 }
 0x3c1   :  { %v5531_v38 = vadd.f32 %v2555_v8, %v2380_v55  ;;  %v2620_v0 = vadd.f32 %v2619_v51, %v5528_v10  ;;  %v2383_v42 = vadd.f32 %v3806_v32, %v2159_v37 }
 0x3c2   :  { %v2341_v7 = vpop.f32.mrf.mxu1 }
 0x3c3   :  { %v2621_v21 = vadd.f32 %v2620_v0, %v5531_v38  ;;  %v2382_v3 = vadd.f32 %v2341_v7, %v2158_v19 }
 0x3c4   :  { %v3809_v11 = vpop.f32.mrf.mxu1 }
 0x3c5   :  { %v2622_v46 = vadd.f32 %v2621_v21, %v2605_v43  ;;  %v2385_v35 = vadd.f32 %v3809_v11, %v2161_v26 }
 0x3c6   :  { %v2351_v50 = vpop.f32.mrf.mxu1 }
 0x3c7   :  { %v2384_v63 = vadd.f32 %v2351_v50, %v2160_v62 }
 0x3c8   :  { %v3812_v4 = vpop.f32.mrf.mxu1 }
 0x3c9   :  { %v2387_v31 = vadd.f32 %v3812_v4, %v2163_v57 }
 0x3ca   :  { %v2361_v60 = vpop.f32.mrf.mxu1 }
 0x3cb   :  { %v2386_v52 = vadd.f32 %v2361_v60, %v2162_v27 }
 0x3cc   :  { %v3865_v44 = vpop.f32.mrf.mxu1 }
 0x3cd   :  { %v2607_v45 = vadd.f32 %v3865_v44, %v2383_v42 }
 0x3ce   :  { %v2565_v41 = vpop.f32.mrf.mxu1 }
 0x3cf   :  { %v2606_v18 = vadd.f32 %v2565_v41, %v2382_v3 }
 0x3d0   :  { %v3868_v20 = vpop.f32.mrf.mxu1 }
 0x3d1   :  { %v2623_v28 = vadd.f32 %v2622_v46, %v2606_v18  ;;  %v2609_v39 = vadd.f32 %v3868_v20, %v2385_v35 }
 0x3d2   :  { %v2575_v58 = vpop.f32.mrf.mxu1 }
 0x3d3   :  { %v2608_v56 = vadd.f32 %v2575_v58, %v2384_v63  ;;  %v2624_v47 = vadd.f32 %v2623_v28, %v2607_v45 }
 0x3d4   :  { %v3871_v6 = vpop.f32.mrf.mxu1 }
 0x3d5   :  { %v2625_v48 = vadd.f32 %v2624_v47, %v2608_v56  ;;  %v2611_v24 = vadd.f32 %v3871_v6, %v2387_v31 }
 0x3d6   :  { %v2585_v13 = vpop.f32.mrf.mxu1 }
 0x3d7   :  { %v2610_v2 = vadd.f32 %v2585_v13, %v2386_v52  ;;  %v2626_v51 = vadd.f32 %v2625_v48, %v2609_v39 }
 0x3d9   :  { %v2627_v55 = vadd.f32 %v2626_v51, %v2610_v2 }
 0x3db   :  { %v2628_v8 = vadd.f32 %v2627_v55, %v2611_v24 }
 0x3dd   :  { %v2629_v32 = vrot.slane %v2628_v8, 4 }
 0x3df   :  { %v2630_v0 = vadd.f32 %v2629_v32, %v2628_v8 }
 0x3e1   :  { %v2631_v7 = vrot.slane %v2630_v0, 2 }
 0x3e3   :  { %v2632_v21 = vadd.f32 %v2631_v7, %v2630_v0 }
 0x3e5   :  { %v2633_v11 = vrot.slane %v2632_v21, 1 }
 0x3e7   :  { %v2634_v46 = vadd.f32 %v2633_v11, %v2632_v21  ;;  %v19_v11 = vld [vmem:[%s5767_s3 + $0x2] sm:$0x1] }
 0x3e9   :  { %v2635_v50 = vmul.f32 0.0069444445, %v2634_v46 }
 0x3eb   :  { %v5554_v14 = vsub.f32 %v5487_v5, %v2635_v50  ;;  %v5557_v53 = vsub.f32 %v5485_v36, %v2635_v50  ;;  %v5560_v4 = vsub.f32 %v5495_v40, %v2635_v50  ;;  %v5563_v60 = vsub.f32 %v5498_v16, %v2635_v50 }
 0x3ec   :  { %v5566_v17 = vsub.f32 %v5503_v59, %v2635_v50  ;;  %v5569_v19 = vsub.f32 %v5508_v61, %v2635_v50  ;;  %v5572_v1 = vsub.f32 %v5517_v22, %v2635_v50  ;;  %v5575_v5 = vsub.f32 %v5520_v54, %v2635_v50 }
 0x3ed   :  { %v5578_v36 = vsub.f32 %v5523_v23, %v2635_v50  ;;  %v5581_v40 = vsub.f32 %v5528_v10, %v2635_v50  ;;  %v5584_v16 = vsub.f32 %v5531_v38, %v2635_v50  ;;  %v5586_v59 = vsub.f32 %v2605_v43, %v2635_v50 }
 0x3ee   :  { %v5588_v44 = vsub.f32 %v2606_v18, %v2635_v50  ;;  %v5590_v61 = vsub.f32 %v2607_v45, %v2635_v50  ;;  %v5592_v22 = vsub.f32 %v2608_v56, %v2635_v50  ;;  %v5594_v37 = vsub.f32 %v2609_v39, %v2635_v50 }
 0x3ef   :  { %v2652_v54 = vsub.f32 %v2610_v2, %v2635_v50  ;;  %v2653_v3 = vsub.f32 %v2611_v24, %v2635_v50  ;;  %v2654_v23 = vmul.f32 %v5554_v14, %v5554_v14  ;;  %v2655_v10 = vmul.f32 %v5557_v53, %v5557_v53 }
 0x3f0   :  { %v2656_v38 = vmul.f32 %v5560_v4, %v5560_v4  ;;  %v2657_v41 = vmul.f32 %v5563_v60, %v5563_v60  ;;  %v2658_v15 = vmul.f32 %v5566_v17, %v5566_v17  ;;  %v2659_v29 = vmul.f32 %v5569_v19, %v5569_v19 }
 0x3f1   :  { %v2672_v43 = vadd.f32 %v2655_v10, %v2654_v23  ;;  %v2660_v18 = vmul.f32 %v5572_v1, %v5572_v1  ;;  %v2661_v26 = vmul.f32 %v5575_v5, %v5575_v5  ;;  %v2662_v34 = vmul.f32 %v5578_v36, %v5578_v36  ;;  %v5786_v23 = vld [vmem:[#allocation3_spill] sm:$0xff] }
 0x3f2   :  { %v2663_v25 = vmul.f32 %v5581_v40, %v5581_v40  ;;  %v2664_v45 = vmul.f32 %v5584_v16, %v5584_v16  ;;  %v2665_v58 = vmul.f32 %v5586_v59, %v5586_v59  ;;  %v2666_v49 = vmul.f32 %v5588_v44, %v5588_v44 }
 0x3f3   :  { %v2673_v12 = vadd.f32 %v2672_v43, %v2656_v38  ;;  %v2667_v56 = vmul.f32 %v5590_v61, %v5590_v61  ;;  %v2668_v6 = vmul.f32 %v5592_v22, %v5592_v22  ;;  %v2669_v57 = vmul.f32 %v5594_v37, %v5594_v37  ;;  %v2941_v43 = vld [vmem:[%s5767_s3 + $0x3] ss:$0 sm:$0xff] }
 0x3f4   :  { %v2670_v39 = vmul.f32 %v2652_v54, %v2652_v54  ;;  %v2671_v13 = vmul.f32 %v2653_v3, %v2653_v3  ;;  %v5787_v10 = vsub.s32 0, %v5786_v23 }
 0x3f5   :  { %v2674_v42 = vadd.f32 %v2673_v12, %v2657_v41 }
 0x3f7   :  { %v2675_v62 = vadd.f32 %v2674_v42, %v2658_v15 }
 0x3f9   :  { %v2676_v33 = vadd.f32 %v2675_v62, %v2659_v29 }
 0x3fb   :  { %v2677_v20 = vadd.f32 %v2676_v33, %v2660_v18 }
 0x3fd   :  { %v2678_v9 = vadd.f32 %v2677_v20, %v2661_v26 }
 0x3ff   :  { %v2679_v63 = vadd.f32 %v2678_v9, %v2662_v34 }
 0x401   :  { %v2680_v28 = vadd.f32 %v2679_v63, %v2663_v25 }
 0x403   :  { %v2681_v35 = vadd.f32 %v2680_v28, %v2664_v45 }
 0x405   :  { %v2682_v27 = vadd.f32 %v2681_v35, %v2665_v58 }
 0x407   :  { %v2683_v47 = vadd.f32 %v2682_v27, %v2666_v49 }
 0x409   :  { %v2684_v30 = vadd.f32 %v2683_v47, %v2667_v56 }
 0x40b   :  { %v2685_v52 = vadd.f32 %v2684_v30, %v2668_v6 }
 0x40d   :  { %v2686_v48 = vadd.f32 %v2685_v52, %v2669_v57 }
 0x40f   :  { %v2687_v31 = vadd.f32 %v2686_v48, %v2670_v39 }
 0x411   :  { %v2688_v2 = vadd.f32 %v2687_v31, %v2671_v13 }
 0x413   :  { %v2689_v51 = vrot.slane %v2688_v2, 4 }
 0x415   :  { %v2690_v24 = vadd.f32 %v2689_v51, %v2688_v2 }
 0x417   :  { %v2691_v55 = vrot.slane %v2690_v24, 2 }
 0x419   :  { %v2692_v8 = vadd.f32 %v2691_v55, %v2690_v24 }
 0x41b   :  { %v2693_v32 = vrot.slane %v2692_v8, 1 }
 0x41d   :  { %v2694_v0 = vadd.f32 %v2693_v32, %v2692_v8 }
 0x41f   :  { %v2695_v7 = vmul.f32 0.0069444445, %v2694_v0 }
 0x421   :  { %v2696_v21 = vadd.f32 0.001, %v2695_v7 }
 0x423   :  { %3907 = vrsqrt.f32 %v2696_v21 }
 0x430   :  { %v3908_v46 = vpop.eup %3907 }
 0x431   :  { %v2698_v50 = vmul.f32 %v3908_v46, %v19_v11 }
 0x433   :  { %v2702_v38 = vrot.slane %v2698_v50, %v5787_v10 }
 0x435   :  { %v2719_v41 = vmul.f32 %v2702_v38, %v2652_v54  ;;  %v2703_v12 = vmul.f32 %v2702_v38, %v5554_v14  ;;  %v2720_v15 = vmul.f32 %v2702_v38, %v2653_v3  ;;  %v2704_v62 = vmul.f32 %v2702_v38, %v5557_v53 }
 0x436   :  { %v2705_v26 = vmul.f32 %v2702_v38, %v5560_v4  ;;  %v2706_v34 = vmul.f32 %v2702_v38, %v5563_v60  ;;  %v2707_v14 = vmul.f32 %v2702_v38, %v5566_v17  ;;  %v2708_v9 = vmul.f32 %v2702_v38, %v5569_v19 }
 0x437   :  { %v2741_v42 = vadd.f32 %v2941_v43, %v2719_v41  ;;  %v2725_v29 = vadd.f32 %v2941_v43, %v2703_v12  ;;  %v2742_v18 = vadd.f32 %v2941_v43, %v2720_v15  ;;  %v2726_v33 = vadd.f32 %v2941_v43, %v2704_v62 }
 0x438   :  { %v2727_v20 = vadd.f32 %v2941_v43, %v2705_v26  ;;  %v2728_v54 = vadd.f32 %v2941_v43, %v2706_v34  ;;  %v2729_v3 = vadd.f32 %v2941_v43, %v2707_v14  ;;  %v2730_v53 = vadd.f32 %v2941_v43, %v2708_v9 }
 0x439   :  { %2775 = vxpose.xlu1.b32.start [1/2] (short) %v2741_v42, 128  ;;  %2743 = vxpose.xlu0.b32.start [1/16] %v2725_v29, 128  ;;  %v2709_v25 = vmul.f32 %v2702_v38, %v5572_v1  ;;  %v2710_v4 = vmul.f32 %v2702_v38, %v5575_v5  ;;  %v2711_v60 = vmul.f32 %v2702_v38, %v5578_v36 }
 0x43a   :  { %v2712_v17 = vmul.f32 %v2702_v38, %v5581_v40  ;;  %v2713_v19 = vmul.f32 %v2702_v38, %v5584_v16  ;;  %v2714_v1 = vmul.f32 %v2702_v38, %v5586_v59  ;;  %v2715_v5 = vmul.f32 %v2702_v38, %v5588_v44 }
 0x43b   :  { %v2731_v63 = vadd.f32 %v2941_v43, %v2709_v25  ;;  %v2732_v45 = vadd.f32 %v2941_v43, %v2710_v4  ;;  %v2733_v28 = vadd.f32 %v2941_v43, %v2711_v60  ;;  %v2716_v36 = vmul.f32 %v2702_v38, %v5590_v61 }
 0x43c   :  { %v2734_v58 = vadd.f32 %v2941_v43, %v2712_v17  ;;  %v2735_v35 = vadd.f32 %v2941_v43, %v2713_v19  ;;  %v2736_v49 = vadd.f32 %v2941_v43, %v2714_v1  ;;  %v2737_v27 = vadd.f32 %v2941_v43, %v2715_v5 }
 0x43d   :  { %2776 = vxpose.xlu1.b32.end [2/2] (short) %v2742_v18, 128  ;;  %2744 = vxpose.xlu0.b32.cont [2/16] %v2726_v33, 128  ;;  %v2738_v56 = vadd.f32 %v2941_v43, %v2716_v36  ;;  %v2717_v40 = vmul.f32 %v2702_v38, %v5592_v22  ;;  %v2718_v16 = vmul.f32 %v2702_v38, %v5594_v37 }
 0x43f   :  { %v2739_v47 = vadd.f32 %v2941_v43, %v2717_v40  ;;  %v2740_v6 = vadd.f32 %v2941_v43, %v2718_v16 }
 0x441   :  { %2745 = vxpose.xlu0.b32.cont [3/16] %v2727_v20, 128 }
 0x445   :  { %2746 = vxpose.xlu0.b32.cont [4/16] %v2728_v54, 128 }
 0x449   :  { %2747 = vxpose.xlu0.b32.cont [5/16] %v2729_v3, 128 }
 0x44d   :  { %2748 = vxpose.xlu0.b32.cont [6/16] %v2730_v53, 128 }
 0x451   :  { %2749 = vxpose.xlu0.b32.cont [7/16] %v2731_v63, 128 }
 0x455   :  { %2750 = vxpose.xlu0.b32.cont [8/16] %v2732_v45, 128 }
 0x459   :  { %2751 = vxpose.xlu0.b32.cont [9/16] %v2733_v28, 128 }
 0x45d   :  { %2752 = vxpose.xlu0.b32.cont [10/16] %v2734_v58, 128 }
 0x461   :  { %2753 = vxpose.xlu0.b32.cont [11/16] %v2735_v35, 128 }
 0x465   :  { %2754 = vxpose.xlu0.b32.cont [12/16] %v2736_v49, 128 }
 0x469   :  { %2755 = vxpose.xlu0.b32.cont [13/16] %v2737_v27, 128 }
 0x46d   :  { %2756 = vxpose.xlu0.b32.cont [14/16] %v2738_v56, 128 }
 0x471   :  { %2757 = vxpose.xlu0.b32.cont [15/16] %v2739_v47, 128 }
 0x475   :  { %2758 = vxpose.xlu0.b32.end [16/16] %v2740_v6, 128 }
 0x4b5   :  { %v2791_v59 = vpop.trf.xlu1  ;;  %v2759_v30 = vpop.trf.xlu0 }
 0x4b6   :  { %2809 = vst.msk [vmem:[%s5768_s4 + $0x8] sm:$0xff] %vm2808_vm0, %v2791_v59  ;;  %2807 = vst [vmem:[%s5768_s4] sm:$0xff] %v2759_v30 }
 0x4b9   :  { %v2792_v44 = vpop.trf.xlu1  ;;  %v2760_v61 = vpop.trf.xlu0 }
 0x4ba   :  { %2811 = vst.msk [vmem:[%s5768_s4 + $0x18] sm:$0xff] %vm2808_vm0, %v2792_v44  ;;  %2810 = vst [vmem:[%s5768_s4 + $0x10] sm:$0xff] %v2760_v61 }
 0x4bd   :  { %v2793_v22 = vpop.trf.xlu1  ;;  %v2761_v37 = vpop.trf.xlu0 }
 0x4be   :  { %2813 = vst.msk [vmem:[%s5768_s4 + $0x28] sm:$0xff] %vm2808_vm0, %v2793_v22  ;;  %2812 = vst [vmem:[%s5768_s4 + $0x20] sm:$0xff] %v2761_v37 }
 0x4c1   :  { %v2794_v57 = vpop.trf.xlu1  ;;  %v2762_v52 = vpop.trf.xlu0 }
 0x4c2   :  { %2815 = vst.msk [vmem:[%s5768_s4 + $0x38] sm:$0xff] %vm2808_vm0, %v2794_v57  ;;  %2814 = vst [vmem:[%s5768_s4 + $0x30] sm:$0xff] %v2762_v52 }
 0x4c5   :  { %v2795_v39 = vpop.trf.xlu1  ;;  %v2763_v48 = vpop.trf.xlu0 }
 0x4c6   :  { %2817 = vst.msk [vmem:[%s5768_s4 + $0x48] sm:$0xff] %vm2808_vm0, %v2795_v39  ;;  %2816 = vst [vmem:[%s5768_s4 + $0x40] sm:$0xff] %v2763_v48 }
 0x4c9   :  { %v2796_v13 = vpop.trf.xlu1  ;;  %v2764_v31 = vpop.trf.xlu0 }
 0x4ca   :  { %2819 = vst.msk [vmem:[%s5768_s4 + $0x58] sm:$0xff] %vm2808_vm0, %v2796_v13  ;;  %2818 = vst [vmem:[%s5768_s4 + $0x50] sm:$0xff] %v2764_v31 }
 0x4cd   :  { %v2797_v2 = vpop.trf.xlu1  ;;  %v2765_v51 = vpop.trf.xlu0 }
 0x4ce   :  { %2821 = vst.msk [vmem:[%s5768_s4 + $0x68] sm:$0xff] %vm2808_vm0, %v2797_v2  ;;  %2820 = vst [vmem:[%s5768_s4 + $0x60] sm:$0xff] %v2765_v51 }
 0x4d1   :  { %v2798_v24 = vpop.trf.xlu1  ;;  %v2766_v55 = vpop.trf.xlu0 }
 0x4d2   :  { %2823 = vst.msk [vmem:[%s5768_s4 + $0x78] sm:$0xff] %vm2808_vm0, %v2798_v24  ;;  %2822 = vst [vmem:[%s5768_s4 + $0x70] sm:$0xff] %v2766_v55 }
 0x4d5   :  { %v2799_v8 = vpop.trf.xlu1  ;;  %v2767_v32 = vpop.trf.xlu0 }
 0x4d6   :  { %2825 = vst.msk [vmem:[%s5768_s4 + $0x88] sm:$0xff] %vm2808_vm0, %v2799_v8  ;;  %2824 = vst [vmem:[%s5768_s4 + $0x80] sm:$0xff] %v2767_v32 }
 0x4d9   :  { %v2800_v0 = vpop.trf.xlu1  ;;  %v2768_v7 = vpop.trf.xlu0 }
 0x4da   :  { %2827 = vst.msk [vmem:[%s5768_s4 + $0x98] sm:$0xff] %vm2808_vm0, %v2800_v0  ;;  %2826 = vst [vmem:[%s5768_s4 + $0x90] sm:$0xff] %v2768_v7 }
 0x4dd   :  { %v2801_v21 = vpop.trf.xlu1  ;;  %v2769_v11 = vpop.trf.xlu0 }
 0x4de   :  { %2829 = vst.msk [vmem:[%s5768_s4 + $0xa8] sm:$0xff] %vm2808_vm0, %v2801_v21  ;;  %2828 = vst [vmem:[%s5768_s4 + $0xa0] sm:$0xff] %v2769_v11 }
 0x4e1   :  { %v2802_v46 = vpop.trf.xlu1  ;;  %v2770_v50 = vpop.trf.xlu0 }
 0x4e2   :  { %2831 = vst.msk [vmem:[%s5768_s4 + $0xb8] sm:$0xff] %vm2808_vm0, %v2802_v46  ;;  %2830 = vst [vmem:[%s5768_s4 + $0xb0] sm:$0xff] %v2770_v50 }
 0x4e5   :  { %v2803_v23 = vpop.trf.xlu1  ;;  %v2771_v10 = vpop.trf.xlu0 }
 0x4e6   :  { %2833 = vst.msk [vmem:[%s5768_s4 + $0xc8] sm:$0xff] %vm2808_vm0, %v2803_v23  ;;  %2832 = vst [vmem:[%s5768_s4 + $0xc0] sm:$0xff] %v2771_v10 }
 0x4e9   :  { %v2804_v38 = vpop.trf.xlu1  ;;  %v2772_v43 = vpop.trf.xlu0 }
 0x4ea   :  { %2835 = vst.msk [vmem:[%s5768_s4 + $0xd8] sm:$0xff] %vm2808_vm0, %v2804_v38  ;;  %2834 = vst [vmem:[%s5768_s4 + $0xd0] sm:$0xff] %v2772_v43 }
 0x4ed   :  { %v2805_v41 = vpop.trf.xlu1  ;;  %v2773_v12 = vpop.trf.xlu0 }
 0x4ee   :  { %2837 = vst.msk [vmem:[%s5768_s4 + $0xe8] sm:$0xff] %vm2808_vm0, %v2805_v41  ;;  %2836 = vst [vmem:[%s5768_s4 + $0xe0] sm:$0xff] %v2773_v12 }
 0x4f1   :  { %v2806_v15 = vpop.trf.xlu1  ;;  %v2774_v42 = vpop.trf.xlu0 }
 0x4f2   :  { %2839 = vst.msk [vmem:[%s5768_s4 + $0xf8] sm:$0xff] %vm2808_vm0, %v2806_v15  ;;  %2838 = vst [vmem:[%s5768_s4 + $0xf0] sm:$0xff] %v2774_v42 }

</bundles_post_ra>
